<compile_context>
chip_gen: v7x
topology: tpu7x:2x2x1
jax: 0.10.0
libtpu: 0.0.40
codegen_flags: <defaults>
</compile_context>

<pallas_src>
import jax
import jax.numpy as jnp
from jax import lax
from jax.experimental import pallas as pl
from jax.experimental.pallas import tpu as pltpu


def _round_up(n, m):
    return ((n + m - 1) // m) * m


# ----------------------------------------------------------------------------
# Kernel factory (one fused kernel: all LSTM layers + fc head)
# ----------------------------------------------------------------------------
def _make_lstm_kernel(num_layers, seq_len, hp, b_blk, unroll, row_align, hseq_dtype):
    """hp = padded hidden size (multiple of 128); b_blk = batch block (multiple of 8)."""
    L = num_layers
    B = b_blk

    def kernel(*refs):
        x_ref = refs[0]                               # (T*B, Din_pad)   bf16
        wih_refs = refs[1:1 + L]                      # (Din_l_pad, 4hp) bf16
        whh_refs = refs[1 + L:1 + 2 * L]              # (hp, 4hp)        bf16
        b_refs = refs[1 + 2 * L:1 + 3 * L]            # (1, 4hp)         f32
        wfc_ref = refs[1 + 3 * L]                     # (hp, Op)         bf16
        bfc_ref = refs[2 + 3 * L]                     # (1, Op)          f32
        out_ref = refs[3 + 3 * L]                     # (B, Op)          f32
        proj_sc = refs[4 + 3 * L]                     # (T*B, 4hp)       f32 scratch
        hseq_sc = refs[5 + 3 * L] if L > 1 else None  # (T*B, hp)        scratch

        h_last = None
        for l in range(L):
            # ---- (1) Hoisted input projection: one big M = T*B MXU matmul with the
            #      bias folded in (implicit (1,4hp) sublane broadcast).  This moves
            #      ~half the MXU work off the serial recurrent path.
            if l == 0:
                in2d = x_ref[...]                               # bf16
            else:
                in2d = hseq_sc[...].astype(jnp.bfloat16)        # no-op if already bf16
            proj_sc[...] = (
                jnp.dot(in2d, wih_refs[l][...], preferred_element_type=jnp.float32)
                + b_refs[l][...])

            whh_ref = whh_refs[l]
            write_seq = l < L - 1    # last layer: only the final h is needed

            # ---- (2) Recurrence: h/c carried as loop values (SSA), read-only access
            #      to proj_sc, single per-step store of hseq for non-final layers.
            def step(t, carry, whh_ref=whh_ref, write_seq=write_seq):
                h, c = carry
                r0 = pl.multiple_of(t * B, row_align)
                gates = proj_sc[pl.ds(r0, B), :] + jnp.dot(
                    h.astype(jnp.bfloat16), whh_ref[...],
                    preferred_element_type=jnp.float32)
                # PyTorch gate order i, f, g, o; 128-lane-aligned slabs; f32 math.
                i_g = jax.nn.sigmoid(gates[:, 0 * hp:1 * hp])
                f_g = jax.nn.sigmoid(gates[:, 1 * hp:2 * hp])
                g_g = jnp.tanh(gates[:, 2 * hp:3 * hp])
                o_g = jax.nn.sigmoid(gates[:, 3 * hp:4 * hp])
                c_new = f_g * c + i_g * g_g
                h_new = o_g * jnp.tanh(c_new)
                if write_seq:
                    hseq_sc[pl.ds(r0, B), :] = h_new.astype(hseq_dtype)
                return (h_new, c_new)

            zeros = jnp.zeros((B, hp), jnp.float32)   # h0 = c0 = 0 (torch.zeros)
            h_last, _ = lax.fori_loop(0, seq_len, step, (zeros, zeros),
                                      unroll=unroll)

        # Fused fc head on the final hidden state (never leaves VMEM).
        out_ref[...] = (
            jnp.dot(h_last.astype(jnp.bfloat16), wfc_ref[...],
                    preferred_element_type=jnp.float32)
            + bfc_ref[...])

    return kernel


# ----------------------------------------------------------------------------
# Host-side weight packing (pad, transpose, bf16)
# ----------------------------------------------------------------------------
def _pack_layer(w_ih, w_hh, b_ih, b_hh, din_pad, hp):
    """Returns W_ih^T (din_pad, 4hp) bf16, W_hh^T (hp, 4hp) bf16, bias (1, 4hp) f32.

    Gate order i,f,g,o; each gate slab padded to hp lanes with zero weights/bias,
    which keeps the padded hidden/cell lanes exactly zero through the recurrence.
    """
    H = w_hh.shape[1]
    din = w_ih.shape[1]
    wih_t = w_ih.T.astype(jnp.float32)      # (din, 4H)
    whh_t = w_hh.T.astype(jnp.float32)      # (H, 4H)
    bias = (b_ih + b_hh).astype(jnp.float32)

    wih_p = jnp.zeros((din_pad, 4 * hp), jnp.float32)
    whh_p = jnp.zeros((hp, 4 * hp), jnp.float32)
    b_p = jnp.zeros((1, 4 * hp), jnp.float32)
    for k in range(4):
        wih_p = wih_p.at[:din, k * hp:k * hp + H].set(wih_t[:, k * H:(k + 1) * H])
        whh_p = whh_p.at[:H, k * hp:k * hp + H].set(whh_t[:, k * H:(k + 1) * H])
        b_p = b_p.at[0, k * hp:k * hp + H].set(bias[k * H:(k + 1) * H])
    return wih_p.astype(jnp.bfloat16), whh_p.astype(jnp.bfloat16), b_p


# ----------------------------------------------------------------------------
# Forward pass (equivalent to LSTMModel.forward, eval mode)
# ----------------------------------------------------------------------------
@jax.jit
def lstm_model_forward(x, params):
    """x: (B, T, input_dim), batch_first (PyTorch convention)."""
    lstm_layers = params["lstm"]
    L = len(lstm_layers)
    B, T, Din = x.shape
    H = lstm_layers[0]["w_hh"].shape[1]
    O = params["fc"]["w"].shape[0]

    Hp = _round_up(H, 128)
    Din_pad = _round_up(Din, 128)
    Op = _round_up(O, 128)

    # Batch blocking: (9) for 16 <= Bp <= 128, split into two blocks so the
    # "parallel" grid axis can use both v7x TensorCores.
    Bp = _round_up(B, 8)
    if Bp > 128:
        B_BLK = 128
        Bp = _round_up(Bp, B_BLK)
    elif Bp >= 16:
        B_BLK = _round_up(Bp // 2, 8)
        Bp = _round_up(Bp, B_BLK)
    else:
        B_BLK = Bp
    nb = Bp // B_BLK
    grid = (nb,)

    # Input slab: batch-blocked, time-major within each block, bf16 in HBM.
    #   row (g*T*B_BLK + t*B_BLK + j) = x[g*B_BLK + j, t, :]
    x_tm = jnp.transpose(x.astype(jnp.float32), (1, 0, 2))            # (T, B, Din)
    x_pad = jnp.zeros((T, Bp, Din_pad), jnp.float32).at[:, :B, :Din].set(x_tm)
    x_blk = (x_pad.reshape(T, nb, B_BLK, Din_pad)
             .transpose(1, 0, 2, 3)
             .reshape(nb * T * B_BLK, Din_pad)
             .astype(jnp.bfloat16))

    wih_list, whh_list, b_list = [], [], []
    for l, layer in enumerate(lstm_layers):
        dpad = Din_pad if l == 0 else Hp
        wih, whh, b = _pack_layer(layer["w_ih"], layer["w_hh"],
                                  layer["b_ih"], layer["b_hh"], dpad, Hp)
        wih_list.append(wih)
        whh_list.append(whh)
        b_list.append(b)

    wfc = params["fc"]["w"]
    bfc = params["fc"]["b"]
    wfc_pad = (jnp.zeros((Hp, Op), jnp.float32)
               .at[:H, :O].set(wfc.T.astype(jnp.float32))
               .astype(jnp.bfloat16))
    bfc_pad = jnp.zeros((1, Op), jnp.float32).at[0, :O].set(bfc.astype(jnp.float32))

    # (3) bf16 hseq scratch when the per-step row offsets are packed-tile aligned.
    hseq_dtype = jnp.bfloat16 if B_BLK % 16 == 0 else jnp.float32
    row_align = 16 if B_BLK % 16 == 0 else 8
    # (7) full unroll for short sequences, partial unroll otherwise.
    unroll = True if T <= 32 else 8

    kernel = _make_lstm_kernel(L, T, Hp, B_BLK, unroll, row_align, hseq_dtype)

    const2d = lambda b: (0, 0)
    in_specs = (
        [pl.BlockSpec((T * B_BLK, Din_pad), lambda b: (b, 0))]
        + [pl.BlockSpec(w.shape, const2d) for w in wih_list]
        + [pl.BlockSpec(w.shape, const2d) for w in whh_list]
        + [pl.BlockSpec(bb.shape, const2d) for bb in b_list]
        + [pl.BlockSpec(wfc_pad.shape, const2d),
           pl.BlockSpec(bfc_pad.shape, const2d)]
    )
    out_spec = pl.BlockSpec((B_BLK, Op), lambda b: (b, 0))

    scratch_shapes = [pltpu.VMEM((T * B_BLK, 4 * Hp), jnp.float32)]   # in_proj
    if L > 1:
        scratch_shapes.append(pltpu.VMEM((T * B_BLK, Hp), hseq_dtype))  # inter-layer h

    # (12) explicit VMEM budget: pipelined blocks are double-buffered, scratch is not.
    def _sz(a):
        return a.size * jnp.dtype(a.dtype).itemsize
    pipelined_bytes = (T * B_BLK * Din_pad * 2
                       + sum(_sz(w) for w in wih_list + whh_list)
                       + sum(_sz(bb) for bb in b_list)
                       + _sz(wfc_pad) + _sz(bfc_pad)
                       + B_BLK * Op * 4)
    scratch_bytes = T * B_BLK * 4 * Hp * 4
    if L > 1:
        scratch_bytes += T * B_BLK * Hp * jnp.dtype(hseq_dtype).itemsize
    vmem_limit = int(min(max(2 * pipelined_bytes + scratch_bytes + (4 << 20),
                             16 << 20), 64 << 20))

    out_pad = pl.pallas_call(
        kernel,
        out_shape=jax.ShapeDtypeStruct((Bp, Op), jnp.float32),
        grid=grid,
        in_specs=in_specs,
        out_specs=out_spec,
        scratch_shapes=scratch_shapes,
        compiler_params=pltpu.CompilerParams(
            dimension_semantics=("parallel",),   # batch axis -> 2 TCs on v7x
            vmem_limit_bytes=vmem_limit,
        ),
    )(x_blk, *wih_list, *whh_list, *b_list, wfc_pad, bfc_pad)

    return out_pad[:B, :O]


# ----------------------------------------------------------------------------
# Pure-JAX reference (f32) for correctness checking
# ----------------------------------------------------------------------------
def lstm_model_reference(x, params):
    h_seq = x.astype(jnp.float32)
    B = x.shape[0]
    for layer in params["lstm"]:
        wih, whh = layer["w_ih"], layer["w_hh"]
        bias = layer["b_ih"] + layer["b_hh"]
        H = whh.shape[1]

        def cell(carry, x_t, wih=wih, whh=whh, bias=bias, H=H):
            h, c = carry
            gates = x_t @ wih.T + h @ whh.T + bias
            i = jax.nn.sigmoid(gates[:, 0 * H:1 * H])
            f = jax.nn.sigmoid(gates[:, 1 * H:2 * H])
            g = jnp.tanh(gates[:, 2 * H:3 * H])
            o = jax.nn.sigmoid(gates[:, 3 * H:4 * H])
            c = f * c + i * g
            h = o * jnp.tanh(c)
            return (h, c), h

        init = (jnp.zeros((B, H), jnp.float32), jnp.zeros((B, H), jnp.float32))
        (_, _), hs = lax.scan(cell, init, jnp.transpose(h_seq, (1, 0, 2)))
        h_seq = jnp.transpose(hs, (1, 0, 2))
    last = h_seq[:, -1, :]
    return last @ params["fc"]["w"].T + params["fc"]["b"]


# ----------------------------------------------------------------------------
# Deterministic parameter initialization (same shapes as nn.LSTM / nn.Linear)
# ----------------------------------------------------------------------------
def init_params(key, input_dim, hidden_dim, layer_dim, output_dim):
    params = {"lstm": [], "fc": {}}
    bound = 1.0 / jnp.sqrt(jnp.float32(hidden_dim))
    for l in range(layer_dim):
        din = input_dim if l == 0 else hidden_dim
        key, k1, k2, k3, k4 = jax.random.split(key, 5)
        params["lstm"].append(
            {
                "w_ih": jax.random.uniform(k1, (4 * hidden_dim, din), jnp.float32, -bound, bound),
                "w_hh": jax.random.uniform(k2, (4 * hidden_dim, hidden_dim), jnp.float32, -bound, bound),
                "b_ih": jax.random.uniform(k3, (4 * hidden_dim,), jnp.float32, -bound, bound),
                "b_hh": jax.random.uniform(k4, (4 * hidden_dim,), jnp.float32, -bound, bound),
            }
        )
    key, k1, k2 = jax.random.split(key, 3)
    params["fc"]["w"] = jax.random.uniform(k1, (output_dim, hidden_dim), jnp.float32, -bound, bound)
    params["fc"]["b"] = jax.random.uniform(k2, (output_dim,), jnp.float32, -bound, bound)
    return params


# ----------------------------------------------------------------------------
if __name__ == "__main__":
    batch = 2
    seq = 8
    input_dim = 16
    hidden_dim = 32
    layer_dim = 2
    output_dim = 10
    dropout_prob = 0.0  # inactive in eval mode (see TODO above)

    key = jax.random.PRNGKey(0)
    key, xk = jax.random.split(key)
    x = jax.random.normal(xk, (batch, seq, input_dim), dtype=jnp.float32)

    params = init_params(key, input_dim, hidden_dim, layer_dim, output_dim)

    out = lstm_model_forward(x, params)
    out = jax.block_until_ready(out)

    assert out.shape == (batch, output_dim), out.shape
    assert bool(jnp.all(jnp.isfinite(out)))

    # Correctness vs pure-JAX f32 reference (bf16 weights/activations -> loose tol;
    # expect drift to grow with T and layer depth).
    ref = jax.block_until_ready(lstm_model_reference(x, params))
    max_err = float(jnp.max(jnp.abs(out - ref)))
    assert max_err < 5e-2, f"max abs err vs reference: {max_err}"

    print("KERNEL_OK")
</pallas_src>

<mosaic_0001>
module attributes {stable_mosaic.version = 11 : i64} {
  func.func @kernel(%arg0: i32, %arg1: memref<64x128xbf16, #tpu.memory_space<vmem>>, %arg2: memref<128x512xbf16, #tpu.memory_space<vmem>>, %arg3: memref<128x512xbf16, #tpu.memory_space<vmem>>, %arg4: memref<128x512xbf16, #tpu.memory_space<vmem>>, %arg5: memref<128x512xbf16, #tpu.memory_space<vmem>>, %arg6: memref<1x512xf32, #tpu.memory_space<vmem>>, %arg7: memref<1x512xf32, #tpu.memory_space<vmem>>, %arg8: memref<128x128xbf16, #tpu.memory_space<vmem>>, %arg9: memref<1x128xf32, #tpu.memory_space<vmem>>, %arg10: memref<8x128xf32, #tpu.memory_space<vmem>>, %arg11: memref<64x512xf32, #tpu.memory_space<vmem>>, %arg12: memref<64x128xf32, #tpu.memory_space<vmem>>) attributes {dimension_semantics = [#tpu.dimension_semantics<parallel>], iteration_bounds = array<i64: 1>, scalar_prefetch = 0 : i64, scratch_operands = 2 : i64, tpu.core_type = #tpu.core_type<tc>, window_params = [{transform_indices = @transform_0, window_bounds = array<i64: 64, 128>}, {pipeline_mode = #tpu.pipeline_mode<synchronous>, transform_indices = @transform_1, window_bounds = array<i64: 128, 512>}, {pipeline_mode = #tpu.pipeline_mode<synchronous>, transform_indices = @transform_2, window_bounds = array<i64: 128, 512>}, {pipeline_mode = #tpu.pipeline_mode<synchronous>, transform_indices = @transform_3, window_bounds = array<i64: 128, 512>}, {pipeline_mode = #tpu.pipeline_mode<synchronous>, transform_indices = @transform_4, window_bounds = array<i64: 128, 512>}, {pipeline_mode = #tpu.pipeline_mode<synchronous>, transform_indices = @transform_5, window_bounds = array<i64: 1, 512>}, {pipeline_mode = #tpu.pipeline_mode<synchronous>, transform_indices = @transform_6, window_bounds = array<i64: 1, 512>}, {pipeline_mode = #tpu.pipeline_mode<synchronous>, transform_indices = @transform_7, window_bounds = array<i64: 128, 128>}, {pipeline_mode = #tpu.pipeline_mode<synchronous>, transform_indices = @transform_8, window_bounds = array<i64: 1, 128>}, {transform_indices = @transform_9, window_bounds = array<i64: 8, 128>}]} {
    %c0 = arith.constant 0 : index
    %c0_0 = arith.constant 0 : index
    %0 = vector.load %arg1[%c0, %c0_0] : memref<64x128xbf16, #tpu.memory_space<vmem>>, vector<64x128xbf16>
    %c0_1 = arith.constant 0 : index
    %c0_2 = arith.constant 0 : index
    %1 = vector.load %arg2[%c0_1, %c0_2] : memref<128x512xbf16, #tpu.memory_space<vmem>>, vector<128x512xbf16>
    %cst = arith.constant dense<0.000000e+00> : vector<64x512xf32>
    %2 = tpu.matmul %0, %1, %cst {dimension_numbers = #tpu.dot_dimension_numbers<[1], [0], [0], [1], [0, 0, 1, 1], [], []>} : vector<64x128xbf16>, vector<128x512xbf16>, vector<64x512xf32> -> vector<64x512xf32>
    %c0_3 = arith.constant 0 : index
    %c0_4 = arith.constant 0 : index
    %3 = vector.load %arg6[%c0_3, %c0_4] : memref<1x512xf32, #tpu.memory_space<vmem>>, vector<1x512xf32>
    %4 = vector.broadcast %3 : vector<1x512xf32> to vector<64x512xf32>
    %5 = arith.addf %2, %4 : vector<64x512xf32>
    %c0_5 = arith.constant 0 : index
    %c0_6 = arith.constant 0 : index
    %6 = vector.load %arg11[%c0_5, %c0_6] : memref<64x512xf32, #tpu.memory_space<vmem>>, vector<64x512xf32>
    tpu.vector_store %arg11[%c0_5, %c0_6], %5 {strides = array<i32>} : memref<64x512xf32, #tpu.memory_space<vmem>>, vector<64x512xf32>,
    %cst_7 = arith.constant 0.000000e+00 : f32
    %7 = vector.broadcast %cst_7 : f32 to vector<8x128xf32>
    %c0_i32 = arith.constant 0 : i32
    %c8_i32 = arith.constant 8 : i32
    %8 = arith.muli %c0_i32, %c8_i32 : i32
    %9 = tpu.assume_multiple %8, 8 : i32
    %10 = arith.index_cast %9 : i32 to index
    %c0_8 = arith.constant 0 : index
    %11 = vector.load %arg11[%10, %c0_8] : memref<64x512xf32, #tpu.memory_space<vmem>>, vector<8x512xf32>
    %12 = arith.truncf %7 : vector<8x128xf32> to vector<8x128xbf16>
    %c0_9 = arith.constant 0 : index
    %c0_10 = arith.constant 0 : index
    %13 = vector.load %arg4[%c0_9, %c0_10] : memref<128x512xbf16, #tpu.memory_space<vmem>>, vector<128x512xbf16>
    %cst_11 = arith.constant dense<0.000000e+00> : vector<8x512xf32>
    %14 = tpu.matmul %12, %13, %cst_11 {dimension_numbers = #tpu.dot_dimension_numbers<[1], [0], [0], [1], [0, 0, 1, 1], [], []>} : vector<8x128xbf16>, vector<128x512xbf16>, vector<8x512xf32> -> vector<8x512xf32>
    %15 = arith.addf %11, %14 : vector<8x512xf32>
    %16 = vector.extract_strided_slice %15 {offsets = [0, 0], sizes = [8, 128], strides = [1, 1]} : vector<8x512xf32> to vector<8x128xf32>
    %17 = arith.negf %16 : vector<8x128xf32>
    %18 = math.exp %17 : vector<8x128xf32>
    %cst_12 = arith.constant 1.000000e+00 : f32
    %19 = vector.broadcast %cst_12 : f32 to vector<8x128xf32>
    %20 = arith.addf %19, %18 : vector<8x128xf32>
    %21 = arith.divf %19, %20 : vector<8x128xf32>
    %22 = vector.extract_strided_slice %15 {offsets = [0, 128], sizes = [8, 128], strides = [1, 1]} : vector<8x512xf32> to vector<8x128xf32>
    %23 = arith.negf %22 : vector<8x128xf32>
    %24 = math.exp %23 : vector<8x128xf32>
    %cst_13 = arith.constant 1.000000e+00 : f32
    %25 = vector.broadcast %cst_13 : f32 to vector<8x128xf32>
    %26 = arith.addf %25, %24 : vector<8x128xf32>
    %27 = arith.divf %25, %26 : vector<8x128xf32>
    %28 = vector.extract_strided_slice %15 {offsets = [0, 256], sizes = [8, 128], strides = [1, 1]} : vector<8x512xf32> to vector<8x128xf32>
    %29 = math.tanh %28 : vector<8x128xf32>
    %30 = vector.extract_strided_slice %15 {offsets = [0, 384], sizes = [8, 128], strides = [1, 1]} : vector<8x512xf32> to vector<8x128xf32>
    %31 = arith.negf %30 : vector<8x128xf32>
    %32 = math.exp %31 : vector<8x128xf32>
    %cst_14 = arith.constant 1.000000e+00 : f32
    %33 = vector.broadcast %cst_14 : f32 to vector<8x128xf32>
    %34 = arith.addf %33, %32 : vector<8x128xf32>
    %35 = arith.divf %33, %34 : vector<8x128xf32>
    %36 = arith.mulf %27, %7 : vector<8x128xf32>
    %37 = arith.mulf %21, %29 : vector<8x128xf32>
    %38 = arith.addf %36, %37 : vector<8x128xf32>
    %39 = math.tanh %38 : vector<8x128xf32>
    %40 = arith.mulf %35, %39 : vector<8x128xf32>
    %41 = arith.index_cast %9 : i32 to index
    %c0_15 = arith.constant 0 : index
    %42 = vector.load %arg12[%41, %c0_15] : memref<64x128xf32, #tpu.memory_space<vmem>>, vector<8x128xf32>
    tpu.vector_store %arg12[%41, %c0_15], %40 {strides = array<i32>} : memref<64x128xf32, #tpu.memory_space<vmem>>, vector<8x128xf32>,
    %c1_i32 = arith.constant 1 : i32
    %c8_i32_16 = arith.constant 8 : i32
    %43 = arith.muli %c1_i32, %c8_i32_16 : i32
    %44 = tpu.assume_multiple %43, 8 : i32
    %45 = arith.index_cast %44 : i32 to index
    %c0_17 = arith.constant 0 : index
    %46 = vector.load %arg11[%45, %c0_17] : memref<64x512xf32, #tpu.memory_space<vmem>>, vector<8x512xf32>
    %47 = arith.truncf %40 : vector<8x128xf32> to vector<8x128xbf16>
    %c0_18 = arith.constant 0 : index
    %c0_19 = arith.constant 0 : index
    %48 = vector.load %arg4[%c0_18, %c0_19] : memref<128x512xbf16, #tpu.memory_space<vmem>>, vector<128x512xbf16>
    %cst_20 = arith.constant dense<0.000000e+00> : vector<8x512xf32>
    %49 = tpu.matmul %47, %48, %cst_20 {dimension_numbers = #tpu.dot_dimension_numbers<[1], [0], [0], [1], [0, 0, 1, 1], [], []>} : vector<8x128xbf16>, vector<128x512xbf16>, vector<8x512xf32> -> vector<8x512xf32>
    %50 = arith.addf %46, %49 : vector<8x512xf32>
    %51 = vector.extract_strided_slice %50 {offsets = [0, 0], sizes = [8, 128], strides = [1, 1]} : vector<8x512xf32> to vector<8x128xf32>
    %52 = arith.negf %51 : vector<8x128xf32>
    %53 = math.exp %52 : vector<8x128xf32>
    %cst_21 = arith.constant 1.000000e+00 : f32
    %54 = vector.broadcast %cst_21 : f32 to vector<8x128xf32>
    %55 = arith.addf %54, %53 : vector<8x128xf32>
    %56 = arith.divf %54, %55 : vector<8x128xf32>
    %57 = vector.extract_strided_slice %50 {offsets = [0, 128], sizes = [8, 128], strides = [1, 1]} : vector<8x512xf32> to vector<8x128xf32>
    %58 = arith.negf %57 : vector<8x128xf32>
    %59 = math.exp %58 : vector<8x128xf32>
    %cst_22 = arith.constant 1.000000e+00 : f32
    %60 = vector.broadcast %cst_22 : f32 to vector<8x128xf32>
    %61 = arith.addf %60, %59 : vector<8x128xf32>
    %62 = arith.divf %60, %61 : vector<8x128xf32>
    %63 = vector.extract_strided_slice %50 {offsets = [0, 256], sizes = [8, 128], strides = [1, 1]} : vector<8x512xf32> to vector<8x128xf32>
    %64 = math.tanh %63 : vector<8x128xf32>
    %65 = vector.extract_strided_slice %50 {offsets = [0, 384], sizes = [8, 128], strides = [1, 1]} : vector<8x512xf32> to vector<8x128xf32>
    %66 = arith.negf %65 : vector<8x128xf32>
    %67 = math.exp %66 : vector<8x128xf32>
    %cst_23 = arith.constant 1.000000e+00 : f32
    %68 = vector.broadcast %cst_23 : f32 to vector<8x128xf32>
    %69 = arith.addf %68, %67 : vector<8x128xf32>
    %70 = arith.divf %68, %69 : vector<8x128xf32>
    %71 = arith.mulf %62, %38 : vector<8x128xf32>
    %72 = arith.mulf %56, %64 : vector<8x128xf32>
    %73 = arith.addf %71, %72 : vector<8x128xf32>
    %74 = math.tanh %73 : vector<8x128xf32>
    %75 = arith.mulf %70, %74 : vector<8x128xf32>
    %76 = arith.index_cast %44 : i32 to index
    %c0_24 = arith.constant 0 : index
    %77 = vector.load %arg12[%76, %c0_24] : memref<64x128xf32, #tpu.memory_space<vmem>>, vector<8x128xf32>
    tpu.vector_store %arg12[%76, %c0_24], %75 {strides = array<i32>} : memref<64x128xf32, #tpu.memory_space<vmem>>, vector<8x128xf32>,
    %c2_i32 = arith.constant 2 : i32
    %c8_i32_25 = arith.constant 8 : i32
    %78 = arith.muli %c2_i32, %c8_i32_25 : i32
    %79 = tpu.assume_multiple %78, 8 : i32
    %80 = arith.index_cast %79 : i32 to index
    %c0_26 = arith.constant 0 : index
    %81 = vector.load %arg11[%80, %c0_26] : memref<64x512xf32, #tpu.memory_space<vmem>>, vector<8x512xf32>
    %82 = arith.truncf %75 : vector<8x128xf32> to vector<8x128xbf16>
    %c0_27 = arith.constant 0 : index
    %c0_28 = arith.constant 0 : index
    %83 = vector.load %arg4[%c0_27, %c0_28] : memref<128x512xbf16, #tpu.memory_space<vmem>>, vector<128x512xbf16>
    %cst_29 = arith.constant dense<0.000000e+00> : vector<8x512xf32>
    %84 = tpu.matmul %82, %83, %cst_29 {dimension_numbers = #tpu.dot_dimension_numbers<[1], [0], [0], [1], [0, 0, 1, 1], [], []>} : vector<8x128xbf16>, vector<128x512xbf16>, vector<8x512xf32> -> vector<8x512xf32>
    %85 = arith.addf %81, %84 : vector<8x512xf32>
    %86 = vector.extract_strided_slice %85 {offsets = [0, 0], sizes = [8, 128], strides = [1, 1]} : vector<8x512xf32> to vector<8x128xf32>
    %87 = arith.negf %86 : vector<8x128xf32>
    %88 = math.exp %87 : vector<8x128xf32>
    %cst_30 = arith.constant 1.000000e+00 : f32
    %89 = vector.broadcast %cst_30 : f32 to vector<8x128xf32>
    %90 = arith.addf %89, %88 : vector<8x128xf32>
    %91 = arith.divf %89, %90 : vector<8x128xf32>
    %92 = vector.extract_strided_slice %85 {offsets = [0, 128], sizes = [8, 128], strides = [1, 1]} : vector<8x512xf32> to vector<8x128xf32>
    %93 = arith.negf %92 : vector<8x128xf32>
    %94 = math.exp %93 : vector<8x128xf32>
    %cst_31 = arith.constant 1.000000e+00 : f32
    %95 = vector.broadcast %cst_31 : f32 to vector<8x128xf32>
    %96 = arith.addf %95, %94 : vector<8x128xf32>
    %97 = arith.divf %95, %96 : vector<8x128xf32>
    %98 = vector.extract_strided_slice %85 {offsets = [0, 256], sizes = [8, 128], strides = [1, 1]} : vector<8x512xf32> to vector<8x128xf32>
    %99 = math.tanh %98 : vector<8x128xf32>
    %100 = vector.extract_strided_slice %85 {offsets = [0, 384], sizes = [8, 128], strides = [1, 1]} : vector<8x512xf32> to vector<8x128xf32>
    %101 = arith.negf %100 : vector<8x128xf32>
    %102 = math.exp %101 : vector<8x128xf32>
    %cst_32 = arith.constant 1.000000e+00 : f32
    %103 = vector.broadcast %cst_32 : f32 to vector<8x128xf32>
    %104 = arith.addf %103, %102 : vector<8x128xf32>
    %105 = arith.divf %103, %104 : vector<8x128xf32>
    %106 = arith.mulf %97, %73 : vector<8x128xf32>
    %107 = arith.mulf %91, %99 : vector<8x128xf32>
    %108 = arith.addf %106, %107 : vector<8x128xf32>
    %109 = math.tanh %108 : vector<8x128xf32>
    %110 = arith.mulf %105, %109 : vector<8x128xf32>
    %111 = arith.index_cast %79 : i32 to index
    %c0_33 = arith.constant 0 : index
    %112 = vector.load %arg12[%111, %c0_33] : memref<64x128xf32, #tpu.memory_space<vmem>>, vector<8x128xf32>
    tpu.vector_store %arg12[%111, %c0_33], %110 {strides = array<i32>} : memref<64x128xf32, #tpu.memory_space<vmem>>, vector<8x128xf32>,
    %c3_i32 = arith.constant 3 : i32
    %c8_i32_34 = arith.constant 8 : i32
    %113 = arith.muli %c3_i32, %c8_i32_34 : i32
    %114 = tpu.assume_multiple %113, 8 : i32
    %115 = arith.index_cast %114 : i32 to index
    %c0_35 = arith.constant 0 : index
    %116 = vector.load %arg11[%115, %c0_35] : memref<64x512xf32, #tpu.memory_space<vmem>>, vector<8x512xf32>
    %117 = arith.truncf %110 : vector<8x128xf32> to vector<8x128xbf16>
    %c0_36 = arith.constant 0 : index
    %c0_37 = arith.constant 0 : index
    %118 = vector.load %arg4[%c0_36, %c0_37] : memref<128x512xbf16, #tpu.memory_space<vmem>>, vector<128x512xbf16>
    %cst_38 = arith.constant dense<0.000000e+00> : vector<8x512xf32>
    %119 = tpu.matmul %117, %118, %cst_38 {dimension_numbers = #tpu.dot_dimension_numbers<[1], [0], [0], [1], [0, 0, 1, 1], [], []>} : vector<8x128xbf16>, vector<128x512xbf16>, vector<8x512xf32> -> vector<8x512xf32>
    %120 = arith.addf %116, %119 : vector<8x512xf32>
    %121 = vector.extract_strided_slice %120 {offsets = [0, 0], sizes = [8, 128], strides = [1, 1]} : vector<8x512xf32> to vector<8x128xf32>
    %122 = arith.negf %121 : vector<8x128xf32>
    %123 = math.exp %122 : vector<8x128xf32>
    %cst_39 = arith.constant 1.000000e+00 : f32
    %124 = vector.broadcast %cst_39 : f32 to vector<8x128xf32>
    %125 = arith.addf %124, %123 : vector<8x128xf32>
    %126 = arith.divf %124, %125 : vector<8x128xf32>
    %127 = vector.extract_strided_slice %120 {offsets = [0, 128], sizes = [8, 128], strides = [1, 1]} : vector<8x512xf32> to vector<8x128xf32>
    %128 = arith.negf %127 : vector<8x128xf32>
    %129 = math.exp %128 : vector<8x128xf32>
    %cst_40 = arith.constant 1.000000e+00 : f32
    %130 = vector.broadcast %cst_40 : f32 to vector<8x128xf32>
    %131 = arith.addf %130, %129 : vector<8x128xf32>
    %132 = arith.divf %130, %131 : vector<8x128xf32>
    %133 = vector.extract_strided_slice %120 {offsets = [0, 256], sizes = [8, 128], strides = [1, 1]} : vector<8x512xf32> to vector<8x128xf32>
    %134 = math.tanh %133 : vector<8x128xf32>
    %135 = vector.extract_strided_slice %120 {offsets = [0, 384], sizes = [8, 128], strides = [1, 1]} : vector<8x512xf32> to vector<8x128xf32>
    %136 = arith.negf %135 : vector<8x128xf32>
    %137 = math.exp %136 : vector<8x128xf32>
    %cst_41 = arith.constant 1.000000e+00 : f32
    %138 = vector.broadcast %cst_41 : f32 to vector<8x128xf32>
    %139 = arith.addf %138, %137 : vector<8x128xf32>
    %140 = arith.divf %138, %139 : vector<8x128xf32>
    %141 = arith.mulf %132, %108 : vector<8x128xf32>
    %142 = arith.mulf %126, %134 : vector<8x128xf32>
    %143 = arith.addf %141, %142 : vector<8x128xf32>
    %144 = math.tanh %143 : vector<8x128xf32>
    %145 = arith.mulf %140, %144 : vector<8x128xf32>
    %146 = arith.index_cast %114 : i32 to index
    %c0_42 = arith.constant 0 : index
    %147 = vector.load %arg12[%146, %c0_42] : memref<64x128xf32, #tpu.memory_space<vmem>>, vector<8x128xf32>
    tpu.vector_store %arg12[%146, %c0_42], %145 {strides = array<i32>} : memref<64x128xf32, #tpu.memory_space<vmem>>, vector<8x128xf32>,
    %c4_i32 = arith.constant 4 : i32
    %c8_i32_43 = arith.constant 8 : i32
    %148 = arith.muli %c4_i32, %c8_i32_43 : i32
    %149 = tpu.assume_multiple %148, 8 : i32
    %150 = arith.index_cast %149 : i32 to index
    %c0_44 = arith.constant 0 : index
    %151 = vector.load %arg11[%150, %c0_44] : memref<64x512xf32, #tpu.memory_space<vmem>>, vector<8x512xf32>
    %152 = arith.truncf %145 : vector<8x128xf32> to vector<8x128xbf16>
    %c0_45 = arith.constant 0 : index
    %c0_46 = arith.constant 0 : index
    %153 = vector.load %arg4[%c0_45, %c0_46] : memref<128x512xbf16, #tpu.memory_space<vmem>>, vector<128x512xbf16>
    %cst_47 = arith.constant dense<0.000000e+00> : vector<8x512xf32>
    %154 = tpu.matmul %152, %153, %cst_47 {dimension_numbers = #tpu.dot_dimension_numbers<[1], [0], [0], [1], [0, 0, 1, 1], [], []>} : vector<8x128xbf16>, vector<128x512xbf16>, vector<8x512xf32> -> vector<8x512xf32>
    %155 = arith.addf %151, %154 : vector<8x512xf32>
    %156 = vector.extract_strided_slice %155 {offsets = [0, 0], sizes = [8, 128], strides = [1, 1]} : vector<8x512xf32> to vector<8x128xf32>
    %157 = arith.negf %156 : vector<8x128xf32>
    %158 = math.exp %157 : vector<8x128xf32>
    %cst_48 = arith.constant 1.000000e+00 : f32
    %159 = vector.broadcast %cst_48 : f32 to vector<8x128xf32>
    %160 = arith.addf %159, %158 : vector<8x128xf32>
    %161 = arith.divf %159, %160 : vector<8x128xf32>
    %162 = vector.extract_strided_slice %155 {offsets = [0, 128], sizes = [8, 128], strides = [1, 1]} : vector<8x512xf32> to vector<8x128xf32>
    %163 = arith.negf %162 : vector<8x128xf32>
    %164 = math.exp %163 : vector<8x128xf32>
    %cst_49 = arith.constant 1.000000e+00 : f32
    %165 = vector.broadcast %cst_49 : f32 to vector<8x128xf32>
    %166 = arith.addf %165, %164 : vector<8x128xf32>
    %167 = arith.divf %165, %166 : vector<8x128xf32>
    %168 = vector.extract_strided_slice %155 {offsets = [0, 256], sizes = [8, 128], strides = [1, 1]} : vector<8x512xf32> to vector<8x128xf32>
    %169 = math.tanh %168 : vector<8x128xf32>
    %170 = vector.extract_strided_slice %155 {offsets = [0, 384], sizes = [8, 128], strides = [1, 1]} : vector<8x512xf32> to vector<8x128xf32>
    %171 = arith.negf %170 : vector<8x128xf32>
    %172 = math.exp %171 : vector<8x128xf32>
    %cst_50 = arith.constant 1.000000e+00 : f32
    %173 = vector.broadcast %cst_50 : f32 to vector<8x128xf32>
    %174 = arith.addf %173, %172 : vector<8x128xf32>
    %175 = arith.divf %173, %174 : vector<8x128xf32>
    %176 = arith.mulf %167, %143 : vector<8x128xf32>
    %177 = arith.mulf %161, %169 : vector<8x128xf32>
    %178 = arith.addf %176, %177 : vector<8x128xf32>
    %179 = math.tanh %178 : vector<8x128xf32>
    %180 = arith.mulf %175, %179 : vector<8x128xf32>
    %181 = arith.index_cast %149 : i32 to index
    %c0_51 = arith.constant 0 : index
    %182 = vector.load %arg12[%181, %c0_51] : memref<64x128xf32, #tpu.memory_space<vmem>>, vector<8x128xf32>
    tpu.vector_store %arg12[%181, %c0_51], %180 {strides = array<i32>} : memref<64x128xf32, #tpu.memory_space<vmem>>, vector<8x128xf32>,
    %c5_i32 = arith.constant 5 : i32
    %c8_i32_52 = arith.constant 8 : i32
    %183 = arith.muli %c5_i32, %c8_i32_52 : i32
    %184 = tpu.assume_multiple %183, 8 : i32
    %185 = arith.index_cast %184 : i32 to index
    %c0_53 = arith.constant 0 : index
    %186 = vector.load %arg11[%185, %c0_53] : memref<64x512xf32, #tpu.memory_space<vmem>>, vector<8x512xf32>
    %187 = arith.truncf %180 : vector<8x128xf32> to vector<8x128xbf16>
    %c0_54 = arith.constant 0 : index
    %c0_55 = arith.constant 0 : index
    %188 = vector.load %arg4[%c0_54, %c0_55] : memref<128x512xbf16, #tpu.memory_space<vmem>>, vector<128x512xbf16>
    %cst_56 = arith.constant dense<0.000000e+00> : vector<8x512xf32>
    %189 = tpu.matmul %187, %188, %cst_56 {dimension_numbers = #tpu.dot_dimension_numbers<[1], [0], [0], [1], [0, 0, 1, 1], [], []>} : vector<8x128xbf16>, vector<128x512xbf16>, vector<8x512xf32> -> vector<8x512xf32>
    %190 = arith.addf %186, %189 : vector<8x512xf32>
    %191 = vector.extract_strided_slice %190 {offsets = [0, 0], sizes = [8, 128], strides = [1, 1]} : vector<8x512xf32> to vector<8x128xf32>
    %192 = arith.negf %191 : vector<8x128xf32>
    %193 = math.exp %192 : vector<8x128xf32>
    %cst_57 = arith.constant 1.000000e+00 : f32
    %194 = vector.broadcast %cst_57 : f32 to vector<8x128xf32>
    %195 = arith.addf %194, %193 : vector<8x128xf32>
    %196 = arith.divf %194, %195 : vector<8x128xf32>
    %197 = vector.extract_strided_slice %190 {offsets = [0, 128], sizes = [8, 128], strides = [1, 1]} : vector<8x512xf32> to vector<8x128xf32>
    %198 = arith.negf %197 : vector<8x128xf32>
    %199 = math.exp %198 : vector<8x128xf32>
    %cst_58 = arith.constant 1.000000e+00 : f32
    %200 = vector.broadcast %cst_58 : f32 to vector<8x128xf32>
    %201 = arith.addf %200, %199 : vector<8x128xf32>
    %202 = arith.divf %200, %201 : vector<8x128xf32>
    %203 = vector.extract_strided_slice %190 {offsets = [0, 256], sizes = [8, 128], strides = [1, 1]} : vector<8x512xf32> to vector<8x128xf32>
    %204 = math.tanh %203 : vector<8x128xf32>
    %205 = vector.extract_strided_slice %190 {offsets = [0, 384], sizes = [8, 128], strides = [1, 1]} : vector<8x512xf32> to vector<8x128xf32>
    %206 = arith.negf %205 : vector<8x128xf32>
    %207 = math.exp %206 : vector<8x128xf32>
    %cst_59 = arith.constant 1.000000e+00 : f32
    %208 = vector.broadcast %cst_59 : f32 to vector<8x128xf32>
    %209 = arith.addf %208, %207 : vector<8x128xf32>
    %210 = arith.divf %208, %209 : vector<8x128xf32>
    %211 = arith.mulf %202, %178 : vector<8x128xf32>
    %212 = arith.mulf %196, %204 : vector<8x128xf32>
    %213 = arith.addf %211, %212 : vector<8x128xf32>
    %214 = math.tanh %213 : vector<8x128xf32>
    %215 = arith.mulf %210, %214 : vector<8x128xf32>
    %216 = arith.index_cast %184 : i32 to index
    %c0_60 = arith.constant 0 : index
    %217 = vector.load %arg12[%216, %c0_60] : memref<64x128xf32, #tpu.memory_space<vmem>>, vector<8x128xf32>
    tpu.vector_store %arg12[%216, %c0_60], %215 {strides = array<i32>} : memref<64x128xf32, #tpu.memory_space<vmem>>, vector<8x128xf32>,
    %c6_i32 = arith.constant 6 : i32
    %c8_i32_61 = arith.constant 8 : i32
    %218 = arith.muli %c6_i32, %c8_i32_61 : i32
    %219 = tpu.assume_multiple %218, 8 : i32
    %220 = arith.index_cast %219 : i32 to index
    %c0_62 = arith.constant 0 : index
    %221 = vector.load %arg11[%220, %c0_62] : memref<64x512xf32, #tpu.memory_space<vmem>>, vector<8x512xf32>
    %222 = arith.truncf %215 : vector<8x128xf32> to vector<8x128xbf16>
    %c0_63 = arith.constant 0 : index
    %c0_64 = arith.constant 0 : index
    %223 = vector.load %arg4[%c0_63, %c0_64] : memref<128x512xbf16, #tpu.memory_space<vmem>>, vector<128x512xbf16>
    %cst_65 = arith.constant dense<0.000000e+00> : vector<8x512xf32>
    %224 = tpu.matmul %222, %223, %cst_65 {dimension_numbers = #tpu.dot_dimension_numbers<[1], [0], [0], [1], [0, 0, 1, 1], [], []>} : vector<8x128xbf16>, vector<128x512xbf16>, vector<8x512xf32> -> vector<8x512xf32>
    %225 = arith.addf %221, %224 : vector<8x512xf32>
    %226 = vector.extract_strided_slice %225 {offsets = [0, 0], sizes = [8, 128], strides = [1, 1]} : vector<8x512xf32> to vector<8x128xf32>
    %227 = arith.negf %226 : vector<8x128xf32>
    %228 = math.exp %227 : vector<8x128xf32>
    %cst_66 = arith.constant 1.000000e+00 : f32
    %229 = vector.broadcast %cst_66 : f32 to vector<8x128xf32>
    %230 = arith.addf %229, %228 : vector<8x128xf32>
    %231 = arith.divf %229, %230 : vector<8x128xf32>
    %232 = vector.extract_strided_slice %225 {offsets = [0, 128], sizes = [8, 128], strides = [1, 1]} : vector<8x512xf32> to vector<8x128xf32>
    %233 = arith.negf %232 : vector<8x128xf32>
    %234 = math.exp %233 : vector<8x128xf32>
    %cst_67 = arith.constant 1.000000e+00 : f32
    %235 = vector.broadcast %cst_67 : f32 to vector<8x128xf32>
    %236 = arith.addf %235, %234 : vector<8x128xf32>
    %237 = arith.divf %235, %236 : vector<8x128xf32>
    %238 = vector.extract_strided_slice %225 {offsets = [0, 256], sizes = [8, 128], strides = [1, 1]} : vector<8x512xf32> to vector<8x128xf32>
    %239 = math.tanh %238 : vector<8x128xf32>
    %240 = vector.extract_strided_slice %225 {offsets = [0, 384], sizes = [8, 128], strides = [1, 1]} : vector<8x512xf32> to vector<8x128xf32>
    %241 = arith.negf %240 : vector<8x128xf32>
    %242 = math.exp %241 : vector<8x128xf32>
    %cst_68 = arith.constant 1.000000e+00 : f32
    %243 = vector.broadcast %cst_68 : f32 to vector<8x128xf32>
    %244 = arith.addf %243, %242 : vector<8x128xf32>
    %245 = arith.divf %243, %244 : vector<8x128xf32>
    %246 = arith.mulf %237, %213 : vector<8x128xf32>
    %247 = arith.mulf %231, %239 : vector<8x128xf32>
    %248 = arith.addf %246, %247 : vector<8x128xf32>
    %249 = math.tanh %248 : vector<8x128xf32>
    %250 = arith.mulf %245, %249 : vector<8x128xf32>
    %251 = arith.index_cast %219 : i32 to index
    %c0_69 = arith.constant 0 : index
    %252 = vector.load %arg12[%251, %c0_69] : memref<64x128xf32, #tpu.memory_space<vmem>>, vector<8x128xf32>
    tpu.vector_store %arg12[%251, %c0_69], %250 {strides = array<i32>} : memref<64x128xf32, #tpu.memory_space<vmem>>, vector<8x128xf32>,
    %c7_i32 = arith.constant 7 : i32
    %c8_i32_70 = arith.constant 8 : i32
    %253 = arith.muli %c7_i32, %c8_i32_70 : i32
    %254 = tpu.assume_multiple %253, 8 : i32
    %255 = arith.index_cast %254 : i32 to index
    %c0_71 = arith.constant 0 : index
    %256 = vector.load %arg11[%255, %c0_71] : memref<64x512xf32, #tpu.memory_space<vmem>>, vector<8x512xf32>
    %257 = arith.truncf %250 : vector<8x128xf32> to vector<8x128xbf16>
    %c0_72 = arith.constant 0 : index
    %c0_73 = arith.constant 0 : index
    %258 = vector.load %arg4[%c0_72, %c0_73] : memref<128x512xbf16, #tpu.memory_space<vmem>>, vector<128x512xbf16>
    %cst_74 = arith.constant dense<0.000000e+00> : vector<8x512xf32>
    %259 = tpu.matmul %257, %258, %cst_74 {dimension_numbers = #tpu.dot_dimension_numbers<[1], [0], [0], [1], [0, 0, 1, 1], [], []>} : vector<8x128xbf16>, vector<128x512xbf16>, vector<8x512xf32> -> vector<8x512xf32>
    %260 = arith.addf %256, %259 : vector<8x512xf32>
    %261 = vector.extract_strided_slice %260 {offsets = [0, 0], sizes = [8, 128], strides = [1, 1]} : vector<8x512xf32> to vector<8x128xf32>
    %262 = arith.negf %261 : vector<8x128xf32>
    %263 = math.exp %262 : vector<8x128xf32>
    %cst_75 = arith.constant 1.000000e+00 : f32
    %264 = vector.broadcast %cst_75 : f32 to vector<8x128xf32>
    %265 = arith.addf %264, %263 : vector<8x128xf32>
    %266 = arith.divf %264, %265 : vector<8x128xf32>
    %267 = vector.extract_strided_slice %260 {offsets = [0, 128], sizes = [8, 128], strides = [1, 1]} : vector<8x512xf32> to vector<8x128xf32>
    %268 = arith.negf %267 : vector<8x128xf32>
    %269 = math.exp %268 : vector<8x128xf32>
    %cst_76 = arith.constant 1.000000e+00 : f32
    %270 = vector.broadcast %cst_76 : f32 to vector<8x128xf32>
    %271 = arith.addf %270, %269 : vector<8x128xf32>
    %272 = arith.divf %270, %271 : vector<8x128xf32>
    %273 = vector.extract_strided_slice %260 {offsets = [0, 256], sizes = [8, 128], strides = [1, 1]} : vector<8x512xf32> to vector<8x128xf32>
    %274 = math.tanh %273 : vector<8x128xf32>
    %275 = vector.extract_strided_slice %260 {offsets = [0, 384], sizes = [8, 128], strides = [1, 1]} : vector<8x512xf32> to vector<8x128xf32>
    %276 = arith.negf %275 : vector<8x128xf32>
    %277 = math.exp %276 : vector<8x128xf32>
    %cst_77 = arith.constant 1.000000e+00 : f32
    %278 = vector.broadcast %cst_77 : f32 to vector<8x128xf32>
    %279 = arith.addf %278, %277 : vector<8x128xf32>
    %280 = arith.divf %278, %279 : vector<8x128xf32>
    %281 = arith.mulf %272, %248 : vector<8x128xf32>
    %282 = arith.mulf %266, %274 : vector<8x128xf32>
    %283 = arith.addf %281, %282 : vector<8x128xf32>
    %284 = math.tanh %283 : vector<8x128xf32>
    %285 = arith.mulf %280, %284 : vector<8x128xf32>
    %286 = arith.index_cast %254 : i32 to index
    %c0_78 = arith.constant 0 : index
    %287 = vector.load %arg12[%286, %c0_78] : memref<64x128xf32, #tpu.memory_space<vmem>>, vector<8x128xf32>
    tpu.vector_store %arg12[%286, %c0_78], %285 {strides = array<i32>} : memref<64x128xf32, #tpu.memory_space<vmem>>, vector<8x128xf32>,
    %c8_i32_79 = arith.constant 8 : i32
    %c0_80 = arith.constant 0 : index
    %c0_81 = arith.constant 0 : index
    %288 = vector.load %arg12[%c0_80, %c0_81] : memref<64x128xf32, #tpu.memory_space<vmem>>, vector<64x128xf32>
    %289 = arith.truncf %288 : vector<64x128xf32> to vector<64x128xbf16>
    %c0_82 = arith.constant 0 : index
    %c0_83 = arith.constant 0 : index
    %290 = vector.load %arg3[%c0_82, %c0_83] : memref<128x512xbf16, #tpu.memory_space<vmem>>, vector<128x512xbf16>
    %cst_84 = arith.constant dense<0.000000e+00> : vector<64x512xf32>
    %291 = tpu.matmul %289, %290, %cst_84 {dimension_numbers = #tpu.dot_dimension_numbers<[1], [0], [0], [1], [0, 0, 1, 1], [], []>} : vector<64x128xbf16>, vector<128x512xbf16>, vector<64x512xf32> -> vector<64x512xf32>
    %c0_85 = arith.constant 0 : index
    %c0_86 = arith.constant 0 : index
    %292 = vector.load %arg7[%c0_85, %c0_86] : memref<1x512xf32, #tpu.memory_space<vmem>>, vector<1x512xf32>
    %293 = vector.broadcast %292 : vector<1x512xf32> to vector<64x512xf32>
    %294 = arith.addf %291, %293 : vector<64x512xf32>
    %c0_87 = arith.constant 0 : index
    %c0_88 = arith.constant 0 : index
    %295 = vector.load %arg11[%c0_87, %c0_88] : memref<64x512xf32, #tpu.memory_space<vmem>>, vector<64x512xf32>
    tpu.vector_store %arg11[%c0_87, %c0_88], %294 {strides = array<i32>} : memref<64x512xf32, #tpu.memory_space<vmem>>, vector<64x512xf32>,
    %cst_89 = arith.constant 0.000000e+00 : f32
    %296 = vector.broadcast %cst_89 : f32 to vector<8x128xf32>
    %c0_i32_90 = arith.constant 0 : i32
    %c8_i32_91 = arith.constant 8 : i32
    %297 = arith.muli %c0_i32_90, %c8_i32_91 : i32
    %298 = tpu.assume_multiple %297, 8 : i32
    %299 = arith.index_cast %298 : i32 to index
    %c0_92 = arith.constant 0 : index
    %300 = vector.load %arg11[%299, %c0_92] : memref<64x512xf32, #tpu.memory_space<vmem>>, vector<8x512xf32>
    %301 = arith.truncf %296 : vector<8x128xf32> to vector<8x128xbf16>
    %c0_93 = arith.constant 0 : index
    %c0_94 = arith.constant 0 : index
    %302 = vector.load %arg5[%c0_93, %c0_94] : memref<128x512xbf16, #tpu.memory_space<vmem>>, vector<128x512xbf16>
    %cst_95 = arith.constant dense<0.000000e+00> : vector<8x512xf32>
    %303 = tpu.matmul %301, %302, %cst_95 {dimension_numbers = #tpu.dot_dimension_numbers<[1], [0], [0], [1], [0, 0, 1, 1], [], []>} : vector<8x128xbf16>, vector<128x512xbf16>, vector<8x512xf32> -> vector<8x512xf32>
    %304 = arith.addf %300, %303 : vector<8x512xf32>
    %305 = vector.extract_strided_slice %304 {offsets = [0, 0], sizes = [8, 128], strides = [1, 1]} : vector<8x512xf32> to vector<8x128xf32>
    %306 = arith.negf %305 : vector<8x128xf32>
    %307 = math.exp %306 : vector<8x128xf32>
    %cst_96 = arith.constant 1.000000e+00 : f32
    %308 = vector.broadcast %cst_96 : f32 to vector<8x128xf32>
    %309 = arith.addf %308, %307 : vector<8x128xf32>
    %310 = arith.divf %308, %309 : vector<8x128xf32>
    %311 = vector.extract_strided_slice %304 {offsets = [0, 128], sizes = [8, 128], strides = [1, 1]} : vector<8x512xf32> to vector<8x128xf32>
    %312 = arith.negf %311 : vector<8x128xf32>
    %313 = math.exp %312 : vector<8x128xf32>
    %cst_97 = arith.constant 1.000000e+00 : f32
    %314 = vector.broadcast %cst_97 : f32 to vector<8x128xf32>
    %315 = arith.addf %314, %313 : vector<8x128xf32>
    %316 = arith.divf %314, %315 : vector<8x128xf32>
    %317 = vector.extract_strided_slice %304 {offsets = [0, 256], sizes = [8, 128], strides = [1, 1]} : vector<8x512xf32> to vector<8x128xf32>
    %318 = math.tanh %317 : vector<8x128xf32>
    %319 = vector.extract_strided_slice %304 {offsets = [0, 384], sizes = [8, 128], strides = [1, 1]} : vector<8x512xf32> to vector<8x128xf32>
    %320 = arith.negf %319 : vector<8x128xf32>
    %321 = math.exp %320 : vector<8x128xf32>
    %cst_98 = arith.constant 1.000000e+00 : f32
    %322 = vector.broadcast %cst_98 : f32 to vector<8x128xf32>
    %323 = arith.addf %322, %321 : vector<8x128xf32>
    %324 = arith.divf %322, %323 : vector<8x128xf32>
    %325 = arith.mulf %316, %296 : vector<8x128xf32>
    %326 = arith.mulf %310, %318 : vector<8x128xf32>
    %327 = arith.addf %325, %326 : vector<8x128xf32>
    %328 = math.tanh %327 : vector<8x128xf32>
    %329 = arith.mulf %324, %328 : vector<8x128xf32>
    %c1_i32_99 = arith.constant 1 : i32
    %c8_i32_100 = arith.constant 8 : i32
    %330 = arith.muli %c1_i32_99, %c8_i32_100 : i32
    %331 = tpu.assume_multiple %330, 8 : i32
    %332 = arith.index_cast %331 : i32 to index
    %c0_101 = arith.constant 0 : index
    %333 = vector.load %arg11[%332, %c0_101] : memref<64x512xf32, #tpu.memory_space<vmem>>, vector<8x512xf32>
    %334 = arith.truncf %329 : vector<8x128xf32> to vector<8x128xbf16>
    %c0_102 = arith.constant 0 : index
    %c0_103 = arith.constant 0 : index
    %335 = vector.load %arg5[%c0_102, %c0_103] : memref<128x512xbf16, #tpu.memory_space<vmem>>, vector<128x512xbf16>
    %cst_104 = arith.constant dense<0.000000e+00> : vector<8x512xf32>
    %336 = tpu.matmul %334, %335, %cst_104 {dimension_numbers = #tpu.dot_dimension_numbers<[1], [0], [0], [1], [0, 0, 1, 1], [], []>} : vector<8x128xbf16>, vector<128x512xbf16>, vector<8x512xf32> -> vector<8x512xf32>
    %337 = arith.addf %333, %336 : vector<8x512xf32>
    %338 = vector.extract_strided_slice %337 {offsets = [0, 0], sizes = [8, 128], strides = [1, 1]} : vector<8x512xf32> to vector<8x128xf32>
    %339 = arith.negf %338 : vector<8x128xf32>
    %340 = math.exp %339 : vector<8x128xf32>
    %cst_105 = arith.constant 1.000000e+00 : f32
    %341 = vector.broadcast %cst_105 : f32 to vector<8x128xf32>
    %342 = arith.addf %341, %340 : vector<8x128xf32>
    %343 = arith.divf %341, %342 : vector<8x128xf32>
    %344 = vector.extract_strided_slice %337 {offsets = [0, 128], sizes = [8, 128], strides = [1, 1]} : vector<8x512xf32> to vector<8x128xf32>
    %345 = arith.negf %344 : vector<8x128xf32>
    %346 = math.exp %345 : vector<8x128xf32>
    %cst_106 = arith.constant 1.000000e+00 : f32
    %347 = vector.broadcast %cst_106 : f32 to vector<8x128xf32>
    %348 = arith.addf %347, %346 : vector<8x128xf32>
    %349 = arith.divf %347, %348 : vector<8x128xf32>
    %350 = vector.extract_strided_slice %337 {offsets = [0, 256], sizes = [8, 128], strides = [1, 1]} : vector<8x512xf32> to vector<8x128xf32>
    %351 = math.tanh %350 : vector<8x128xf32>
    %352 = vector.extract_strided_slice %337 {offsets = [0, 384], sizes = [8, 128], strides = [1, 1]} : vector<8x512xf32> to vector<8x128xf32>
    %353 = arith.negf %352 : vector<8x128xf32>
    %354 = math.exp %353 : vector<8x128xf32>
    %cst_107 = arith.constant 1.000000e+00 : f32
    %355 = vector.broadcast %cst_107 : f32 to vector<8x128xf32>
    %356 = arith.addf %355, %354 : vector<8x128xf32>
    %357 = arith.divf %355, %356 : vector<8x128xf32>
    %358 = arith.mulf %349, %327 : vector<8x128xf32>
    %359 = arith.mulf %343, %351 : vector<8x128xf32>
    %360 = arith.addf %358, %359 : vector<8x128xf32>
    %361 = math.tanh %360 : vector<8x128xf32>
    %362 = arith.mulf %357, %361 : vector<8x128xf32>
    %c2_i32_108 = arith.constant 2 : i32
    %c8_i32_109 = arith.constant 8 : i32
    %363 = arith.muli %c2_i32_108, %c8_i32_109 : i32
    %364 = tpu.assume_multiple %363, 8 : i32
    %365 = arith.index_cast %364 : i32 to index
    %c0_110 = arith.constant 0 : index
    %366 = vector.load %arg11[%365, %c0_110] : memref<64x512xf32, #tpu.memory_space<vmem>>, vector<8x512xf32>
    %367 = arith.truncf %362 : vector<8x128xf32> to vector<8x128xbf16>
    %c0_111 = arith.constant 0 : index
    %c0_112 = arith.constant 0 : index
    %368 = vector.load %arg5[%c0_111, %c0_112] : memref<128x512xbf16, #tpu.memory_space<vmem>>, vector<128x512xbf16>
    %cst_113 = arith.constant dense<0.000000e+00> : vector<8x512xf32>
    %369 = tpu.matmul %367, %368, %cst_113 {dimension_numbers = #tpu.dot_dimension_numbers<[1], [0], [0], [1], [0, 0, 1, 1], [], []>} : vector<8x128xbf16>, vector<128x512xbf16>, vector<8x512xf32> -> vector<8x512xf32>
    %370 = arith.addf %366, %369 : vector<8x512xf32>
    %371 = vector.extract_strided_slice %370 {offsets = [0, 0], sizes = [8, 128], strides = [1, 1]} : vector<8x512xf32> to vector<8x128xf32>
    %372 = arith.negf %371 : vector<8x128xf32>
    %373 = math.exp %372 : vector<8x128xf32>
    %cst_114 = arith.constant 1.000000e+00 : f32
    %374 = vector.broadcast %cst_114 : f32 to vector<8x128xf32>
    %375 = arith.addf %374, %373 : vector<8x128xf32>
    %376 = arith.divf %374, %375 : vector<8x128xf32>
    %377 = vector.extract_strided_slice %370 {offsets = [0, 128], sizes = [8, 128], strides = [1, 1]} : vector<8x512xf32> to vector<8x128xf32>
    %378 = arith.negf %377 : vector<8x128xf32>
    %379 = math.exp %378 : vector<8x128xf32>
    %cst_115 = arith.constant 1.000000e+00 : f32
    %380 = vector.broadcast %cst_115 : f32 to vector<8x128xf32>
    %381 = arith.addf %380, %379 : vector<8x128xf32>
    %382 = arith.divf %380, %381 : vector<8x128xf32>
    %383 = vector.extract_strided_slice %370 {offsets = [0, 256], sizes = [8, 128], strides = [1, 1]} : vector<8x512xf32> to vector<8x128xf32>
    %384 = math.tanh %383 : vector<8x128xf32>
    %385 = vector.extract_strided_slice %370 {offsets = [0, 384], sizes = [8, 128], strides = [1, 1]} : vector<8x512xf32> to vector<8x128xf32>
    %386 = arith.negf %385 : vector<8x128xf32>
    %387 = math.exp %386 : vector<8x128xf32>
    %cst_116 = arith.constant 1.000000e+00 : f32
    %388 = vector.broadcast %cst_116 : f32 to vector<8x128xf32>
    %389 = arith.addf %388, %387 : vector<8x128xf32>
    %390 = arith.divf %388, %389 : vector<8x128xf32>
    %391 = arith.mulf %382, %360 : vector<8x128xf32>
    %392 = arith.mulf %376, %384 : vector<8x128xf32>
    %393 = arith.addf %391, %392 : vector<8x128xf32>
    %394 = math.tanh %393 : vector<8x128xf32>
    %395 = arith.mulf %390, %394 : vector<8x128xf32>
    %c3_i32_117 = arith.constant 3 : i32
    %c8_i32_118 = arith.constant 8 : i32
    %396 = arith.muli %c3_i32_117, %c8_i32_118 : i32
    %397 = tpu.assume_multiple %396, 8 : i32
    %398 = arith.index_cast %397 : i32 to index
    %c0_119 = arith.constant 0 : index
    %399 = vector.load %arg11[%398, %c0_119] : memref<64x512xf32, #tpu.memory_space<vmem>>, vector<8x512xf32>
    %400 = arith.truncf %395 : vector<8x128xf32> to vector<8x128xbf16>
    %c0_120 = arith.constant 0 : index
    %c0_121 = arith.constant 0 : index
    %401 = vector.load %arg5[%c0_120, %c0_121] : memref<128x512xbf16, #tpu.memory_space<vmem>>, vector<128x512xbf16>
    %cst_122 = arith.constant dense<0.000000e+00> : vector<8x512xf32>
    %402 = tpu.matmul %400, %401, %cst_122 {dimension_numbers = #tpu.dot_dimension_numbers<[1], [0], [0], [1], [0, 0, 1, 1], [], []>} : vector<8x128xbf16>, vector<128x512xbf16>, vector<8x512xf32> -> vector<8x512xf32>
    %403 = arith.addf %399, %402 : vector<8x512xf32>
    %404 = vector.extract_strided_slice %403 {offsets = [0, 0], sizes = [8, 128], strides = [1, 1]} : vector<8x512xf32> to vector<8x128xf32>
    %405 = arith.negf %404 : vector<8x128xf32>
    %406 = math.exp %405 : vector<8x128xf32>
    %cst_123 = arith.constant 1.000000e+00 : f32
    %407 = vector.broadcast %cst_123 : f32 to vector<8x128xf32>
    %408 = arith.addf %407, %406 : vector<8x128xf32>
    %409 = arith.divf %407, %408 : vector<8x128xf32>
    %410 = vector.extract_strided_slice %403 {offsets = [0, 128], sizes = [8, 128], strides = [1, 1]} : vector<8x512xf32> to vector<8x128xf32>
    %411 = arith.negf %410 : vector<8x128xf32>
    %412 = math.exp %411 : vector<8x128xf32>
    %cst_124 = arith.constant 1.000000e+00 : f32
    %413 = vector.broadcast %cst_124 : f32 to vector<8x128xf32>
    %414 = arith.addf %413, %412 : vector<8x128xf32>
    %415 = arith.divf %413, %414 : vector<8x128xf32>
    %416 = vector.extract_strided_slice %403 {offsets = [0, 256], sizes = [8, 128], strides = [1, 1]} : vector<8x512xf32> to vector<8x128xf32>
    %417 = math.tanh %416 : vector<8x128xf32>
    %418 = vector.extract_strided_slice %403 {offsets = [0, 384], sizes = [8, 128], strides = [1, 1]} : vector<8x512xf32> to vector<8x128xf32>
    %419 = arith.negf %418 : vector<8x128xf32>
    %420 = math.exp %419 : vector<8x128xf32>
    %cst_125 = arith.constant 1.000000e+00 : f32
    %421 = vector.broadcast %cst_125 : f32 to vector<8x128xf32>
    %422 = arith.addf %421, %420 : vector<8x128xf32>
    %423 = arith.divf %421, %422 : vector<8x128xf32>
    %424 = arith.mulf %415, %393 : vector<8x128xf32>
    %425 = arith.mulf %409, %417 : vector<8x128xf32>
    %426 = arith.addf %424, %425 : vector<8x128xf32>
    %427 = math.tanh %426 : vector<8x128xf32>
    %428 = arith.mulf %423, %427 : vector<8x128xf32>
    %c4_i32_126 = arith.constant 4 : i32
    %c8_i32_127 = arith.constant 8 : i32
    %429 = arith.muli %c4_i32_126, %c8_i32_127 : i32
    %430 = tpu.assume_multiple %429, 8 : i32
    %431 = arith.index_cast %430 : i32 to index
    %c0_128 = arith.constant 0 : index
    %432 = vector.load %arg11[%431, %c0_128] : memref<64x512xf32, #tpu.memory_space<vmem>>, vector<8x512xf32>
    %433 = arith.truncf %428 : vector<8x128xf32> to vector<8x128xbf16>
    %c0_129 = arith.constant 0 : index
    %c0_130 = arith.constant 0 : index
    %434 = vector.load %arg5[%c0_129, %c0_130] : memref<128x512xbf16, #tpu.memory_space<vmem>>, vector<128x512xbf16>
    %cst_131 = arith.constant dense<0.000000e+00> : vector<8x512xf32>
    %435 = tpu.matmul %433, %434, %cst_131 {dimension_numbers = #tpu.dot_dimension_numbers<[1], [0], [0], [1], [0, 0, 1, 1], [], []>} : vector<8x128xbf16>, vector<128x512xbf16>, vector<8x512xf32> -> vector<8x512xf32>
    %436 = arith.addf %432, %435 : vector<8x512xf32>
    %437 = vector.extract_strided_slice %436 {offsets = [0, 0], sizes = [8, 128], strides = [1, 1]} : vector<8x512xf32> to vector<8x128xf32>
    %438 = arith.negf %437 : vector<8x128xf32>
    %439 = math.exp %438 : vector<8x128xf32>
    %cst_132 = arith.constant 1.000000e+00 : f32
    %440 = vector.broadcast %cst_132 : f32 to vector<8x128xf32>
    %441 = arith.addf %440, %439 : vector<8x128xf32>
    %442 = arith.divf %440, %441 : vector<8x128xf32>
    %443 = vector.extract_strided_slice %436 {offsets = [0, 128], sizes = [8, 128], strides = [1, 1]} : vector<8x512xf32> to vector<8x128xf32>
    %444 = arith.negf %443 : vector<8x128xf32>
    %445 = math.exp %444 : vector<8x128xf32>
    %cst_133 = arith.constant 1.000000e+00 : f32
    %446 = vector.broadcast %cst_133 : f32 to vector<8x128xf32>
    %447 = arith.addf %446, %445 : vector<8x128xf32>
    %448 = arith.divf %446, %447 : vector<8x128xf32>
    %449 = vector.extract_strided_slice %436 {offsets = [0, 256], sizes = [8, 128], strides = [1, 1]} : vector<8x512xf32> to vector<8x128xf32>
    %450 = math.tanh %449 : vector<8x128xf32>
    %451 = vector.extract_strided_slice %436 {offsets = [0, 384], sizes = [8, 128], strides = [1, 1]} : vector<8x512xf32> to vector<8x128xf32>
    %452 = arith.negf %451 : vector<8x128xf32>
    %453 = math.exp %452 : vector<8x128xf32>
    %cst_134 = arith.constant 1.000000e+00 : f32
    %454 = vector.broadcast %cst_134 : f32 to vector<8x128xf32>
    %455 = arith.addf %454, %453 : vector<8x128xf32>
    %456 = arith.divf %454, %455 : vector<8x128xf32>
    %457 = arith.mulf %448, %426 : vector<8x128xf32>
    %458 = arith.mulf %442, %450 : vector<8x128xf32>
    %459 = arith.addf %457, %458 : vector<8x128xf32>
    %460 = math.tanh %459 : vector<8x128xf32>
    %461 = arith.mulf %456, %460 : vector<8x128xf32>
    %c5_i32_135 = arith.constant 5 : i32
    %c8_i32_136 = arith.constant 8 : i32
    %462 = arith.muli %c5_i32_135, %c8_i32_136 : i32
    %463 = tpu.assume_multiple %462, 8 : i32
    %464 = arith.index_cast %463 : i32 to index
    %c0_137 = arith.constant 0 : index
    %465 = vector.load %arg11[%464, %c0_137] : memref<64x512xf32, #tpu.memory_space<vmem>>, vector<8x512xf32>
    %466 = arith.truncf %461 : vector<8x128xf32> to vector<8x128xbf16>
    %c0_138 = arith.constant 0 : index
    %c0_139 = arith.constant 0 : index
    %467 = vector.load %arg5[%c0_138, %c0_139] : memref<128x512xbf16, #tpu.memory_space<vmem>>, vector<128x512xbf16>
    %cst_140 = arith.constant dense<0.000000e+00> : vector<8x512xf32>
    %468 = tpu.matmul %466, %467, %cst_140 {dimension_numbers = #tpu.dot_dimension_numbers<[1], [0], [0], [1], [0, 0, 1, 1], [], []>} : vector<8x128xbf16>, vector<128x512xbf16>, vector<8x512xf32> -> vector<8x512xf32>
    %469 = arith.addf %465, %468 : vector<8x512xf32>
    %470 = vector.extract_strided_slice %469 {offsets = [0, 0], sizes = [8, 128], strides = [1, 1]} : vector<8x512xf32> to vector<8x128xf32>
    %471 = arith.negf %470 : vector<8x128xf32>
    %472 = math.exp %471 : vector<8x128xf32>
    %cst_141 = arith.constant 1.000000e+00 : f32
    %473 = vector.broadcast %cst_141 : f32 to vector<8x128xf32>
    %474 = arith.addf %473, %472 : vector<8x128xf32>
    %475 = arith.divf %473, %474 : vector<8x128xf32>
    %476 = vector.extract_strided_slice %469 {offsets = [0, 128], sizes = [8, 128], strides = [1, 1]} : vector<8x512xf32> to vector<8x128xf32>
    %477 = arith.negf %476 : vector<8x128xf32>
    %478 = math.exp %477 : vector<8x128xf32>
    %cst_142 = arith.constant 1.000000e+00 : f32
    %479 = vector.broadcast %cst_142 : f32 to vector<8x128xf32>
    %480 = arith.addf %479, %478 : vector<8x128xf32>
    %481 = arith.divf %479, %480 : vector<8x128xf32>
    %482 = vector.extract_strided_slice %469 {offsets = [0, 256], sizes = [8, 128], strides = [1, 1]} : vector<8x512xf32> to vector<8x128xf32>
    %483 = math.tanh %482 : vector<8x128xf32>
    %484 = vector.extract_strided_slice %469 {offsets = [0, 384], sizes = [8, 128], strides = [1, 1]} : vector<8x512xf32> to vector<8x128xf32>
    %485 = arith.negf %484 : vector<8x128xf32>
    %486 = math.exp %485 : vector<8x128xf32>
    %cst_143 = arith.constant 1.000000e+00 : f32
    %487 = vector.broadcast %cst_143 : f32 to vector<8x128xf32>
    %488 = arith.addf %487, %486 : vector<8x128xf32>
    %489 = arith.divf %487, %488 : vector<8x128xf32>
    %490 = arith.mulf %481, %459 : vector<8x128xf32>
    %491 = arith.mulf %475, %483 : vector<8x128xf32>
    %492 = arith.addf %490, %491 : vector<8x128xf32>
    %493 = math.tanh %492 : vector<8x128xf32>
    %494 = arith.mulf %489, %493 : vector<8x128xf32>
    %c6_i32_144 = arith.constant 6 : i32
    %c8_i32_145 = arith.constant 8 : i32
    %495 = arith.muli %c6_i32_144, %c8_i32_145 : i32
    %496 = tpu.assume_multiple %495, 8 : i32
    %497 = arith.index_cast %496 : i32 to index
    %c0_146 = arith.constant 0 : index
    %498 = vector.load %arg11[%497, %c0_146] : memref<64x512xf32, #tpu.memory_space<vmem>>, vector<8x512xf32>
    %499 = arith.truncf %494 : vector<8x128xf32> to vector<8x128xbf16>
    %c0_147 = arith.constant 0 : index
    %c0_148 = arith.constant 0 : index
    %500 = vector.load %arg5[%c0_147, %c0_148] : memref<128x512xbf16, #tpu.memory_space<vmem>>, vector<128x512xbf16>
    %cst_149 = arith.constant dense<0.000000e+00> : vector<8x512xf32>
    %501 = tpu.matmul %499, %500, %cst_149 {dimension_numbers = #tpu.dot_dimension_numbers<[1], [0], [0], [1], [0, 0, 1, 1], [], []>} : vector<8x128xbf16>, vector<128x512xbf16>, vector<8x512xf32> -> vector<8x512xf32>
    %502 = arith.addf %498, %501 : vector<8x512xf32>
    %503 = vector.extract_strided_slice %502 {offsets = [0, 0], sizes = [8, 128], strides = [1, 1]} : vector<8x512xf32> to vector<8x128xf32>
    %504 = arith.negf %503 : vector<8x128xf32>
    %505 = math.exp %504 : vector<8x128xf32>
    %cst_150 = arith.constant 1.000000e+00 : f32
    %506 = vector.broadcast %cst_150 : f32 to vector<8x128xf32>
    %507 = arith.addf %506, %505 : vector<8x128xf32>
    %508 = arith.divf %506, %507 : vector<8x128xf32>
    %509 = vector.extract_strided_slice %502 {offsets = [0, 128], sizes = [8, 128], strides = [1, 1]} : vector<8x512xf32> to vector<8x128xf32>
    %510 = arith.negf %509 : vector<8x128xf32>
    %511 = math.exp %510 : vector<8x128xf32>
    %cst_151 = arith.constant 1.000000e+00 : f32
    %512 = vector.broadcast %cst_151 : f32 to vector<8x128xf32>
    %513 = arith.addf %512, %511 : vector<8x128xf32>
    %514 = arith.divf %512, %513 : vector<8x128xf32>
    %515 = vector.extract_strided_slice %502 {offsets = [0, 256], sizes = [8, 128], strides = [1, 1]} : vector<8x512xf32> to vector<8x128xf32>
    %516 = math.tanh %515 : vector<8x128xf32>
    %517 = vector.extract_strided_slice %502 {offsets = [0, 384], sizes = [8, 128], strides = [1, 1]} : vector<8x512xf32> to vector<8x128xf32>
    %518 = arith.negf %517 : vector<8x128xf32>
    %519 = math.exp %518 : vector<8x128xf32>
    %cst_152 = arith.constant 1.000000e+00 : f32
    %520 = vector.broadcast %cst_152 : f32 to vector<8x128xf32>
    %521 = arith.addf %520, %519 : vector<8x128xf32>
    %522 = arith.divf %520, %521 : vector<8x128xf32>
    %523 = arith.mulf %514, %492 : vector<8x128xf32>
    %524 = arith.mulf %508, %516 : vector<8x128xf32>
    %525 = arith.addf %523, %524 : vector<8x128xf32>
    %526 = math.tanh %525 : vector<8x128xf32>
    %527 = arith.mulf %522, %526 : vector<8x128xf32>
    %c7_i32_153 = arith.constant 7 : i32
    %c8_i32_154 = arith.constant 8 : i32
    %528 = arith.muli %c7_i32_153, %c8_i32_154 : i32
    %529 = tpu.assume_multiple %528, 8 : i32
    %530 = arith.index_cast %529 : i32 to index
    %c0_155 = arith.constant 0 : index
    %531 = vector.load %arg11[%530, %c0_155] : memref<64x512xf32, #tpu.memory_space<vmem>>, vector<8x512xf32>
    %532 = arith.truncf %527 : vector<8x128xf32> to vector<8x128xbf16>
    %c0_156 = arith.constant 0 : index
    %c0_157 = arith.constant 0 : index
    %533 = vector.load %arg5[%c0_156, %c0_157] : memref<128x512xbf16, #tpu.memory_space<vmem>>, vector<128x512xbf16>
    %cst_158 = arith.constant dense<0.000000e+00> : vector<8x512xf32>
    %534 = tpu.matmul %532, %533, %cst_158 {dimension_numbers = #tpu.dot_dimension_numbers<[1], [0], [0], [1], [0, 0, 1, 1], [], []>} : vector<8x128xbf16>, vector<128x512xbf16>, vector<8x512xf32> -> vector<8x512xf32>
    %535 = arith.addf %531, %534 : vector<8x512xf32>
    %536 = vector.extract_strided_slice %535 {offsets = [0, 0], sizes = [8, 128], strides = [1, 1]} : vector<8x512xf32> to vector<8x128xf32>
    %537 = arith.negf %536 : vector<8x128xf32>
    %538 = math.exp %537 : vector<8x128xf32>
    %cst_159 = arith.constant 1.000000e+00 : f32
    %539 = vector.broadcast %cst_159 : f32 to vector<8x128xf32>
    %540 = arith.addf %539, %538 : vector<8x128xf32>
    %541 = arith.divf %539, %540 : vector<8x128xf32>
    %542 = vector.extract_strided_slice %535 {offsets = [0, 128], sizes = [8, 128], strides = [1, 1]} : vector<8x512xf32> to vector<8x128xf32>
    %543 = arith.negf %542 : vector<8x128xf32>
    %544 = math.exp %543 : vector<8x128xf32>
    %cst_160 = arith.constant 1.000000e+00 : f32
    %545 = vector.broadcast %cst_160 : f32 to vector<8x128xf32>
    %546 = arith.addf %545, %544 : vector<8x128xf32>
    %547 = arith.divf %545, %546 : vector<8x128xf32>
    %548 = vector.extract_strided_slice %535 {offsets = [0, 256], sizes = [8, 128], strides = [1, 1]} : vector<8x512xf32> to vector<8x128xf32>
    %549 = math.tanh %548 : vector<8x128xf32>
    %550 = vector.extract_strided_slice %535 {offsets = [0, 384], sizes = [8, 128], strides = [1, 1]} : vector<8x512xf32> to vector<8x128xf32>
    %551 = arith.negf %550 : vector<8x128xf32>
    %552 = math.exp %551 : vector<8x128xf32>
    %cst_161 = arith.constant 1.000000e+00 : f32
    %553 = vector.broadcast %cst_161 : f32 to vector<8x128xf32>
    %554 = arith.addf %553, %552 : vector<8x128xf32>
    %555 = arith.divf %553, %554 : vector<8x128xf32>
    %556 = arith.mulf %547, %525 : vector<8x128xf32>
    %557 = arith.mulf %541, %549 : vector<8x128xf32>
    %558 = arith.addf %556, %557 : vector<8x128xf32>
    %559 = math.tanh %558 : vector<8x128xf32>
    %560 = arith.mulf %555, %559 : vector<8x128xf32>
    %c8_i32_162 = arith.constant 8 : i32
    %561 = arith.truncf %560 : vector<8x128xf32> to vector<8x128xbf16>
    %c0_163 = arith.constant 0 : index
    %c0_164 = arith.constant 0 : index
    %562 = vector.load %arg8[%c0_163, %c0_164] : memref<128x128xbf16, #tpu.memory_space<vmem>>, vector<128x128xbf16>
    %cst_165 = arith.constant dense<0.000000e+00> : vector<8x128xf32>
    %563 = tpu.matmul %561, %562, %cst_165 {dimension_numbers = #tpu.dot_dimension_numbers<[1], [0], [0], [1], [0, 0, 1, 1], [], []>} : vector<8x128xbf16>, vector<128x128xbf16>, vector<8x128xf32> -> vector<8x128xf32>
    %c0_166 = arith.constant 0 : index
    %c0_167 = arith.constant 0 : index
    %564 = vector.load %arg9[%c0_166, %c0_167] : memref<1x128xf32, #tpu.memory_space<vmem>>, vector<1x128xf32>
    %565 = vector.broadcast %564 : vector<1x128xf32> to vector<8x128xf32>
    %566 = arith.addf %563, %565 : vector<8x128xf32>
    %c0_168 = arith.constant 0 : index
    %c0_169 = arith.constant 0 : index
    %567 = vector.load %arg10[%c0_168, %c0_169] : memref<8x128xf32, #tpu.memory_space<vmem>>, vector<8x128xf32>
    tpu.vector_store %arg10[%c0_168, %c0_169], %566 {strides = array<i32>} : memref<8x128xf32, #tpu.memory_space<vmem>>, vector<8x128xf32>,
    return
  }
  func.func @transform_0(%arg0: i32) -> (i32, i32) {
    %c0_i32 = arith.constant 0 : i32
    %c0_i32_0 = arith.constant 0 : i32
    return %arg0, %c0_i32 : i32, i32
  }
  func.func @transform_1(%arg0: i32) -> (i32, i32) {
    %c0_i32 = arith.constant 0 : i32
    %c0_i32_0 = arith.constant 0 : i32
    %c0_i32_1 = arith.constant 0 : i32
    return %c0_i32, %c0_i32_0 : i32, i32
  }
  func.func @transform_2(%arg0: i32) -> (i32, i32) {
    %c0_i32 = arith.constant 0 : i32
    %c0_i32_0 = arith.constant 0 : i32
    %c0_i32_1 = arith.constant 0 : i32
    return %c0_i32, %c0_i32_0 : i32, i32
  }
  func.func @transform_3(%arg0: i32) -> (i32, i32) {
    %c0_i32 = arith.constant 0 : i32
    %c0_i32_0 = arith.constant 0 : i32
    %c0_i32_1 = arith.constant 0 : i32
    return %c0_i32, %c0_i32_0 : i32, i32
  }
  func.func @transform_4(%arg0: i32) -> (i32, i32) {
    %c0_i32 = arith.constant 0 : i32
    %c0_i32_0 = arith.constant 0 : i32
    %c0_i32_1 = arith.constant 0 : i32
    return %c0_i32, %c0_i32_0 : i32, i32
  }
  func.func @transform_5(%arg0: i32) -> (i32, i32) {
    %c0_i32 = arith.constant 0 : i32
    %c0_i32_0 = arith.constant 0 : i32
    %c0_i32_1 = arith.constant 0 : i32
    return %c0_i32, %c0_i32_0 : i32, i32
  }
  func.func @transform_6(%arg0: i32) -> (i32, i32) {
    %c0_i32 = arith.constant 0 : i32
    %c0_i32_0 = arith.constant 0 : i32
    %c0_i32_1 = arith.constant 0 : i32
    return %c0_i32, %c0_i32_0 : i32, i32
  }
  func.func @transform_7(%arg0: i32) -> (i32, i32) {
    %c0_i32 = arith.constant 0 : i32
    %c0_i32_0 = arith.constant 0 : i32
    %c0_i32_1 = arith.constant 0 : i32
    return %c0_i32, %c0_i32_0 : i32, i32
  }
  func.func @transform_8(%arg0: i32) -> (i32, i32) {
    %c0_i32 = arith.constant 0 : i32
    %c0_i32_0 = arith.constant 0 : i32
    %c0_i32_1 = arith.constant 0 : i32
    return %c0_i32, %c0_i32_0 : i32, i32
  }
  func.func @transform_9(%arg0: i32) -> (i32, i32) {
    %c0_i32 = arith.constant 0 : i32
    %c0_i32_0 = arith.constant 0 : i32
    return %arg0, %c0_i32 : i32, i32
  }
}

</mosaic_0001>

<bundles_post_ra>
// kernel: lstm_model_forward.1
= control target key start
LH: loop header
LB: loop body
LE: loop exit
PB: predicated region body
PF: predicated region fallthrough
CT: control target
= control target key end

     0   :  { %v7445_v1 = vmov 0   ;;  %vm5577_vm0 = vmmov 0   ;;  %s7431_s1 = inlined_call_operand.vmem [shape: bf16[128,512], index: 1, kind: input, shape index: {}]   ;;  %s7432_s0 = inlined_call_operand.vmem [shape: bf16[64,128], index: 0, kind: input, shape index: {}]   ;;  %s7433_s3 = inlined_call_operand.vmem [shape: bf16[128,512], index: 3, kind: input, shape index: {}]   ;;  %s7434_s5 = inlined_call_operand.vmem [shape: f32[1,512], index: 5, kind: input, shape index: {}]   ;;  %s7435_s2 = inlined_call_operand.vmem [shape: bf16[128,512], index: 2, kind: input, shape index: {}]   ;;  %s7436_s4 = inlined_call_operand.vmem [shape: bf16[128,512], index: 4, kind: input, shape index: {}]   ;;  %s7437_s6 = inlined_call_operand.vmem [shape: f32[1,512], index: 6, kind: input, shape index: {}]   ;;  %s7438_s7 = inlined_call_operand.vmem [shape: bf16[128,128], index: 7, kind: input, shape index: {}]   ;;  %s7439_s8 = inlined_call_operand.vmem [shape: f32[1,128], index: 8, kind: input, shape index: {}]   ;;  %s7440_s9 = inlined_call_operand.vmem [shape: f32[8,128], index: 9, kind: output, shape index: {}]  }
   0x1   :  { %v5035_v0 = vld [vmem:[%s7431_s1 + $0x4] ss:$16 sps:$4 sm:$0xff]   ;;  %311 = vmatprep.mubr.bf16.mxu0 %v7445_v1  ;;  %384 = vmatprep.mubr.bf16.mxu1 %v7445_v1  ;;  %v5037_v2 = vld [vmem:[%s7431_s1 + $0xc] ss:$16 sps:$4 sm:$0xff]   ;;  %v5039_v3 = vld [vmem:[%s7431_s1] ss:$16 sps:$4 sm:$0xff]  }
   0x2   :  { %279 = vmatprep.subr.bf16.mxu0 %v5035_v0  ;;  %v5040_v4 = vld [vmem:[%s7431_s1 + $0x8] ss:$16 sps:$4 sm:$0xff]   ;;  %352 = vmatprep.subr.bf16.mxu1 %v5037_v2  ;;  %v5041_v5 = vld [vmem:[%s7431_s1 + $0x24] ss:$16 sps:$4 sm:$0xff]   ;;  %v5043_v6 = vld [vmem:[%s7431_s1 + $0x2c] ss:$16 sps:$4 sm:$0xff]  }
   0x3   :  { %280 = vmatpush1.bf16.msra.mxu0 %v5039_v3  ;;  %353 = vmatpush1.bf16.msra.mxu1 %v5040_v4  ;;  %v5045_v7 = vld [vmem:[%s7431_s1 + $0x20] ss:$16 sps:$4 sm:$0xff]   ;;  %v5046_v8 = vld [vmem:[%s7431_s1 + $0x28] ss:$16 sps:$4 sm:$0xff]   ;;  %v5047_v9 = vld [vmem:[%s7431_s1 + $0x44] ss:$16 sps:$4 sm:$0xff]  }
   0x4   :  { %281 = vmatprep.subr.bf16.mxu0 %v5041_v5  ;;  %354 = vmatprep.subr.bf16.mxu1 %v5043_v6  ;;  %v5049_v10 = vld [vmem:[%s7431_s1 + $0x4c] ss:$16 sps:$4 sm:$0xff]   ;;  %v5051_v11 = vld [vmem:[%s7431_s1 + $0x40] ss:$16 sps:$4 sm:$0xff]   ;;  %v5052_v12 = vld [vmem:[%s7431_s1 + $0x48] ss:$16 sps:$4 sm:$0xff]   ;;  %v75_v6 = vlaneseq }
   0x5   :  { %v5053_v13 = vld [vmem:[%s7431_s1 + $0x64] ss:$16 sps:$4 sm:$0xff]   ;;  %v5055_v14 = vld [vmem:[%s7431_s1 + $0x6c] ss:$16 sps:$4 sm:$0xff]   ;;  %v5057_v15 = vld [vmem:[%s7431_s1 + $0x60] ss:$16 sps:$4 sm:$0xff]  }
   0x6   :  { %v5058_v16 = vld [vmem:[%s7431_s1 + $0x68] ss:$16 sps:$4 sm:$0xff]   ;;  %v5059_v17 = vld [vmem:[%s7431_s1 + $0x84] ss:$16 sps:$4 sm:$0xff]   ;;  %v5061_v18 = vld [vmem:[%s7431_s1 + $0x8c] ss:$16 sps:$4 sm:$0xff]  }
   0x7   :  { %282 = vmatpush1.bf16.msra.mxu0 %v5045_v7  ;;  %355 = vmatpush1.bf16.msra.mxu1 %v5046_v8  ;;  %v5063_v19 = vld [vmem:[%s7431_s1 + $0x80] ss:$16 sps:$4 sm:$0xff]   ;;  %v5064_v20 = vld [vmem:[%s7431_s1 + $0x88] ss:$16 sps:$4 sm:$0xff]   ;;  %v5065_v21 = vld [vmem:[%s7431_s1 + $0xa4] ss:$16 sps:$4 sm:$0xff]  }
   0x8   :  { %283 = vmatprep.subr.bf16.mxu0 %v5047_v9  ;;  %356 = vmatprep.subr.bf16.mxu1 %v5049_v10  ;;  %v5067_v22 = vld [vmem:[%s7431_s1 + $0xac] ss:$16 sps:$4 sm:$0xff]   ;;  %v5069_v23 = vld [vmem:[%s7431_s1 + $0xa0] ss:$16 sps:$4 sm:$0xff]   ;;  %v5070_v24 = vld [vmem:[%s7431_s1 + $0xa8] ss:$16 sps:$4 sm:$0xff]  }
   0x9   :  { %v5071_v25 = vld [vmem:[%s7431_s1 + $0xc4] ss:$16 sps:$4 sm:$0xff]   ;;  %v5073_v26 = vld [vmem:[%s7431_s1 + $0xcc] ss:$16 sps:$4 sm:$0xff]   ;;  %v5075_v27 = vld [vmem:[%s7431_s1 + $0xc0] ss:$16 sps:$4 sm:$0xff]  }
   0xa   :  { %v5076_v28 = vld [vmem:[%s7431_s1 + $0xc8] ss:$16 sps:$4 sm:$0xff]   ;;  %v5077_v29 = vld [vmem:[%s7431_s1 + $0xe4] ss:$16 sps:$4 sm:$0xff]   ;;  %v5079_v30 = vld [vmem:[%s7431_s1 + $0xec] ss:$16 sps:$4 sm:$0xff]  }
   0xb   :  { %284 = vmatpush1.bf16.msra.mxu0 %v5051_v11  ;;  %357 = vmatpush1.bf16.msra.mxu1 %v5052_v12  ;;  %v5081_v31 = vld [vmem:[%s7431_s1 + $0xe0] ss:$16 sps:$4 sm:$0xff]   ;;  %v5082_v32 = vld [vmem:[%s7431_s1 + $0xe8] ss:$16 sps:$4 sm:$0xff]   ;;  %v5729_v33 = vld [vmem:[%s7433_s3 + $0x4] ss:$16 sps:$4 sm:$0xff]  }
   0xc   :  { %285 = vmatprep.subr.bf16.mxu0 %v5053_v13  ;;  %358 = vmatprep.subr.bf16.mxu1 %v5055_v14  ;;  %v5734_v34 = vld [vmem:[%s7433_s3 + $0xc] ss:$16 sps:$4 sm:$0xff]   ;;  %v5083_v35 = vld [vmem:[%s7432_s0] sm:$0xff]   ;;  %v5747_v37 = vld [vmem:[%s7433_s3 + $0x8] ss:$16 sps:$4 sm:$0xff]   ;;  %v5976_v7 = vshrl.u32 %v75_v6, 7 }
   0xd   :  { %v5742_v36 = vld [vmem:[%s7433_s3] ss:$16 sps:$4 sm:$0xff]   ;;  %v5754_v38 = vld [vmem:[%s7433_s3 + $0x24] ss:$16 sps:$4 sm:$0xff]   ;;  %v5759_v39 = vld [vmem:[%s7433_s3 + $0x2c] ss:$16 sps:$4 sm:$0xff]  }
   0xe   :  { %v5764_v40 = vld [vmem:[%s7433_s3 + $0x20] ss:$16 sps:$4 sm:$0xff]   ;;  %v5771_v41 = vld [vmem:[%s7433_s3 + $0x28] ss:$16 sps:$4 sm:$0xff]   ;;  %v5778_v42 = vld [vmem:[%s7433_s3 + $0x44] ss:$16 sps:$4 sm:$0xff]  }
   0xf   :  { %286 = vmatpush1.bf16.msra.mxu0 %v5057_v15  ;;  %359 = vmatpush1.bf16.msra.mxu1 %v5058_v16  ;;  %v5783_v43 = vld [vmem:[%s7433_s3 + $0x4c] ss:$16 sps:$4 sm:$0xff]   ;;  %v5793_v45 = vld [vmem:[%s7433_s3 + $0x40] ss:$16 sps:$4 sm:$0xff]   ;;  %v5798_v46 = vld [vmem:[%s7433_s3 + $0x48] ss:$16 sps:$4 sm:$0xff]  }
  0x10   :  { %287 = vmatprep.subr.bf16.mxu0 %v5059_v17  ;;  %360 = vmatprep.subr.bf16.mxu1 %v5061_v18  ;;  %v5096_v44 = vld [vmem:[%s7432_s0 + $0x8] sm:$0xff]   ;;  %v5805_v47 = vld [vmem:[%s7433_s3 + $0x64] ss:$16 sps:$4 sm:$0xff]   ;;  %v5817_v49 = vld [vmem:[%s7433_s3 + $0x60] ss:$16 sps:$4 sm:$0xff]   ;;  %7449 = vst [vmem:[#allocation4_spill] sm:$0xff] %v5976_v7 }
  0x11   :  { %v5812_v48 = vld [vmem:[%s7433_s3 + $0x6c] ss:$16 sps:$4 sm:$0xff]   ;;  %v5822_v50 = vld [vmem:[%s7433_s3 + $0x68] ss:$16 sps:$4 sm:$0xff]   ;;  %v5829_v51 = vld [vmem:[%s7433_s3 + $0x84] ss:$16 sps:$4 sm:$0xff]  }
  0x12   :  { %v5836_v52 = vld [vmem:[%s7433_s3 + $0x8c] ss:$16 sps:$4 sm:$0xff]   ;;  %v5109_v53 = vld [vmem:[%s7432_s0 + $0x10] sm:$0xff]   ;;  %v5851_v55 = vld [vmem:[%s7433_s3 + $0x88] ss:$16 sps:$4 sm:$0xff]   ;;  %v7443_v8 = vsub.s32 2, %v5976_v7 }
  0x13   :  { %288 = vmatpush1.bf16.msra.mxu0 %v5063_v19  ;;  %361 = vmatpush1.bf16.msra.mxu1 %v5064_v20  ;;  %v5846_v54 = vld [vmem:[%s7433_s3 + $0x80] ss:$16 sps:$4 sm:$0xff]   ;;  %v5856_v56 = vld [vmem:[%s7433_s3 + $0xa4] ss:$16 sps:$4 sm:$0xff]   ;;  %v5861_v57 = vld [vmem:[%s7433_s3 + $0xac] ss:$16 sps:$4 sm:$0xff]  }
  0x14   :  { %289 = vmatprep.subr.bf16.mxu0 %v5065_v21  ;;  %362 = vmatprep.subr.bf16.mxu1 %v5067_v22  ;;  %v5870_v58 = vld [vmem:[%s7433_s3 + $0xa0] ss:$16 sps:$4 sm:$0xff]   ;;  %v5875_v59 = vld [vmem:[%s7433_s3 + $0xa8] ss:$16 sps:$4 sm:$0xff]   ;;  %v5880_v60 = vld [vmem:[%s7433_s3 + $0xc4] ss:$16 sps:$4 sm:$0xff]  }
  0x15   :  { %v5885_v61 = vld [vmem:[%s7433_s3 + $0xcc] ss:$16 sps:$4 sm:$0xff]   ;;  %v5899_v63 = vld [vmem:[%s7433_s3 + $0xc0] ss:$16 sps:$4 sm:$0xff]   ;;  %v5904_v0 = vld [vmem:[%s7433_s3 + $0xc8] ss:$16 sps:$4 sm:$0xff]  }
  0x16   :  { %v5122_v62 = vld [vmem:[%s7432_s0 + $0x18] sm:$0xff]   ;;  %v5909_v2 = vld [vmem:[%s7433_s3 + $0xe4] ss:$16 sps:$4 sm:$0xff]   ;;  %v5925_v4 = vld [vmem:[%s7433_s3 + $0xe0] ss:$16 sps:$4 sm:$0xff]   ;;  %v7441_v9 = vsub.s32 3, %v5976_v7 }
  0x17   :  { %290 = vmatpush1.bf16.msra.mxu0 %v5069_v23  ;;  %363 = vmatpush1.bf16.msra.mxu1 %v5070_v24  ;;  %v5918_v3 = vld [vmem:[%s7433_s3 + $0xec] ss:$16 sps:$4 sm:$0xff]   ;;  %v5930_v5 = vld [vmem:[%s7433_s3 + $0xe8] ss:$16 sps:$4 sm:$0xff]   ;;  %v7444_v10 = vsub.s32 0, %v5976_v7  ;;  %v7442_v12 = vsub.s32 1, %v5976_v7 }
  0x18   :  { %291 = vmatprep.subr.bf16.mxu0 %v5071_v25  ;;  %364 = vmatprep.subr.bf16.mxu1 %v5073_v26  ;;  %v73_v11 = vld [vmem:[%s7434_s5] sm:$0xf] }
  0x19   :  { %v5987_v13 = vrot.slane %v73_v11, %v7443_v8  ;;  %v5995_v16 = vrot.slane %v73_v11, %v7441_v9  ;;  %v78_v17 = vrot.slane %v73_v11, %v7444_v10  ;;  %v82_v20 = vrot.slane %v73_v11, %v7442_v12 }
  0x1b   :  { %292 = vmatpush1.bf16.msra.mxu0 %v5075_v27  ;;  %365 = vmatpush1.bf16.msra.mxu1 %v5076_v28 }
  0x1c   :  { %293 = vmatprep.subr.bf16.mxu0 %v5077_v29  ;;  %366 = vmatprep.subr.bf16.mxu1 %v5079_v30 }
  0x1f   :  { %294 = vmatpush1.bf16.msra.mxu0 %v5081_v31  ;;  %367 = vmatpush1.bf16.msra.mxu1 %v5082_v32 }
  0x20   :  { %656 = vmatprep.subr.bf16.mxu0 %v5729_v33  ;;  %697 = vmatprep.subr.bf16.mxu1 %v5734_v34 }
  0x22   :  { %312 = vmatmul.mubr.bf16.vlgmr.msra.gmra.mrb[0].mxu0 %v5083_v35  ;;  %385 = vmatmul.mubr.bf16.vlgmr.msra.gmra.mrb[0].mxu1 %v5083_v35 }
  0x23   :  { %657 = vmatpush1.bf16.msra.mxu0 %v5742_v36  ;;  %698 = vmatpush1.bf16.msra.mxu1 %v5747_v37 }
  0x24   :  { %658 = vmatprep.subr.bf16.mxu0 %v5754_v38  ;;  %699 = vmatprep.subr.bf16.mxu1 %v5759_v39 }
  0x25   :  { %321 = vmatprep.mubr.bf16.mxu0 %v7445_v1  ;;  %394 = vmatprep.mubr.bf16.mxu1 %v7445_v1 }
  0x27   :  { %659 = vmatpush1.bf16.msra.mxu0 %v5764_v40  ;;  %700 = vmatpush1.bf16.msra.mxu1 %v5771_v41 }
  0x28   :  { %660 = vmatprep.subr.bf16.mxu0 %v5778_v42  ;;  %701 = vmatprep.subr.bf16.mxu1 %v5783_v43 }
  0x2a   :  { %322 = vmatmul.mubr.bf16.gmra.mrb[4].mxu0 %v5096_v44  ;;  %395 = vmatmul.mubr.bf16.gmra.mrb[4].mxu1 %v5096_v44 }
  0x2b   :  { %661 = vmatpush1.bf16.msra.mxu0 %v5793_v45  ;;  %702 = vmatpush1.bf16.msra.mxu1 %v5798_v46 }
  0x2c   :  { %662 = vmatprep.subr.bf16.mxu0 %v5805_v47  ;;  %703 = vmatprep.subr.bf16.mxu1 %v5812_v48 }
  0x2d   :  { %331 = vmatprep.mubr.bf16.mxu0 %v7445_v1  ;;  %404 = vmatprep.mubr.bf16.mxu1 %v7445_v1 }
  0x2f   :  { %663 = vmatpush1.bf16.msra.mxu0 %v5817_v49  ;;  %704 = vmatpush1.bf16.msra.mxu1 %v5822_v50 }
  0x30   :  { %664 = vmatprep.subr.bf16.mxu0 %v5829_v51  ;;  %705 = vmatprep.subr.bf16.mxu1 %v5836_v52 }
  0x32   :  { %332 = vmatmul.mubr.bf16.gmra.mrb[8].mxu0 %v5109_v53  ;;  %405 = vmatmul.mubr.bf16.gmra.mrb[8].mxu1 %v5109_v53 }
  0x33   :  { %665 = vmatpush1.bf16.msra.mxu0 %v5846_v54  ;;  %706 = vmatpush1.bf16.msra.mxu1 %v5851_v55 }
  0x34   :  { %666 = vmatprep.subr.bf16.mxu0 %v5856_v56  ;;  %707 = vmatprep.subr.bf16.mxu1 %v5861_v57 }
  0x35   :  { %341 = vmatprep.mubr.bf16.mxu0 %v7445_v1  ;;  %414 = vmatprep.mubr.bf16.mxu1 %v7445_v1 }
  0x37   :  { %667 = vmatpush1.bf16.msra.mxu0 %v5870_v58  ;;  %708 = vmatpush1.bf16.msra.mxu1 %v5875_v59 }
  0x38   :  { %668 = vmatprep.subr.bf16.mxu0 %v5880_v60  ;;  %709 = vmatprep.subr.bf16.mxu1 %v5885_v61 }
  0x3a   :  { %342 = vmatmul.mubr.bf16.gmra.mrb[12].mxu0 %v5122_v62  ;;  %415 = vmatmul.mubr.bf16.gmra.mrb[12].mxu1 %v5122_v62 }
  0x3b   :  { %669 = vmatpush1.bf16.msra.mxu0 %v5899_v63  ;;  %710 = vmatpush1.bf16.msra.mxu1 %v5904_v0 }
  0x3c   :  { %670 = vmatprep.subr.bf16.mxu0 %v5909_v2  ;;  %711 = vmatprep.subr.bf16.mxu1 %v5918_v3 }
  0x3d   :  { %688 = vmatprep.mubr.bf16.mxu0 %v7445_v1  ;;  %729 = vmatprep.mubr.bf16.mxu1 %v7445_v1 }
  0x3f   :  { %671 = vmatpush1.bf16.msra.mxu0 %v5925_v4  ;;  %712 = vmatpush1.bf16.msra.mxu1 %v5930_v5 }
  0x40   :  { %967 = vmatprep.subr.bf16.mxu0 %v5729_v33  ;;  %1008 = vmatprep.subr.bf16.mxu1 %v5734_v34 }
  0x42   :  { %689 = vmatmul.mubr.bf16.vlgmr.msra.gmra.mrb[16].mxu0 %v7445_v1  ;;  %730 = vmatmul.mubr.bf16.vlgmr.msra.gmra.mrb[16].mxu1 %v7445_v1 }
  0x43   :  { %968 = vmatpush1.bf16.msra.mxu0 %v5742_v36  ;;  %1009 = vmatpush1.bf16.msra.mxu1 %v5747_v37 }
  0x44   :  { %969 = vmatprep.subr.bf16.mxu0 %v5754_v38  ;;  %1010 = vmatprep.subr.bf16.mxu1 %v5759_v39 }
  0x45   :  { %999 = vmatprep.mubr.bf16.mxu0 %v7445_v1  ;;  %1040 = vmatprep.mubr.bf16.mxu1 %v7445_v1 }
  0x47   :  { %970 = vmatpush1.bf16.msra.mxu0 %v5764_v40  ;;  %1011 = vmatpush1.bf16.msra.mxu1 %v5771_v41 }
  0x48   :  { %971 = vmatprep.subr.bf16.mxu0 %v5778_v42  ;;  %1012 = vmatprep.subr.bf16.mxu1 %v5783_v43 }
  0x4b   :  { %972 = vmatpush1.bf16.msra.mxu0 %v5793_v45  ;;  %1013 = vmatpush1.bf16.msra.mxu1 %v5798_v46 }
  0x4c   :  { %973 = vmatprep.subr.bf16.mxu0 %v5805_v47  ;;  %1014 = vmatprep.subr.bf16.mxu1 %v5812_v48 }
  0x4f   :  { %974 = vmatpush1.bf16.msra.mxu0 %v5817_v49  ;;  %1015 = vmatpush1.bf16.msra.mxu1 %v5822_v50 }
  0x50   :  { %975 = vmatprep.subr.bf16.mxu0 %v5829_v51  ;;  %1016 = vmatprep.subr.bf16.mxu1 %v5836_v52 }
  0x53   :  { %976 = vmatpush1.bf16.msra.mxu0 %v5846_v54  ;;  %1017 = vmatpush1.bf16.msra.mxu1 %v5851_v55 }
  0x54   :  { %977 = vmatprep.subr.bf16.mxu0 %v5856_v56  ;;  %1018 = vmatprep.subr.bf16.mxu1 %v5861_v57 }
  0x57   :  { %978 = vmatpush1.bf16.msra.mxu0 %v5870_v58  ;;  %1019 = vmatpush1.bf16.msra.mxu1 %v5875_v59 }
  0x58   :  { %979 = vmatprep.subr.bf16.mxu0 %v5880_v60  ;;  %1020 = vmatprep.subr.bf16.mxu1 %v5885_v61 }
  0x5b   :  { %980 = vmatpush1.bf16.msra.mxu0 %v5899_v63  ;;  %1021 = vmatpush1.bf16.msra.mxu1 %v5904_v0 }
  0x5c   :  { %981 = vmatprep.subr.bf16.mxu0 %v5909_v2  ;;  %1022 = vmatprep.subr.bf16.mxu1 %v5918_v3 }
  0x5f   :  { %982 = vmatpush1.bf16.msra.mxu0 %v5925_v4  ;;  %1023 = vmatpush1.bf16.msra.mxu1 %v5930_v5 }
  0x60   :  { %1279 = vmatprep.subr.bf16.mxu0 %v5729_v33  ;;  %1320 = vmatprep.subr.bf16.mxu1 %v5734_v34 }
  0xf5   :  { %v5989_v14 = vpop.f32.mrb[0].mxu0  ;;  %v5991_v15 = vpop.f32.mrb[0].mxu1 }
  0xf6   :  { %v315_v18 = vpop.f32.mrb[1].mxu0  ;;  %v388_v19 = vpop.f32.mrb[1].mxu1 }
  0xf7   :  { %v317_v21 = vpop.f32.mrb[2].mxu0  ;;  %v390_v22 = vpop.f32.mrb[2].mxu1 }
  0xf8   :  { %v6001_v23 = vadd.f32 %v317_v21, %v78_v17  ;;  %v319_v24 = vpop.f32.mrb[3].mxu0  ;;  %v6004_v25 = vadd.f32 %v390_v22, %v5987_v13  ;;  %v392_v26 = vpop.f32.mrb[3].mxu1 }
  0xf9   :  { %v6006_v27 = vadd.f32 %v319_v24, %v82_v20  ;;  %v6009_v28 = vadd.f32 %v392_v26, %v5995_v16 }
  0xfd   :  { %v323_v29 = vpop.f32.mrb[4].mxu0  ;;  %v396_v30 = vpop.f32.mrb[4].mxu1 }
  0xfe   :  { %v6011_v31 = vadd.f32 %v323_v29, %v78_v17  ;;  %v325_v32 = vpop.f32.mrb[5].mxu0  ;;  %v6014_v35 = vadd.f32 %v396_v30, %v5987_v13  ;;  %v398_v44 = vpop.f32.mrb[5].mxu1 }
  0xff   :  { %v6016_v53 = vadd.f32 %v325_v32, %v82_v20  ;;  %v327_v62 = vpop.f32.mrb[6].mxu0  ;;  %v6019_v6 = vadd.f32 %v398_v44, %v5995_v16  ;;  %v400_v11 = vpop.f32.mrb[6].mxu1 }
 0x100   :  { %v6021_v21 = vadd.f32 %v327_v62, %v78_v17  ;;  %v329_v22 = vpop.f32.mrb[7].mxu0  ;;  %v6024_v24 = vadd.f32 %v400_v11, %v5987_v13  ;;  %v402_v26 = vpop.f32.mrb[7].mxu1 }
 0x101   :  { %7450 = vst [vmem:[#allocation5_spill] sm:$0xff] %v6019_v6  ;;  %v6026_v29 = vadd.f32 %v329_v22, %v82_v20  ;;  %v6029_v30 = vadd.f32 %v402_v26, %v5995_v16 }
 0x102   :  { %7451 = vst [vmem:[#allocation6_spill] sm:$0xff] %v6021_v21  ;;  %7452 = vst [vmem:[#allocation7_spill] sm:$0xff] %v6024_v24 }
 0x103   :  { %7453 = vst [vmem:[#allocation8_spill] sm:$0xff] %v6026_v29  ;;  %7454 = vst [vmem:[#allocation9_spill] sm:$0xff] %v6029_v30 }
 0x105   :  { %v333_v9 = vpop.f32.mrb[8].mxu0  ;;  %v406_v32 = vpop.f32.mrb[8].mxu1 }
 0x106   :  { %v6031_v12 = vadd.f32 %v333_v9, %v78_v17  ;;  %v335_v8 = vpop.f32.mrb[9].mxu0  ;;  %v6034_v44 = vadd.f32 %v406_v32, %v5987_v13  ;;  %v408_v62 = vpop.f32.mrb[9].mxu1 }
 0x107   :  { %v6036_v10 = vadd.f32 %v335_v8, %v82_v20  ;;  %v337_v1 = vpop.f32.mrb[10].mxu0  ;;  %v6039_v11 = vadd.f32 %v408_v62, %v5995_v16  ;;  %v410_v22 = vpop.f32.mrb[10].mxu1 }
 0x108   :  { %7455 = vst [vmem:[#allocation10_spill] sm:$0xff] %v6031_v12  ;;  %7456 = vst [vmem:[#allocation11_spill] sm:$0xff] %v6034_v44  ;;  %v6041_v7 = vadd.f32 %v337_v1, %v78_v17  ;;  %v339_v26 = vpop.f32.mrb[11].mxu0  ;;  %v6044_v30 = vadd.f32 %v410_v22, %v5987_v13  ;;  %v412_v9 = vpop.f32.mrb[11].mxu1 }
 0x109   :  { %7457 = vst [vmem:[#allocation12_spill] sm:$0xff] %v6036_v10  ;;  %7458 = vst [vmem:[#allocation13_spill] sm:$0xff] %v6039_v11  ;;  %v6046_v12 = vadd.f32 %v339_v26, %v82_v20  ;;  %v6049_v32 = vadd.f32 %v412_v9, %v5995_v16 }
 0x10a   :  { %7459 = vst [vmem:[#allocation14_spill] sm:$0xff] %v6041_v7  ;;  %7460 = vst [vmem:[#allocation15_spill] sm:$0xff] %v6044_v30 }
 0x10b   :  { %7461 = vst [vmem:[#allocation16_spill] sm:$0xff] %v6046_v12  ;;  %7462 = vst [vmem:[#allocation17_spill] sm:$0xff] %v6049_v32 }
 0x10d   :  { %v343_v44 = vpop.f32.mrb[12].mxu0  ;;  %v416_v8 = vpop.f32.mrb[12].mxu1 }
 0x10e   :  { %v6051_v10 = vadd.f32 %v343_v44, %v78_v17  ;;  %v345_v29 = vpop.f32.mrb[13].mxu0  ;;  %v6054_v62 = vadd.f32 %v416_v8, %v5987_v13  ;;  %v418_v1 = vpop.f32.mrb[13].mxu1 }
 0x10f   :  { %v6056_v7 = vadd.f32 %v345_v29, %v82_v20  ;;  %v347_v11 = vpop.f32.mrb[14].mxu0  ;;  %v6059_v22 = vadd.f32 %v418_v1, %v5995_v16  ;;  %v420_v26 = vpop.f32.mrb[14].mxu1  ;;  %v314_v29 = vadd.f32 %v5989_v14, %v78_v17  ;;  %v316_v1 = vadd.f32 %v315_v18, %v82_v20 }
 0x110   :  { %7463 = vst [vmem:[#allocation18_spill] sm:$0xff] %v6051_v10  ;;  %7464 = vst [vmem:[#allocation19_spill] sm:$0xff] %v6054_v62  ;;  %v6061_v12 = vadd.f32 %v347_v11, %v78_v17  ;;  %v349_v9 = vpop.f32.mrb[15].mxu0  ;;  %v6064_v32 = vadd.f32 %v420_v26, %v5987_v13  ;;  %v422_v44 = vpop.f32.mrb[15].mxu1 }
 0x111   :  { %7465 = vst [vmem:[#allocation20_spill] sm:$0xff] %v6056_v7  ;;  %7466 = vst [vmem:[#allocation21_spill] sm:$0xff] %v6059_v22  ;;  %v6066_v10 = vadd.f32 %v349_v9, %v82_v20  ;;  %v6069_v8 = vadd.f32 %v422_v44, %v5995_v16  ;;  %v387_v7 = vadd.f32 %v5991_v15, %v5987_v13 }
 0x112   :  { %7467 = vst [vmem:[#allocation22_spill] sm:$0xff] %v6061_v12  ;;  %7468 = vst [vmem:[#allocation23_spill] sm:$0xff] %v6064_v32  ;;  %v389_v22 = vadd.f32 %v388_v19, %v5995_v16 }
 0x113   :  { %7469 = vst [vmem:[#allocation24_spill] sm:$0xff] %v6066_v10  ;;  %7470 = vst [vmem:[#allocation25_spill] sm:$0xff] %v6069_v8 }
 0x115   :  { %v690_v11 = vpop.f32.mrb[16].mxu0  ;;  %v731_v12 = vpop.f32.mrb[16].mxu1 }
 0x116   :  { %v738_v62 = vadd.f32 %v690_v11, %v314_v29  ;;  %v740_v30 = vadd.f32 %v731_v12, %v387_v7  ;;  %v692_v26 = vpop.f32.mrb[17].mxu0  ;;  %v733_v32 = vpop.f32.mrb[17].mxu1 }
 0x117   :  { %v739_v24 = vadd.f32 %v692_v26, %v316_v1  ;;  %v741_v9 = vadd.f32 %v733_v32, %v389_v22  ;;  %v694_v10 = vpop.f32.mrb[18].mxu0  ;;  %v735_v21 = vpop.f32.mrb[18].mxu1 }
 0x118   :  { %v4658_v44 = vmul.f32 -1.442695, %v738_v62  ;;  %v695_v8 = vpop.f32.mrb[19].mxu0  ;;  %v736_v6 = vpop.f32.mrb[19].mxu1 }
 0x119   :  { %v4659_v14 = vmul.f32 -1.442695, %v739_v24  ;;  %v4660_v13 = vmul.f32 -1.442695, %v741_v9  ;;  %v7471_v8 = vmov 0  }
 0x11a   :  { %5287 = vpow2.f32 %v4658_v44 }
 0x11b   :  { %5289 = vpow2.f32 %v4659_v14 }
 0x11c   :  { %5291 = vpow2.f32 %v4660_v13 }
 0x11d   :  { %5293 = vtanh.f32 %v740_v30 }
 0x124   :  { %v5288_v15 = vpop.eup %5287 }
 0x125   :  { %v5290_v17 = vpop.eup %5289  ;;  %v745_v16 = vadd.f32 1.0, %v5288_v15 }
 0x126   :  { %v751_v18 = vadd.f32 1.0, %v5290_v17  ;;  %v5292_v7 = vpop.eup %5291 }
 0x127   :  { %5295 = vrcp.f32 %v745_v16  ;;  %v5294_v12 = vpop.eup %5293  ;;  %v758_v21 = vadd.f32 1.0, %v5292_v7 }
 0x128   :  { %5297 = vrcp.f32 %v751_v18 }
 0x129   :  { %5299 = vrcp.f32 %v758_v21 }
 0x131   :  { %v5296_v19 = vpop.eup %5295 }
 0x132   :  { %v5298_v10 = vpop.eup %5297  ;;  %v762_v20 = vmul.f32 %v5296_v19, %v5294_v12 }
 0x133   :  { %v761_v32 = vmul.f32 0.0, %v5298_v10  ;;  %v5300_v24 = vpop.eup %5299 }
 0x135   :  { %v6075_v6 = vadd.f32 %v762_v20, %v761_v32 }
 0x137   :  { %5301 = vtanh.f32 %v6075_v6 }
 0x141   :  { %v5302_v62 = vpop.eup %5301 }
 0x142   :  { %v6078_v22 = vmul.f32 %v5302_v62, %v5300_v24 }
 0x144   :  { %v774_v30 = vpack.c.bf16 %v6078_v22, %v6078_v22 }
 0x146   :  { %1000 = vmatmul.mubr.bf16.vlgmr.msra.gmra.mrb[20].mxu0 %v774_v30  ;;  %1041 = vmatmul.mubr.bf16.vlgmr.msra.gmra.mrb[20].mxu1 %v774_v30 }
 0x147   :  { %1280 = vmatpush1.bf16.msra.mxu0 %v5742_v36  ;;  %1321 = vmatpush1.bf16.msra.mxu1 %v5747_v37 }
 0x148   :  { %1281 = vmatprep.subr.bf16.mxu0 %v5754_v38  ;;  %1322 = vmatprep.subr.bf16.mxu1 %v5759_v39 }
 0x149   :  { %1311 = vmatprep.mubr.bf16.mxu0 %v7471_v8  ;;  %1352 = vmatprep.mubr.bf16.mxu1 %v7471_v8 }
 0x14b   :  { %1282 = vmatpush1.bf16.msra.mxu0 %v5764_v40  ;;  %1323 = vmatpush1.bf16.msra.mxu1 %v5771_v41 }
 0x14c   :  { %1283 = vmatprep.subr.bf16.mxu0 %v5778_v42  ;;  %1324 = vmatprep.subr.bf16.mxu1 %v5783_v43 }
 0x14f   :  { %1284 = vmatpush1.bf16.msra.mxu0 %v5793_v45  ;;  %1325 = vmatpush1.bf16.msra.mxu1 %v5798_v46 }
 0x150   :  { %1285 = vmatprep.subr.bf16.mxu0 %v5805_v47  ;;  %1326 = vmatprep.subr.bf16.mxu1 %v5812_v48 }
 0x153   :  { %1286 = vmatpush1.bf16.msra.mxu0 %v5817_v49  ;;  %1327 = vmatpush1.bf16.msra.mxu1 %v5822_v50 }
 0x154   :  { %1287 = vmatprep.subr.bf16.mxu0 %v5829_v51  ;;  %1328 = vmatprep.subr.bf16.mxu1 %v5836_v52 }
 0x157   :  { %1288 = vmatpush1.bf16.msra.mxu0 %v5846_v54  ;;  %1329 = vmatpush1.bf16.msra.mxu1 %v5851_v55 }
 0x158   :  { %1289 = vmatprep.subr.bf16.mxu0 %v5856_v56  ;;  %1330 = vmatprep.subr.bf16.mxu1 %v5861_v57 }
 0x15b   :  { %1290 = vmatpush1.bf16.msra.mxu0 %v5870_v58  ;;  %1331 = vmatpush1.bf16.msra.mxu1 %v5875_v59 }
 0x15c   :  { %1291 = vmatprep.subr.bf16.mxu0 %v5880_v60  ;;  %1332 = vmatprep.subr.bf16.mxu1 %v5885_v61 }
 0x15f   :  { %1292 = vmatpush1.bf16.msra.mxu0 %v5899_v63  ;;  %1333 = vmatpush1.bf16.msra.mxu1 %v5904_v0 }
 0x160   :  { %1293 = vmatprep.subr.bf16.mxu0 %v5909_v2  ;;  %1334 = vmatprep.subr.bf16.mxu1 %v5918_v3 }
 0x163   :  { %1294 = vmatpush1.bf16.msra.mxu0 %v5925_v4  ;;  %1335 = vmatpush1.bf16.msra.mxu1 %v5930_v5 }
 0x164   :  { %1591 = vmatprep.subr.bf16.mxu0 %v5729_v33  ;;  %1632 = vmatprep.subr.bf16.mxu1 %v5734_v34 }
 0x219   :  { %v1001_v29 = vpop.f32.mrb[20].mxu0  ;;  %v1042_v1 = vpop.f32.mrb[20].mxu1 }
 0x21a   :  { %v1049_v11 = vadd.f32 %v1001_v29, %v6001_v23  ;;  %v1051_v26 = vadd.f32 %v1042_v1, %v6004_v25  ;;  %v1003_v9 = vpop.f32.mrb[21].mxu0  ;;  %v1044_v44 = vpop.f32.mrb[21].mxu1 }
 0x21b   :  { %v1050_v14 = vadd.f32 %v1003_v9, %v6006_v27  ;;  %v1052_v13 = vadd.f32 %v1044_v44, %v6009_v28  ;;  %v1005_v15 = vpop.f32.mrb[22].mxu0  ;;  %v1046_v17 = vpop.f32.mrb[22].mxu1  ;;  %v6192_v9 = vld [vmem:[%s7433_s3 + $0x8] ss:$16 sps:$4 sm:$0xff]   ;;  %v6201_v44 = vld [vmem:[%s7433_s3 + $0x24] ss:$16 sps:$4 sm:$0xff]  }
 0x21c   :  { %v4693_v16 = vmul.f32 -1.442695, %v1049_v11  ;;  %v1006_v18 = vpop.f32.mrb[23].mxu0  ;;  %v1047_v7 = vpop.f32.mrb[23].mxu1  ;;  %v6216_v15 = vld [vmem:[%s7433_s3 + $0x28] ss:$16 sps:$4 sm:$0xff]  }
 0x21d   :  { %v4694_v33 = vmul.f32 -1.442695, %v1050_v14  ;;  %v4695_v34 = vmul.f32 -1.442695, %v1052_v13  ;;  %v6206_v14 = vld [vmem:[%s7433_s3 + $0x2c] ss:$16 sps:$4 sm:$0xff]  }
 0x21e   :  { %5303 = vpow2.f32 %v4693_v16  ;;  %v6211_v13 = vld [vmem:[%s7433_s3 + $0x20] ss:$16 sps:$4 sm:$0xff]   ;;  %v6225_v17 = vld [vmem:[%s7433_s3 + $0x44] ss:$16 sps:$4 sm:$0xff]   ;;  %v6230_v16 = vld [vmem:[%s7433_s3 + $0x4c] ss:$16 sps:$4 sm:$0xff]  }
 0x21f   :  { %5305 = vpow2.f32 %v4694_v33  ;;  %v6235_v18 = vld [vmem:[%s7433_s3 + $0x40] ss:$16 sps:$4 sm:$0xff]   ;;  %v6240_v7 = vld [vmem:[%s7433_s3 + $0x48] ss:$16 sps:$4 sm:$0xff]   ;;  %v6249_v33 = vld [vmem:[%s7433_s3 + $0x64] ss:$16 sps:$4 sm:$0xff]  }
 0x220   :  { %5307 = vpow2.f32 %v4695_v34  ;;  %v6254_v34 = vld [vmem:[%s7433_s3 + $0x6c] ss:$16 sps:$4 sm:$0xff]  }
 0x221   :  { %5309 = vtanh.f32 %v1051_v26  ;;  %v6187_v26 = vld [vmem:[%s7433_s3] ss:$16 sps:$4 sm:$0xff]  }
 0x228   :  { %v5304_v12 = vpop.eup %5303 }
 0x229   :  { %v5306_v19 = vpop.eup %5305  ;;  %v1056_v23 = vadd.f32 1.0, %v5304_v12  ;;  %v6259_v12 = vld [vmem:[%s7433_s3 + $0x60] ss:$16 sps:$4 sm:$0xff]  }
 0x22a   :  { %v1062_v25 = vadd.f32 1.0, %v5306_v19  ;;  %v5308_v27 = vpop.eup %5307  ;;  %v6264_v19 = vld [vmem:[%s7433_s3 + $0x68] ss:$16 sps:$4 sm:$0xff]  }
 0x22b   :  { %5311 = vrcp.f32 %v1056_v23  ;;  %v5310_v10 = vpop.eup %5309  ;;  %v1069_v32 = vadd.f32 1.0, %v5308_v27  ;;  %v6273_v23 = vld [vmem:[%s7433_s3 + $0x84] ss:$16 sps:$4 sm:$0xff]   ;;  %v6283_v27 = vld [vmem:[%s7433_s3 + $0x80] ss:$16 sps:$4 sm:$0xff]  }
 0x22c   :  { %5313 = vrcp.f32 %v1062_v25  ;;  %v6278_v25 = vld [vmem:[%s7433_s3 + $0x8c] ss:$16 sps:$4 sm:$0xff]  }
 0x22d   :  { %5315 = vrcp.f32 %v1069_v32  ;;  %v6312_v32 = vld [vmem:[%s7433_s3 + $0xac] ss:$16 sps:$4 sm:$0xff]  }
 0x235   :  { %v5312_v28 = vpop.eup %5311 }
 0x236   :  { %v5314_v20 = vpop.eup %5313  ;;  %v1073_v21 = vmul.f32 %v5312_v28, %v5310_v10  ;;  %v6288_v10 = vld [vmem:[%s7433_s3 + $0x88] ss:$16 sps:$4 sm:$0xff]   ;;  %v6295_v28 = vld [vmem:[%s7433_s3 + $0xa4] ss:$16 sps:$4 sm:$0xff]  }
 0x237   :  { %v1072_v24 = vmul.f32 %v5314_v20, %v6075_v6  ;;  %v5316_v30 = vpop.eup %5315  ;;  %v6182_v6 = vld [vmem:[%s7433_s3 + $0xc] ss:$16 sps:$4 sm:$0xff]   ;;  %v6302_v20 = vld [vmem:[%s7433_s3 + $0xa0] ss:$16 sps:$4 sm:$0xff]  }
 0x239   :  { %v6121_v62 = vadd.f32 %v1073_v21, %v1072_v24  ;;  %v6307_v21 = vld [vmem:[%s7433_s3 + $0xa8] ss:$16 sps:$4 sm:$0xff]   ;;  %v6318_v24 = vld [vmem:[%s7433_s3 + $0xc4] ss:$16 sps:$4 sm:$0xff]  }
 0x23b   :  { %5317 = vtanh.f32 %v6121_v62 }
 0x245   :  { %v5318_v29 = vpop.eup %5317 }
 0x246   :  { %v6124_v1 = vmul.f32 %v5318_v29, %v5316_v30  ;;  %v6331_v30 = vld [vmem:[%s7433_s3 + $0xc0] ss:$16 sps:$4 sm:$0xff]   ;;  %v6336_v29 = vld [vmem:[%s7433_s3 + $0xc8] ss:$16 sps:$4 sm:$0xff]  }
 0x248   :  { %v1086_v11 = vpack.c.bf16 %v6124_v1, %v6124_v1 }
 0x24a   :  { %1312 = vmatmul.mubr.bf16.vlgmr.msra.gmra.mrb[24].mxu0 %v1086_v11  ;;  %1353 = vmatmul.mubr.bf16.vlgmr.msra.gmra.mrb[24].mxu1 %v1086_v11  ;;  %v6343_v11 = vld [vmem:[%s7433_s3 + $0xe4] ss:$16 sps:$4 sm:$0xff]  }
 0x24b   :  { %1592 = vmatpush1.bf16.msra.mxu0 %v5742_v36  ;;  %1633 = vmatpush1.bf16.msra.mxu1 %v5747_v37 }
 0x24c   :  { %1593 = vmatprep.subr.bf16.mxu0 %v5754_v38  ;;  %1634 = vmatprep.subr.bf16.mxu1 %v5759_v39 }
 0x24d   :  { %1623 = vmatprep.mubr.bf16.mxu0 %v7471_v8  ;;  %1664 = vmatprep.mubr.bf16.mxu1 %v7471_v8 }
 0x24f   :  { %1594 = vmatpush1.bf16.msra.mxu0 %v5764_v40  ;;  %1635 = vmatpush1.bf16.msra.mxu1 %v5771_v41 }
 0x250   :  { %1595 = vmatprep.subr.bf16.mxu0 %v5778_v42  ;;  %1636 = vmatprep.subr.bf16.mxu1 %v5783_v43  ;;  %v7472_v43 = vld [vmem:[#allocation5_spill] sm:$0xff] }
 0x253   :  { %1596 = vmatpush1.bf16.msra.mxu0 %v5793_v45  ;;  %1637 = vmatpush1.bf16.msra.mxu1 %v5798_v46 }
 0x254   :  { %1597 = vmatprep.subr.bf16.mxu0 %v5805_v47  ;;  %1638 = vmatprep.subr.bf16.mxu1 %v5812_v48 }
 0x257   :  { %1598 = vmatpush1.bf16.msra.mxu0 %v5817_v49  ;;  %1639 = vmatpush1.bf16.msra.mxu1 %v5822_v50 }
 0x258   :  { %1599 = vmatprep.subr.bf16.mxu0 %v5829_v51  ;;  %1640 = vmatprep.subr.bf16.mxu1 %v5836_v52 }
 0x25b   :  { %1600 = vmatpush1.bf16.msra.mxu0 %v5846_v54  ;;  %1641 = vmatpush1.bf16.msra.mxu1 %v5851_v55 }
 0x25c   :  { %1601 = vmatprep.subr.bf16.mxu0 %v5856_v56  ;;  %1642 = vmatprep.subr.bf16.mxu1 %v5861_v57 }
 0x25f   :  { %1602 = vmatpush1.bf16.msra.mxu0 %v5870_v58  ;;  %1643 = vmatpush1.bf16.msra.mxu1 %v5875_v59 }
 0x260   :  { %1603 = vmatprep.subr.bf16.mxu0 %v5880_v60  ;;  %1644 = vmatprep.subr.bf16.mxu1 %v5885_v61 }
 0x263   :  { %1604 = vmatpush1.bf16.msra.mxu0 %v5899_v63  ;;  %1645 = vmatpush1.bf16.msra.mxu1 %v5904_v0 }
 0x264   :  { %1605 = vmatprep.subr.bf16.mxu0 %v5909_v2  ;;  %1646 = vmatprep.subr.bf16.mxu1 %v5918_v3 }
 0x267   :  { %1606 = vmatpush1.bf16.msra.mxu0 %v5925_v4  ;;  %1647 = vmatpush1.bf16.msra.mxu1 %v5930_v5 }
 0x268   :  { %1944 = vmatprep.subr.bf16.mxu1 %v6182_v6 }
 0x31d   :  { %v1313_v36 = vpop.f32.mrb[24].mxu0  ;;  %v1354_v37 = vpop.f32.mrb[24].mxu1 }
 0x31e   :  { %v1361_v38 = vadd.f32 %v1313_v36, %v6011_v31  ;;  %v1363_v39 = vadd.f32 %v1354_v37, %v6014_v35  ;;  %v1315_v40 = vpop.f32.mrb[25].mxu0  ;;  %v1356_v41 = vpop.f32.mrb[25].mxu1  ;;  %v6348_v36 = vld [vmem:[%s7433_s3 + $0xec] ss:$16 sps:$4 sm:$0xff]   ;;  %v6355_v37 = vld [vmem:[%s7433_s3 + $0xe0] ss:$16 sps:$4 sm:$0xff]  }
 0x31f   :  { %v1362_v42 = vadd.f32 %v1315_v40, %v6016_v53  ;;  %v1364_v45 = vadd.f32 %v1356_v41, %v7472_v43  ;;  %v1317_v46 = vpop.f32.mrb[26].mxu0  ;;  %v1358_v47 = vpop.f32.mrb[26].mxu1  ;;  %v6177_v53 = vld [vmem:[%s7433_s3 + $0x4] ss:$16 sps:$4 sm:$0xff]   ;;  %v7474_v43 = vld [vmem:[#allocation7_spill] sm:$0xff] }
 0x320   :  { %v4728_v48 = vmul.f32 -1.442695, %v1361_v38  ;;  %v1318_v49 = vpop.f32.mrb[27].mxu0  ;;  %v1359_v50 = vpop.f32.mrb[27].mxu1  ;;  %1903 = vmatprep.subr.bf16.mxu0 %v6177_v53  ;;  %v6360_v38 = vld [vmem:[%s7433_s3 + $0xe8] ss:$16 sps:$4 sm:$0xff]  }
 0x321   :  { %v4729_v51 = vmul.f32 -1.442695, %v1362_v42  ;;  %v4730_v52 = vmul.f32 -1.442695, %v1364_v45  ;;  %v7473_v41 = vld [vmem:[#allocation6_spill] sm:$0xff]  ;;  %v7476_v50 = vld [vmem:[#allocation9_spill] sm:$0xff] }
 0x322   :  { %5319 = vpow2.f32 %v4728_v48  ;;  %v7475_v48 = vld [vmem:[#allocation8_spill] sm:$0xff] }
 0x323   :  { %5321 = vpow2.f32 %v4729_v51 }
 0x324   :  { %5323 = vpow2.f32 %v4730_v52 }
 0x325   :  { %5325 = vtanh.f32 %v1363_v39 }
 0x32c   :  { %v5320_v54 = vpop.eup %5319 }
 0x32d   :  { %v5322_v55 = vpop.eup %5321  ;;  %v1368_v56 = vadd.f32 1.0, %v5320_v54 }
 0x32e   :  { %v1374_v57 = vadd.f32 1.0, %v5322_v55  ;;  %v5324_v58 = vpop.eup %5323 }
 0x32f   :  { %5327 = vrcp.f32 %v1368_v56  ;;  %v5326_v59 = vpop.eup %5325  ;;  %v1381_v0 = vadd.f32 1.0, %v5324_v58 }
 0x330   :  { %5329 = vrcp.f32 %v1374_v57 }
 0x331   :  { %5331 = vrcp.f32 %v1381_v0 }
 0x339   :  { %v5328_v60 = vpop.eup %5327 }
 0x33a   :  { %v5330_v61 = vpop.eup %5329  ;;  %v1385_v63 = vmul.f32 %v5328_v60, %v5326_v59 }
 0x33b   :  { %v1384_v2 = vmul.f32 %v5330_v61, %v6121_v62  ;;  %v5332_v4 = vpop.eup %5331  ;;  %v6323_v62 = vld [vmem:[%s7433_s3 + $0xcc] ss:$16 sps:$4 sm:$0xff]  }
 0x33d   :  { %v6165_v3 = vadd.f32 %v1385_v63, %v1384_v2 }
 0x33f   :  { %5333 = vtanh.f32 %v6165_v3 }
 0x349   :  { %v5334_v5 = vpop.eup %5333 }
 0x34a   :  { %v6168_v31 = vmul.f32 %v5334_v5, %v5332_v4 }
 0x34c   :  { %v1398_v35 = vpack.c.bf16 %v6168_v31, %v6168_v31 }
 0x34e   :  { %1624 = vmatmul.mubr.bf16.vlgmr.msra.gmra.mrb[28].mxu0 %v1398_v35  ;;  %1665 = vmatmul.mubr.bf16.vlgmr.msra.gmra.mrb[28].mxu1 %v1398_v35 }
 0x34f   :  { %1935 = vmatprep.mubr.bf16.mxu0 %v7471_v8  ;;  %1976 = vmatprep.mubr.bf16.mxu1 %v7471_v8 }
 0x350   :  { %1904 = vmatpush1.bf16.msra.mxu0 %v6187_v26  ;;  %1945 = vmatpush1.bf16.msra.mxu1 %v6192_v9 }
 0x351   :  { %1905 = vmatprep.subr.bf16.mxu0 %v6201_v44  ;;  %1946 = vmatprep.subr.bf16.mxu1 %v6206_v14 }
 0x354   :  { %1906 = vmatpush1.bf16.msra.mxu0 %v6211_v13  ;;  %1947 = vmatpush1.bf16.msra.mxu1 %v6216_v15 }
 0x355   :  { %1907 = vmatprep.subr.bf16.mxu0 %v6225_v17  ;;  %1948 = vmatprep.subr.bf16.mxu1 %v6230_v16 }
 0x358   :  { %1908 = vmatpush1.bf16.msra.mxu0 %v6235_v18  ;;  %1949 = vmatpush1.bf16.msra.mxu1 %v6240_v7 }
 0x359   :  { %1909 = vmatprep.subr.bf16.mxu0 %v6249_v33  ;;  %1950 = vmatprep.subr.bf16.mxu1 %v6254_v34 }
 0x35c   :  { %1910 = vmatpush1.bf16.msra.mxu0 %v6259_v12  ;;  %1951 = vmatpush1.bf16.msra.mxu1 %v6264_v19 }
 0x35d   :  { %1911 = vmatprep.subr.bf16.mxu0 %v6273_v23  ;;  %1952 = vmatprep.subr.bf16.mxu1 %v6278_v25 }
 0x360   :  { %1912 = vmatpush1.bf16.msra.mxu0 %v6283_v27  ;;  %1953 = vmatpush1.bf16.msra.mxu1 %v6288_v10 }
 0x361   :  { %1913 = vmatprep.subr.bf16.mxu0 %v6295_v28  ;;  %1954 = vmatprep.subr.bf16.mxu1 %v6312_v32 }
 0x364   :  { %1914 = vmatpush1.bf16.msra.mxu0 %v6302_v20  ;;  %1955 = vmatpush1.bf16.msra.mxu1 %v6307_v21 }
 0x365   :  { %1915 = vmatprep.subr.bf16.mxu0 %v6318_v24  ;;  %1956 = vmatprep.subr.bf16.mxu1 %v6323_v62 }
 0x368   :  { %1916 = vmatpush1.bf16.msra.mxu0 %v6331_v30  ;;  %1957 = vmatpush1.bf16.msra.mxu1 %v6336_v29 }
 0x369   :  { %1917 = vmatprep.subr.bf16.mxu0 %v6343_v11  ;;  %1958 = vmatprep.subr.bf16.mxu1 %v6348_v36 }
 0x36c   :  { %1918 = vmatpush1.bf16.msra.mxu0 %v6355_v37  ;;  %1959 = vmatpush1.bf16.msra.mxu1 %v6360_v38 }
 0x36d   :  { %2215 = vmatprep.subr.bf16.mxu0 %v6177_v53  ;;  %2256 = vmatprep.subr.bf16.mxu1 %v6182_v6 }
 0x421   :  { %v1625_v39 = vpop.f32.mrb[28].mxu0  ;;  %v1666_v40 = vpop.f32.mrb[28].mxu1 }
 0x422   :  { %v1673_v42 = vadd.f32 %v1625_v39, %v7473_v41  ;;  %v1675_v45 = vadd.f32 %v1666_v40, %v7474_v43  ;;  %v1627_v46 = vpop.f32.mrb[29].mxu0  ;;  %v1668_v47 = vpop.f32.mrb[29].mxu1 }
 0x423   :  { %v1674_v49 = vadd.f32 %v1627_v46, %v7475_v48  ;;  %v1676_v51 = vadd.f32 %v1668_v47, %v7476_v50  ;;  %v1629_v52 = vpop.f32.mrb[30].mxu0  ;;  %v1670_v54 = vpop.f32.mrb[30].mxu1 }
 0x424   :  { %v4763_v55 = vmul.f32 -1.442695, %v1673_v42  ;;  %v1630_v56 = vpop.f32.mrb[31].mxu0  ;;  %v1671_v57 = vpop.f32.mrb[31].mxu1 }
 0x425   :  { %v4764_v58 = vmul.f32 -1.442695, %v1674_v49  ;;  %v4765_v59 = vmul.f32 -1.442695, %v1676_v51  ;;  %v7477_v49 = vld [vmem:[#allocation10_spill] sm:$0xff]  ;;  %v7478_v51 = vld [vmem:[#allocation11_spill] sm:$0xff] }
 0x426   :  { %5335 = vpow2.f32 %v4763_v55  ;;  %v7479_v56 = vld [vmem:[#allocation12_spill] sm:$0xff] }
 0x427   :  { %5337 = vpow2.f32 %v4764_v58  ;;  %v7480_v58 = vld [vmem:[#allocation13_spill] sm:$0xff] }
 0x428   :  { %5339 = vpow2.f32 %v4765_v59 }
 0x429   :  { %5341 = vtanh.f32 %v1675_v45 }
 0x430   :  { %v5336_v60 = vpop.eup %5335 }
 0x431   :  { %v5338_v61 = vpop.eup %5337  ;;  %v1680_v63 = vadd.f32 1.0, %v5336_v60 }
 0x432   :  { %v1686_v0 = vadd.f32 1.0, %v5338_v61  ;;  %v5340_v2 = vpop.eup %5339 }
 0x433   :  { %5343 = vrcp.f32 %v1680_v63  ;;  %v5342_v4 = vpop.eup %5341  ;;  %v1693_v40 = vadd.f32 1.0, %v5340_v2 }
 0x434   :  { %5345 = vrcp.f32 %v1686_v0 }
 0x435   :  { %5347 = vrcp.f32 %v1693_v40 }
 0x43d   :  { %v5344_v5 = vpop.eup %5343 }
 0x43e   :  { %v5346_v35 = vpop.eup %5345  ;;  %v1697_v39 = vmul.f32 %v5344_v5, %v5342_v4 }
 0x43f   :  { %v1696_v41 = vmul.f32 %v5346_v35, %v6165_v3  ;;  %v5348_v43 = vpop.eup %5347 }
 0x441   :  { %v6373_v42 = vadd.f32 %v1697_v39, %v1696_v41 }
 0x443   :  { %5349 = vtanh.f32 %v6373_v42 }
 0x44d   :  { %v5350_v46 = vpop.eup %5349 }
 0x44e   :  { %v6376_v47 = vmul.f32 %v5350_v46, %v5348_v43 }
 0x450   :  { %v1710_v45 = vpack.c.bf16 %v6376_v47, %v6376_v47 }
 0x452   :  { %1936 = vmatmul.mubr.bf16.vlgmr.msra.gmra.mrb[32].mxu0 %v1710_v45  ;;  %1977 = vmatmul.mubr.bf16.vlgmr.msra.gmra.mrb[32].mxu1 %v1710_v45 }
 0x453   :  { %2216 = vmatpush1.bf16.msra.mxu0 %v6187_v26  ;;  %2257 = vmatpush1.bf16.msra.mxu1 %v6192_v9 }
 0x454   :  { %2217 = vmatprep.subr.bf16.mxu0 %v6201_v44  ;;  %2258 = vmatprep.subr.bf16.mxu1 %v6206_v14 }
 0x455   :  { %2247 = vmatprep.mubr.bf16.mxu0 %v7471_v8  ;;  %2288 = vmatprep.mubr.bf16.mxu1 %v7471_v8 }
 0x457   :  { %2218 = vmatpush1.bf16.msra.mxu0 %v6211_v13  ;;  %2259 = vmatpush1.bf16.msra.mxu1 %v6216_v15 }
 0x458   :  { %2219 = vmatprep.subr.bf16.mxu0 %v6225_v17  ;;  %2260 = vmatprep.subr.bf16.mxu1 %v6230_v16 }
 0x45b   :  { %2220 = vmatpush1.bf16.msra.mxu0 %v6235_v18  ;;  %2261 = vmatpush1.bf16.msra.mxu1 %v6240_v7 }
 0x45c   :  { %2221 = vmatprep.subr.bf16.mxu0 %v6249_v33  ;;  %2262 = vmatprep.subr.bf16.mxu1 %v6254_v34 }
 0x45f   :  { %2222 = vmatpush1.bf16.msra.mxu0 %v6259_v12  ;;  %2263 = vmatpush1.bf16.msra.mxu1 %v6264_v19 }
 0x460   :  { %2223 = vmatprep.subr.bf16.mxu0 %v6273_v23  ;;  %2264 = vmatprep.subr.bf16.mxu1 %v6278_v25 }
 0x463   :  { %2224 = vmatpush1.bf16.msra.mxu0 %v6283_v27  ;;  %2265 = vmatpush1.bf16.msra.mxu1 %v6288_v10 }
 0x464   :  { %2225 = vmatprep.subr.bf16.mxu0 %v6295_v28  ;;  %2266 = vmatprep.subr.bf16.mxu1 %v6312_v32 }
 0x467   :  { %2226 = vmatpush1.bf16.msra.mxu0 %v6302_v20  ;;  %2267 = vmatpush1.bf16.msra.mxu1 %v6307_v21 }
 0x468   :  { %2227 = vmatprep.subr.bf16.mxu0 %v6318_v24  ;;  %2268 = vmatprep.subr.bf16.mxu1 %v6323_v62 }
 0x46b   :  { %2228 = vmatpush1.bf16.msra.mxu0 %v6331_v30  ;;  %2269 = vmatpush1.bf16.msra.mxu1 %v6336_v29 }
 0x46c   :  { %2229 = vmatprep.subr.bf16.mxu0 %v6343_v11  ;;  %2270 = vmatprep.subr.bf16.mxu1 %v6348_v36 }
 0x46f   :  { %2230 = vmatpush1.bf16.msra.mxu0 %v6355_v37  ;;  %2271 = vmatpush1.bf16.msra.mxu1 %v6360_v38 }
 0x470   :  { %2527 = vmatprep.subr.bf16.mxu0 %v6177_v53  ;;  %2568 = vmatprep.subr.bf16.mxu1 %v6182_v6 }
 0x525   :  { %v1937_v3 = vpop.f32.mrb[32].mxu0  ;;  %v1978_v48 = vpop.f32.mrb[32].mxu1 }
 0x526   :  { %v1985_v50 = vadd.f32 %v1937_v3, %v7477_v49  ;;  %v1987_v52 = vadd.f32 %v1978_v48, %v7478_v51  ;;  %v1939_v54 = vpop.f32.mrb[33].mxu0  ;;  %v1980_v55 = vpop.f32.mrb[33].mxu1 }
 0x527   :  { %v1986_v57 = vadd.f32 %v1939_v54, %v7479_v56  ;;  %v1988_v59 = vadd.f32 %v1980_v55, %v7480_v58  ;;  %v1941_v60 = vpop.f32.mrb[34].mxu0  ;;  %v1982_v61 = vpop.f32.mrb[34].mxu1  ;;  %v7481_v58 = vld [vmem:[#allocation14_spill] sm:$0xff] }
 0x528   :  { %v4798_v63 = vmul.f32 -1.442695, %v1985_v50  ;;  %v1942_v0 = vpop.f32.mrb[35].mxu0  ;;  %v1983_v2 = vpop.f32.mrb[35].mxu1  ;;  %v7482_v60 = vld [vmem:[#allocation15_spill] sm:$0xff] }
 0x529   :  { %v4799_v4 = vmul.f32 -1.442695, %v1986_v57  ;;  %v4800_v5 = vmul.f32 -1.442695, %v1988_v59  ;;  %v7483_v2 = vld [vmem:[#allocation16_spill] sm:$0xff] }
 0x52a   :  { %5351 = vpow2.f32 %v4798_v63 }
 0x52b   :  { %5353 = vpow2.f32 %v4799_v4 }
 0x52c   :  { %5355 = vpow2.f32 %v4800_v5  ;;  %v7484_v5 = vld [vmem:[#allocation17_spill] sm:$0xff] }
 0x52d   :  { %5357 = vtanh.f32 %v1987_v52 }
 0x534   :  { %v5352_v35 = vpop.eup %5351 }
 0x535   :  { %v5354_v39 = vpop.eup %5353  ;;  %v1992_v40 = vadd.f32 1.0, %v5352_v35 }
 0x536   :  { %v1998_v41 = vadd.f32 1.0, %v5354_v39  ;;  %v5356_v43 = vpop.eup %5355 }
 0x537   :  { %5359 = vrcp.f32 %v1992_v40  ;;  %v5358_v46 = vpop.eup %5357  ;;  %v2005_v49 = vadd.f32 1.0, %v5356_v43 }
 0x538   :  { %5361 = vrcp.f32 %v1998_v41 }
 0x539   :  { %5363 = vrcp.f32 %v2005_v49 }
 0x541   :  { %v5360_v45 = vpop.eup %5359 }
 0x542   :  { %v5362_v3 = vpop.eup %5361  ;;  %v2009_v48 = vmul.f32 %v5360_v45, %v5358_v46 }
 0x543   :  { %v2008_v50 = vmul.f32 %v5362_v3, %v6373_v42  ;;  %v5364_v54 = vpop.eup %5363 }
 0x545   :  { %v6419_v51 = vadd.f32 %v2009_v48, %v2008_v50 }
 0x547   :  { %5365 = vtanh.f32 %v6419_v51 }
 0x551   :  { %v5366_v55 = vpop.eup %5365 }
 0x552   :  { %v6422_v56 = vmul.f32 %v5366_v55, %v5364_v54 }
 0x554   :  { %v2022_v52 = vpack.c.bf16 %v6422_v56, %v6422_v56 }
 0x556   :  { %2248 = vmatmul.mubr.bf16.vlgmr.msra.gmra.mrb[36].mxu0 %v2022_v52  ;;  %2289 = vmatmul.mubr.bf16.vlgmr.msra.gmra.mrb[36].mxu1 %v2022_v52 }
 0x557   :  { %2528 = vmatpush1.bf16.msra.mxu0 %v6187_v26  ;;  %2569 = vmatpush1.bf16.msra.mxu1 %v6192_v9 }
 0x558   :  { %2529 = vmatprep.subr.bf16.mxu0 %v6201_v44  ;;  %2570 = vmatprep.subr.bf16.mxu1 %v6206_v14 }
 0x559   :  { %2559 = vmatprep.mubr.bf16.mxu0 %v7471_v8  ;;  %2600 = vmatprep.mubr.bf16.mxu1 %v7471_v8 }
 0x55b   :  { %2530 = vmatpush1.bf16.msra.mxu0 %v6211_v13  ;;  %2571 = vmatpush1.bf16.msra.mxu1 %v6216_v15 }
 0x55c   :  { %2531 = vmatprep.subr.bf16.mxu0 %v6225_v17  ;;  %2572 = vmatprep.subr.bf16.mxu1 %v6230_v16 }
 0x55f   :  { %2532 = vmatpush1.bf16.msra.mxu0 %v6235_v18  ;;  %2573 = vmatpush1.bf16.msra.mxu1 %v6240_v7 }
 0x560   :  { %2533 = vmatprep.subr.bf16.mxu0 %v6249_v33  ;;  %2574 = vmatprep.subr.bf16.mxu1 %v6254_v34 }
 0x563   :  { %2534 = vmatpush1.bf16.msra.mxu0 %v6259_v12  ;;  %2575 = vmatpush1.bf16.msra.mxu1 %v6264_v19 }
 0x564   :  { %2535 = vmatprep.subr.bf16.mxu0 %v6273_v23  ;;  %2576 = vmatprep.subr.bf16.mxu1 %v6278_v25 }
 0x567   :  { %2536 = vmatpush1.bf16.msra.mxu0 %v6283_v27  ;;  %2577 = vmatpush1.bf16.msra.mxu1 %v6288_v10 }
 0x568   :  { %2537 = vmatprep.subr.bf16.mxu0 %v6295_v28  ;;  %2578 = vmatprep.subr.bf16.mxu1 %v6312_v32 }
 0x56b   :  { %2538 = vmatpush1.bf16.msra.mxu0 %v6302_v20  ;;  %2579 = vmatpush1.bf16.msra.mxu1 %v6307_v21 }
 0x56c   :  { %2539 = vmatprep.subr.bf16.mxu0 %v6318_v24  ;;  %2580 = vmatprep.subr.bf16.mxu1 %v6323_v62 }
 0x56f   :  { %2540 = vmatpush1.bf16.msra.mxu0 %v6331_v30  ;;  %2581 = vmatpush1.bf16.msra.mxu1 %v6336_v29 }
 0x570   :  { %2541 = vmatprep.subr.bf16.mxu0 %v6343_v11  ;;  %2582 = vmatprep.subr.bf16.mxu1 %v6348_v36 }
 0x573   :  { %2542 = vmatpush1.bf16.msra.mxu0 %v6355_v37  ;;  %2583 = vmatpush1.bf16.msra.mxu1 %v6360_v38 }
 0x574   :  { %2839 = vmatprep.subr.bf16.mxu0 %v6177_v53  ;;  %2880 = vmatprep.subr.bf16.mxu1 %v6182_v6 }
 0x629   :  { %v2249_v42 = vpop.f32.mrb[36].mxu0  ;;  %v2290_v57 = vpop.f32.mrb[36].mxu1 }
 0x62a   :  { %v2297_v59 = vadd.f32 %v2249_v42, %v7481_v58  ;;  %v2299_v61 = vadd.f32 %v2290_v57, %v7482_v60  ;;  %v2251_v63 = vpop.f32.mrb[37].mxu0  ;;  %v2292_v0 = vpop.f32.mrb[37].mxu1 }
 0x62b   :  { %v2298_v4 = vadd.f32 %v2251_v63, %v7483_v2  ;;  %v2300_v35 = vadd.f32 %v2292_v0, %v7484_v5  ;;  %v2253_v39 = vpop.f32.mrb[38].mxu0  ;;  %v2294_v40 = vpop.f32.mrb[38].mxu1 }
 0x62c   :  { %v4833_v41 = vmul.f32 -1.442695, %v2297_v59  ;;  %v2254_v43 = vpop.f32.mrb[39].mxu0  ;;  %v2295_v46 = vpop.f32.mrb[39].mxu1  ;;  %v5183_v40 = vld [vmem:[%s7435_s2] ss:$16 sps:$4 sm:$0xff]  }
 0x62d   :  { %v4834_v53 = vmul.f32 -1.442695, %v2298_v4  ;;  %v4835_v6 = vmul.f32 -1.442695, %v2300_v35  ;;  %v5191_v46 = vld [vmem:[%s7435_s2 + $0x24] ss:$16 sps:$4 sm:$0xff]  }
 0x62e   :  { %5367 = vpow2.f32 %v4833_v41  ;;  %v5186_v41 = vld [vmem:[%s7435_s2 + $0x8] ss:$16 sps:$4 sm:$0xff]  }
 0x62f   :  { %5369 = vpow2.f32 %v4834_v53  ;;  %v5194_v53 = vld [vmem:[%s7435_s2 + $0x2c] ss:$16 sps:$4 sm:$0xff]  }
 0x630   :  { %5371 = vpow2.f32 %v4835_v6  ;;  %v5189_v6 = vld [vmem:[%s7435_s2 + $0x20] ss:$16 sps:$4 sm:$0xff]  }
 0x631   :  { %5373 = vtanh.f32 %v2299_v61 }
 0x638   :  { %v5368_v45 = vpop.eup %5367 }
 0x639   :  { %v5370_v3 = vpop.eup %5369  ;;  %v2304_v48 = vadd.f32 1.0, %v5368_v45  ;;  %v5192_v45 = vld [vmem:[%s7435_s2 + $0x28] ss:$16 sps:$4 sm:$0xff]  }
 0x63a   :  { %v2310_v49 = vadd.f32 1.0, %v5370_v3  ;;  %v5372_v50 = vpop.eup %5371  ;;  %v5197_v3 = vld [vmem:[%s7435_s2 + $0x44] ss:$16 sps:$4 sm:$0xff]  }
 0x63b   :  { %5375 = vrcp.f32 %v2304_v48  ;;  %v5374_v54 = vpop.eup %5373  ;;  %v2317_v57 = vadd.f32 1.0, %v5372_v50  ;;  %v5200_v48 = vld [vmem:[%s7435_s2 + $0x4c] ss:$16 sps:$4 sm:$0xff]   ;;  %v5198_v50 = vld [vmem:[%s7435_s2 + $0x48] ss:$16 sps:$4 sm:$0xff]  }
 0x63c   :  { %5377 = vrcp.f32 %v2310_v49  ;;  %v5195_v49 = vld [vmem:[%s7435_s2 + $0x40] ss:$16 sps:$4 sm:$0xff]  }
 0x63d   :  { %5379 = vrcp.f32 %v2317_v57  ;;  %v5209_v57 = vld [vmem:[%s7435_s2 + $0x84] ss:$16 sps:$4 sm:$0xff]  }
 0x645   :  { %v5376_v55 = vpop.eup %5375 }
 0x646   :  { %v5378_v52 = vpop.eup %5377  ;;  %v2321_v42 = vmul.f32 %v5376_v55, %v5374_v54  ;;  %v5203_v54 = vld [vmem:[%s7435_s2 + $0x64] ss:$16 sps:$4 sm:$0xff]   ;;  %v5206_v55 = vld [vmem:[%s7435_s2 + $0x6c] ss:$16 sps:$4 sm:$0xff]  }
 0x647   :  { %v2320_v58 = vmul.f32 %v5378_v52, %v6419_v51  ;;  %v5380_v60 = vpop.eup %5379  ;;  %v5201_v52 = vld [vmem:[%s7435_s2 + $0x60] ss:$16 sps:$4 sm:$0xff]  }
 0x649   :  { %v6465_v59 = vadd.f32 %v2321_v42, %v2320_v58  ;;  %v5204_v42 = vld [vmem:[%s7435_s2 + $0x68] ss:$16 sps:$4 sm:$0xff]   ;;  %v5212_v58 = vld [vmem:[%s7435_s2 + $0x8c] ss:$16 sps:$4 sm:$0xff]  }
 0x64b   :  { %5381 = vtanh.f32 %v6465_v59 }
 0x655   :  { %v5382_v63 = vpop.eup %5381 }
 0x656   :  { %v6468_v0 = vmul.f32 %v5382_v63, %v5380_v60  ;;  %v5210_v60 = vld [vmem:[%s7435_s2 + $0x88] ss:$16 sps:$4 sm:$0xff]   ;;  %v5215_v63 = vld [vmem:[%s7435_s2 + $0xa4] ss:$16 sps:$4 sm:$0xff]  }
 0x658   :  { %v2334_v61 = vpack.c.bf16 %v6468_v0, %v6468_v0 }
 0x65a   :  { %2560 = vmatmul.mubr.bf16.vlgmr.msra.gmra.mrb[40].mxu0 %v2334_v61  ;;  %2601 = vmatmul.mubr.bf16.vlgmr.msra.gmra.mrb[40].mxu1 %v2334_v61  ;;  %v5218_v61 = vld [vmem:[%s7435_s2 + $0xac] ss:$16 sps:$4 sm:$0xff]  }
 0x65b   :  { %2840 = vmatpush1.bf16.msra.mxu0 %v6187_v26  ;;  %2881 = vmatpush1.bf16.msra.mxu1 %v6192_v9  ;;  %v5185_v26 = vld [vmem:[%s7435_s2 + $0x4] ss:$16 sps:$4 sm:$0xff]   ;;  %v5188_v9 = vld [vmem:[%s7435_s2 + $0xc] ss:$16 sps:$4 sm:$0xff]  }
 0x65c   :  { %2841 = vmatprep.subr.bf16.mxu0 %v6201_v44  ;;  %2882 = vmatprep.subr.bf16.mxu1 %v6206_v14 }
 0x65d   :  { %2871 = vmatprep.mubr.bf16.mxu0 %v7471_v8  ;;  %2912 = vmatprep.mubr.bf16.mxu1 %v7471_v8 }
 0x65f   :  { %2842 = vmatpush1.bf16.msra.mxu0 %v6211_v13  ;;  %2883 = vmatpush1.bf16.msra.mxu1 %v6216_v15  ;;  %v7485_v13 = vld [vmem:[#allocation18_spill] sm:$0xff] }
 0x660   :  { %2843 = vmatprep.subr.bf16.mxu0 %v6225_v17  ;;  %2884 = vmatprep.subr.bf16.mxu1 %v6230_v16  ;;  %v7486_v17 = vld [vmem:[#allocation19_spill] sm:$0xff] }
 0x663   :  { %2844 = vmatpush1.bf16.msra.mxu0 %v6235_v18  ;;  %2885 = vmatpush1.bf16.msra.mxu1 %v6240_v7 }
 0x664   :  { %2845 = vmatprep.subr.bf16.mxu0 %v6249_v33  ;;  %2886 = vmatprep.subr.bf16.mxu1 %v6254_v34  ;;  %v7487_v33 = vld [vmem:[#allocation20_spill] sm:$0xff] }
 0x667   :  { %2846 = vmatpush1.bf16.msra.mxu0 %v6259_v12  ;;  %2887 = vmatpush1.bf16.msra.mxu1 %v6264_v19  ;;  %v7488_v12 = vld [vmem:[#allocation21_spill] sm:$0xff] }
 0x668   :  { %2847 = vmatprep.subr.bf16.mxu0 %v6273_v23  ;;  %2888 = vmatprep.subr.bf16.mxu1 %v6278_v25 }
 0x66b   :  { %2848 = vmatpush1.bf16.msra.mxu0 %v6283_v27  ;;  %2889 = vmatpush1.bf16.msra.mxu1 %v6288_v10 }
 0x66c   :  { %2849 = vmatprep.subr.bf16.mxu0 %v6295_v28  ;;  %2890 = vmatprep.subr.bf16.mxu1 %v6312_v32 }
 0x66f   :  { %2850 = vmatpush1.bf16.msra.mxu0 %v6302_v20  ;;  %2891 = vmatpush1.bf16.msra.mxu1 %v6307_v21 }
 0x670   :  { %2851 = vmatprep.subr.bf16.mxu0 %v6318_v24  ;;  %2892 = vmatprep.subr.bf16.mxu1 %v6323_v62 }
 0x673   :  { %2852 = vmatpush1.bf16.msra.mxu0 %v6331_v30  ;;  %2893 = vmatpush1.bf16.msra.mxu1 %v6336_v29 }
 0x674   :  { %2853 = vmatprep.subr.bf16.mxu0 %v6343_v11  ;;  %2894 = vmatprep.subr.bf16.mxu1 %v6348_v36 }
 0x677   :  { %2854 = vmatpush1.bf16.msra.mxu0 %v6355_v37  ;;  %2895 = vmatpush1.bf16.msra.mxu1 %v6360_v38 }
 0x678   :  { %3177 = vmatprep.subr.bf16.mxu0 %v5185_v26  ;;  %3250 = vmatprep.subr.bf16.mxu1 %v5188_v9  ;;  %v5213_v26 = vld [vmem:[%s7435_s2 + $0xa0] ss:$16 sps:$4 sm:$0xff]   ;;  %v5216_v9 = vld [vmem:[%s7435_s2 + $0xa8] ss:$16 sps:$4 sm:$0xff]  }
 0x72d   :  { %v2561_v44 = vpop.f32.mrb[40].mxu0  ;;  %v2602_v14 = vpop.f32.mrb[40].mxu1 }
 0x72e   :  { %v2609_v15 = vadd.f32 %v2561_v44, %v7485_v13  ;;  %v2611_v16 = vadd.f32 %v2602_v14, %v7486_v17  ;;  %v2563_v18 = vpop.f32.mrb[41].mxu0  ;;  %v2604_v7 = vpop.f32.mrb[41].mxu1  ;;  %v5221_v44 = vld [vmem:[%s7435_s2 + $0xc4] ss:$16 sps:$4 sm:$0xff]   ;;  %v5224_v14 = vld [vmem:[%s7435_s2 + $0xcc] ss:$16 sps:$4 sm:$0xff]  }
 0x72f   :  { %v2610_v34 = vadd.f32 %v2563_v18, %v7487_v33  ;;  %v2612_v19 = vadd.f32 %v2604_v7, %v7488_v12  ;;  %v2565_v23 = vpop.f32.mrb[42].mxu0  ;;  %v2606_v25 = vpop.f32.mrb[42].mxu1  ;;  %v5219_v13 = vld [vmem:[%s7435_s2 + $0xc0] ss:$16 sps:$4 sm:$0xff]   ;;  %v5227_v17 = vld [vmem:[%s7435_s2 + $0xe4] ss:$16 sps:$4 sm:$0xff]   ;;  %v2959_v33 = vpack.c.bf16 %v6124_v1, %v6078_v22  ;;  %v2961_v12 = vpack.c.bf16 %v6468_v0, %v6422_v56 }
 0x730   :  { %v4868_v27 = vmul.f32 -1.442695, %v2609_v15  ;;  %v2566_v10 = vpop.f32.mrb[43].mxu0  ;;  %v2607_v28 = vpop.f32.mrb[43].mxu1  ;;  %v5222_v15 = vld [vmem:[%s7435_s2 + $0xc8] ss:$16 sps:$4 sm:$0xff]  }
 0x731   :  { %v4869_v20 = vmul.f32 -1.442695, %v2610_v34  ;;  %v4870_v21 = vmul.f32 -1.442695, %v2612_v19  ;;  %v5225_v18 = vld [vmem:[%s7435_s2 + $0xe0] ss:$16 sps:$4 sm:$0xff]   ;;  %v2960_v34 = vpack.c.bf16 %v6376_v47, %v6168_v31 }
 0x732   :  { %5383 = vpow2.f32 %v4868_v27  ;;  %v5228_v7 = vld [vmem:[%s7435_s2 + $0xe8] ss:$16 sps:$4 sm:$0xff]   ;;  %v6629_v22 = vld [vmem:[%s7436_s4 + $0x4] ss:$16 sps:$4 sm:$0xff]   ;;  %v6634_v1 = vld [vmem:[%s7436_s4 + $0xc] ss:$16 sps:$4 sm:$0xff]  }
 0x733   :  { %5385 = vpow2.f32 %v4869_v20  ;;  %v6640_v31 = vld [vmem:[%s7436_s4] ss:$16 sps:$4 sm:$0xff]   ;;  %v6645_v47 = vld [vmem:[%s7436_s4 + $0x8] ss:$16 sps:$4 sm:$0xff]   ;;  %v6653_v56 = vld [vmem:[%s7436_s4 + $0x24] ss:$16 sps:$4 sm:$0xff]  }
 0x734   :  { %5387 = vpow2.f32 %v4870_v21  ;;  %v6658_v0 = vld [vmem:[%s7436_s4 + $0x2c] ss:$16 sps:$4 sm:$0xff]   ;;  %v6663_v19 = vld [vmem:[%s7436_s4 + $0x20] ss:$16 sps:$4 sm:$0xff]   ;;  %v6668_v23 = vld [vmem:[%s7436_s4 + $0x28] ss:$16 sps:$4 sm:$0xff]  }
 0x735   :  { %5389 = vtanh.f32 %v2611_v16  ;;  %v5230_v16 = vld [vmem:[%s7435_s2 + $0xec] ss:$16 sps:$4 sm:$0xff]   ;;  %v6677_v25 = vld [vmem:[%s7436_s4 + $0x44] ss:$16 sps:$4 sm:$0xff]   ;;  %v6687_v10 = vld [vmem:[%s7436_s4 + $0x40] ss:$16 sps:$4 sm:$0xff]  }
 0x736   :  { %v6682_v27 = vld [vmem:[%s7436_s4 + $0x4c] ss:$16 sps:$4 sm:$0xff]   ;;  %v6692_v28 = vld [vmem:[%s7436_s4 + $0x48] ss:$16 sps:$4 sm:$0xff]   ;;  %v6701_v20 = vld [vmem:[%s7436_s4 + $0x64] ss:$16 sps:$4 sm:$0xff]  }
 0x737   :  { %v6706_v21 = vld [vmem:[%s7436_s4 + $0x6c] ss:$16 sps:$4 sm:$0xff]  }
 0x73c   :  { %v5384_v32 = vpop.eup %5383 }
 0x73d   :  { %v5386_v24 = vpop.eup %5385  ;;  %v2616_v62 = vadd.f32 1.0, %v5384_v32  ;;  %v6711_v32 = vld [vmem:[%s7436_s4 + $0x60] ss:$16 sps:$4 sm:$0xff]  }
 0x73e   :  { %v2622_v30 = vadd.f32 1.0, %v5386_v24  ;;  %v5388_v29 = vpop.eup %5387  ;;  %v6716_v24 = vld [vmem:[%s7436_s4 + $0x68] ss:$16 sps:$4 sm:$0xff]  }
 0x73f   :  { %5391 = vrcp.f32 %v2616_v62  ;;  %v5390_v11 = vpop.eup %5389  ;;  %v2629_v51 = vadd.f32 1.0, %v5388_v29  ;;  %v6725_v62 = vld [vmem:[%s7436_s4 + $0x84] ss:$16 sps:$4 sm:$0xff]   ;;  %v6735_v29 = vld [vmem:[%s7436_s4 + $0x80] ss:$16 sps:$4 sm:$0xff]  }
 0x740   :  { %5393 = vrcp.f32 %v2622_v30  ;;  %v6730_v30 = vld [vmem:[%s7436_s4 + $0x8c] ss:$16 sps:$4 sm:$0xff]  }
 0x741   :  { %5395 = vrcp.f32 %v2629_v51  ;;  %v6764_v51 = vld [vmem:[%s7436_s4 + $0xa8] ss:$16 sps:$4 sm:$0xff]  }
 0x749   :  { %v5392_v36 = vpop.eup %5391 }
 0x74a   :  { %v5394_v37 = vpop.eup %5393  ;;  %v2633_v38 = vmul.f32 %v5392_v36, %v5390_v11  ;;  %v6740_v11 = vld [vmem:[%s7436_s4 + $0x88] ss:$16 sps:$4 sm:$0xff]   ;;  %v6749_v36 = vld [vmem:[%s7436_s4 + $0xa4] ss:$16 sps:$4 sm:$0xff]  }
 0x74b   :  { %v2632_v2 = vmul.f32 %v5394_v37, %v6465_v59  ;;  %v5396_v5 = vpop.eup %5395  ;;  %v5207_v59 = vld [vmem:[%s7435_s2 + $0x80] ss:$16 sps:$4 sm:$0xff]   ;;  %v6754_v37 = vld [vmem:[%s7436_s4 + $0xac] ss:$16 sps:$4 sm:$0xff]  }
 0x74d   :  { %v6515_v4 = vadd.f32 %v2633_v38, %v2632_v2  ;;  %v6759_v38 = vld [vmem:[%s7436_s4 + $0xa0] ss:$16 sps:$4 sm:$0xff]   ;;  %v6773_v2 = vld [vmem:[%s7436_s4 + $0xc4] ss:$16 sps:$4 sm:$0xff]  }
 0x74f   :  { %5397 = vtanh.f32 %v6515_v4 }
 0x759   :  { %v5398_v35 = vpop.eup %5397 }
 0x75a   :  { %v6518_v39 = vmul.f32 %v5398_v35, %v5396_v5  ;;  %v6778_v5 = vld [vmem:[%s7436_s4 + $0xcc] ss:$16 sps:$4 sm:$0xff]   ;;  %v6783_v35 = vld [vmem:[%s7436_s4 + $0xc0] ss:$16 sps:$4 sm:$0xff]  }
 0x75c   :  { %v2646_v43 = vpack.c.bf16 %v6518_v39, %v6518_v39 }
 0x75e   :  { %2872 = vmatmul.mubr.bf16.vlgmr.msra.gmra.mrb[44].mxu0 %v2646_v43  ;;  %2913 = vmatmul.mubr.bf16.vlgmr.msra.gmra.mrb[44].mxu1 %v2646_v43  ;;  %v6802_v43 = vld [vmem:[%s7436_s4 + $0xec] ss:$16 sps:$4 sm:$0xff]  }
 0x75f   :  { %3178 = vmatpush1.bf16.msra.mxu0 %v5183_v40  ;;  %3251 = vmatpush1.bf16.msra.mxu1 %v5186_v41  ;;  %v6788_v40 = vld [vmem:[%s7436_s4 + $0xc8] ss:$16 sps:$4 sm:$0xff]   ;;  %v6797_v41 = vld [vmem:[%s7436_s4 + $0xe4] ss:$16 sps:$4 sm:$0xff]  }
 0x760   :  { %3179 = vmatprep.subr.bf16.mxu0 %v5191_v46  ;;  %3252 = vmatprep.subr.bf16.mxu1 %v5194_v53  ;;  %v6807_v46 = vld [vmem:[%s7436_s4 + $0xe0] ss:$16 sps:$4 sm:$0xff]   ;;  %v6812_v53 = vld [vmem:[%s7436_s4 + $0xe8] ss:$16 sps:$4 sm:$0xff]  }
 0x761   :  { %3209 = vmatprep.mubr.bf16.mxu0 %v7471_v8  ;;  %3282 = vmatprep.mubr.bf16.mxu1 %v7471_v8 }
 0x763   :  { %3180 = vmatpush1.bf16.msra.mxu0 %v5189_v6  ;;  %3253 = vmatpush1.bf16.msra.mxu1 %v5192_v45 }
 0x764   :  { %3181 = vmatprep.subr.bf16.mxu0 %v5197_v3  ;;  %3254 = vmatprep.subr.bf16.mxu1 %v5200_v48  ;;  %v7489_v3 = vld [vmem:[#allocation22_spill] sm:$0xff] }
 0x767   :  { %3182 = vmatpush1.bf16.msra.mxu0 %v5195_v49  ;;  %3255 = vmatpush1.bf16.msra.mxu1 %v5198_v50  ;;  %v7490_v49 = vld [vmem:[#allocation23_spill] sm:$0xff] }
 0x768   :  { %3183 = vmatprep.subr.bf16.mxu0 %v5203_v54  ;;  %3256 = vmatprep.subr.bf16.mxu1 %v5206_v55 }
 0x76b   :  { %3184 = vmatpush1.bf16.msra.mxu0 %v5201_v52  ;;  %3257 = vmatpush1.bf16.msra.mxu1 %v5204_v42  ;;  %v7491_v52 = vld [vmem:[#allocation24_spill] sm:$0xff] }
 0x76c   :  { %3185 = vmatprep.subr.bf16.mxu0 %v5209_v57  ;;  %3258 = vmatprep.subr.bf16.mxu1 %v5212_v58  ;;  %v7492_v57 = vld [vmem:[#allocation25_spill] sm:$0xff] }
 0x76f   :  { %3186 = vmatpush1.bf16.msra.mxu0 %v5207_v59  ;;  %3259 = vmatpush1.bf16.msra.mxu1 %v5210_v60 }
 0x770   :  { %3187 = vmatprep.subr.bf16.mxu0 %v5215_v63  ;;  %3260 = vmatprep.subr.bf16.mxu1 %v5218_v61 }
 0x773   :  { %3188 = vmatpush1.bf16.msra.mxu0 %v5213_v26  ;;  %3261 = vmatpush1.bf16.msra.mxu1 %v5216_v9 }
 0x774   :  { %3189 = vmatprep.subr.bf16.mxu0 %v5221_v44  ;;  %3262 = vmatprep.subr.bf16.mxu1 %v5224_v14 }
 0x777   :  { %3190 = vmatpush1.bf16.msra.mxu0 %v5219_v13  ;;  %3263 = vmatpush1.bf16.msra.mxu1 %v5222_v15 }
 0x778   :  { %3191 = vmatprep.subr.bf16.mxu0 %v5227_v17  ;;  %3264 = vmatprep.subr.bf16.mxu1 %v5230_v16 }
 0x77b   :  { %3192 = vmatpush1.bf16.msra.mxu0 %v5225_v18  ;;  %3265 = vmatpush1.bf16.msra.mxu1 %v5228_v7 }
 0x77c   :  { %3551 = vmatprep.subr.bf16.mxu0 %v6629_v22  ;;  %3592 = vmatprep.subr.bf16.mxu1 %v6634_v1 }
 0x77e   :  { %3210 = vmatmul.mubr.bf16.vlgmr.msra.gmra.mrb[48].mxu0 %v2959_v33  ;;  %3283 = vmatmul.mubr.bf16.vlgmr.msra.gmra.mrb[48].mxu1 %v2959_v33 }
 0x77f   :  { %3219 = vmatprep.mubr.bf16.mxu0 %v7471_v8  ;;  %3292 = vmatprep.mubr.bf16.mxu1 %v7471_v8 }
 0x780   :  { %3552 = vmatpush1.bf16.msra.mxu0 %v6640_v31  ;;  %3593 = vmatpush1.bf16.msra.mxu1 %v6645_v47 }
 0x781   :  { %3553 = vmatprep.subr.bf16.mxu0 %v6653_v56  ;;  %3594 = vmatprep.subr.bf16.mxu1 %v6658_v0 }
 0x784   :  { %3554 = vmatpush1.bf16.msra.mxu0 %v6663_v19  ;;  %3595 = vmatpush1.bf16.msra.mxu1 %v6668_v23 }
 0x785   :  { %3555 = vmatprep.subr.bf16.mxu0 %v6677_v25  ;;  %3596 = vmatprep.subr.bf16.mxu1 %v6682_v27 }
 0x786   :  { %3220 = vmatmul.mubr.bf16.gmra.mrb[52].mxu0 %v2960_v34  ;;  %3293 = vmatmul.mubr.bf16.gmra.mrb[52].mxu1 %v2960_v34 }
 0x787   :  { %3229 = vmatprep.mubr.bf16.mxu0 %v7471_v8  ;;  %3302 = vmatprep.mubr.bf16.mxu1 %v7471_v8 }
 0x788   :  { %3556 = vmatpush1.bf16.msra.mxu0 %v6687_v10  ;;  %3597 = vmatpush1.bf16.msra.mxu1 %v6692_v28 }
 0x789   :  { %3557 = vmatprep.subr.bf16.mxu0 %v6701_v20  ;;  %3598 = vmatprep.subr.bf16.mxu1 %v6706_v21 }
 0x78c   :  { %3558 = vmatpush1.bf16.msra.mxu0 %v6711_v32  ;;  %3599 = vmatpush1.bf16.msra.mxu1 %v6716_v24 }
 0x78d   :  { %3559 = vmatprep.subr.bf16.mxu0 %v6725_v62  ;;  %3600 = vmatprep.subr.bf16.mxu1 %v6730_v30 }
 0x78e   :  { %3230 = vmatmul.mubr.bf16.gmra.mrb[56].mxu0 %v2961_v12  ;;  %3303 = vmatmul.mubr.bf16.gmra.mrb[56].mxu1 %v2961_v12 }
 0x78f   :  { %3239 = vmatprep.mubr.bf16.mxu0 %v7471_v8  ;;  %3312 = vmatprep.mubr.bf16.mxu1 %v7471_v8 }
 0x790   :  { %3560 = vmatpush1.bf16.msra.mxu0 %v6735_v29  ;;  %3601 = vmatpush1.bf16.msra.mxu1 %v6740_v11 }
 0x791   :  { %3561 = vmatprep.subr.bf16.mxu0 %v6749_v36  ;;  %3602 = vmatprep.subr.bf16.mxu1 %v6754_v37 }
 0x794   :  { %3562 = vmatpush1.bf16.msra.mxu0 %v6759_v38  ;;  %3603 = vmatpush1.bf16.msra.mxu1 %v6764_v51 }
 0x795   :  { %3563 = vmatprep.subr.bf16.mxu0 %v6773_v2  ;;  %3604 = vmatprep.subr.bf16.mxu1 %v6778_v5 }
 0x798   :  { %3564 = vmatpush1.bf16.msra.mxu0 %v6783_v35  ;;  %3605 = vmatpush1.bf16.msra.mxu1 %v6788_v40 }
 0x799   :  { %3565 = vmatprep.subr.bf16.mxu0 %v6797_v41  ;;  %3606 = vmatprep.subr.bf16.mxu1 %v6802_v43 }
 0x79c   :  { %3566 = vmatpush1.bf16.msra.mxu0 %v6807_v46  ;;  %3607 = vmatpush1.bf16.msra.mxu1 %v6812_v53 }
 0x79d   :  { %3666 = vmatprep.subr.bf16.mxu0 %v6629_v22  ;;  %3707 = vmatprep.subr.bf16.mxu1 %v6634_v1 }
 0x831   :  { %v2873_v6 = vpop.f32.mrb[44].mxu0  ;;  %v2914_v45 = vpop.f32.mrb[44].mxu1 }
 0x832   :  { %v2921_v48 = vadd.f32 %v2873_v6, %v7489_v3  ;;  %v2923_v50 = vadd.f32 %v2914_v45, %v7490_v49  ;;  %v2875_v54 = vpop.f32.mrb[45].mxu0  ;;  %v2916_v55 = vpop.f32.mrb[45].mxu1 }
 0x833   :  { %v2922_v42 = vadd.f32 %v2875_v54, %v7491_v52  ;;  %v2924_v58 = vadd.f32 %v2916_v55, %v7492_v57  ;;  %v2877_v59 = vpop.f32.mrb[46].mxu0  ;;  %v2918_v60 = vpop.f32.mrb[46].mxu1 }
 0x834   :  { %v4903_v63 = vmul.f32 -1.442695, %v2921_v48  ;;  %v2878_v61 = vpop.f32.mrb[47].mxu0  ;;  %v2919_v26 = vpop.f32.mrb[47].mxu1 }
 0x835   :  { %v4904_v9 = vmul.f32 -1.442695, %v2922_v42  ;;  %v4905_v44 = vmul.f32 -1.442695, %v2924_v58 }
 0x836   :  { %5399 = vpow2.f32 %v4903_v63 }
 0x837   :  { %5401 = vpow2.f32 %v4904_v9 }
 0x838   :  { %5403 = vpow2.f32 %v4905_v44 }
 0x839   :  { %5405 = vtanh.f32 %v2923_v50 }
 0x840   :  { %v5400_v14 = vpop.eup %5399 }
 0x841   :  { %v5402_v13 = vpop.eup %5401  ;;  %v2928_v15 = vadd.f32 1.0, %v5400_v14 }
 0x842   :  { %v2934_v17 = vadd.f32 1.0, %v5402_v13  ;;  %v5404_v16 = vpop.eup %5403 }
 0x843   :  { %5407 = vrcp.f32 %v2928_v15  ;;  %v5406_v18 = vpop.eup %5405  ;;  %v2941_v12 = vadd.f32 1.0, %v5404_v16 }
 0x844   :  { %5409 = vrcp.f32 %v2934_v17 }
 0x845   :  { %5411 = vrcp.f32 %v2941_v12  ;;  %v2995_v12 = vld [vmem:[%s7437_s6] sm:$0xf] }
 0x84d   :  { %v5408_v7 = vpop.eup %5407 }
 0x84e   :  { %v5410_v33 = vpop.eup %5409  ;;  %v2945_v34 = vmul.f32 %v5408_v7, %v5406_v18 }
 0x84f   :  { %v2944_v6 = vmul.f32 %v5410_v33, %v6515_v4  ;;  %v5412_v61 = vpop.eup %5411 }
 0x851   :  { %v6825_v45 = vpop.f32.mrb[48].mxu0  ;;  %v6827_v3 = vpop.f32.mrb[48].mxu1  ;;  %v2946_v48 = vadd.f32 %v2945_v34, %v2944_v6 }
 0x852   :  { %v6829_v49 = vpop.f32.mrb[49].mxu0  ;;  %v6831_v50 = vpop.f32.mrb[49].mxu1 }
 0x853   :  { %v6833_v54 = vpop.f32.mrb[50].mxu0  ;;  %v6835_v55 = vpop.f32.mrb[50].mxu1  ;;  %5413 = vtanh.f32 %v2946_v48 }
 0x854   :  { %v6837_v52 = vpop.f32.mrb[51].mxu0  ;;  %v6839_v42 = vpop.f32.mrb[51].mxu1 }
 0x859   :  { %v6841_v4 = vpop.f32.mrb[52].mxu0  ;;  %v6843_v57 = vpop.f32.mrb[52].mxu1 }
 0x85a   :  { %7493 = vst [vmem:[#allocation5_spill] sm:$0xff] %v6843_v57  ;;  %v6845_v58 = vpop.f32.mrb[53].mxu0  ;;  %v6847_v59 = vpop.f32.mrb[53].mxu1 }
 0x85b   :  { %7494 = vst [vmem:[#allocation6_spill] sm:$0xff] %v6845_v58  ;;  %7495 = vst [vmem:[#allocation7_spill] sm:$0xff] %v6847_v59  ;;  %v6849_v60 = vpop.f32.mrb[54].mxu0  ;;  %v6851_v63 = vpop.f32.mrb[54].mxu1 }
 0x85c   :  { %7496 = vst [vmem:[#allocation8_spill] sm:$0xff] %v6849_v60  ;;  %7497 = vst [vmem:[#allocation9_spill] sm:$0xff] %v6851_v63  ;;  %v6853_v26 = vpop.f32.mrb[55].mxu0  ;;  %v6855_v9 = vpop.f32.mrb[55].mxu1 }
 0x85d   :  { %7498 = vst [vmem:[#allocation10_spill] sm:$0xff] %v6853_v26  ;;  %7499 = vst [vmem:[#allocation11_spill] sm:$0xff] %v6855_v9  ;;  %v5414_v44 = vpop.eup %5413 }
 0x85e   :  { %v2948_v14 = vmul.f32 %v5414_v44, %v5412_v61 }
 0x860   :  { %v2962_v13 = vpack.c.bf16 %v2948_v14, %v6518_v39 }
 0x861   :  { %v6858_v15 = vpop.f32.mrb[56].mxu0  ;;  %v6860_v17 = vpop.f32.mrb[56].mxu1 }
 0x862   :  { %7500 = vst [vmem:[#allocation12_spill] sm:$0xff] %v6858_v15  ;;  %7501 = vst [vmem:[#allocation13_spill] sm:$0xff] %v6860_v17  ;;  %v6862_v16 = vpop.f32.mrb[57].mxu0  ;;  %v6864_v18 = vpop.f32.mrb[57].mxu1  ;;  %3240 = vmatmul.mubr.bf16.gmra.mrb[60].mxu0 %v2962_v13  ;;  %3313 = vmatmul.mubr.bf16.gmra.mrb[60].mxu1 %v2962_v13 }
 0x863   :  { %7502 = vst [vmem:[#allocation14_spill] sm:$0xff] %v6862_v16  ;;  %7503 = vst [vmem:[#allocation15_spill] sm:$0xff] %v6864_v18  ;;  %v6866_v7 = vpop.f32.mrb[58].mxu0  ;;  %v6868_v33 = vpop.f32.mrb[58].mxu1  ;;  %3583 = vmatprep.mubr.bf16.mxu0 %v7471_v8  ;;  %3624 = vmatprep.mubr.bf16.mxu1 %v7471_v8 }
 0x864   :  { %7504 = vst [vmem:[#allocation16_spill] sm:$0xff] %v6866_v7  ;;  %7505 = vst [vmem:[#allocation17_spill] sm:$0xff] %v6868_v33  ;;  %v6872_v34 = vpop.f32.mrb[59].mxu0  ;;  %v6874_v39 = vpop.f32.mrb[59].mxu1 }
 0x865   :  { %7506 = vst [vmem:[#allocation18_spill] sm:$0xff] %v6872_v34  ;;  %7507 = vst [vmem:[#allocation19_spill] sm:$0xff] %v6874_v39  ;;  %v7514_v39 = vld [vmem:[#allocation4_spill] sm:$0xff] }
 0x866   :  { %v7515_v34 = vsub.s32 0, %v7514_v39  ;;  %v7516_v7 = vsub.s32 2, %v7514_v39 }
 0x868   :  { %v6929_v33 = vrot.slane %v2995_v12, %v7515_v34  ;;  %v6933_v18 = vrot.slane %v2995_v12, %v7516_v7 }
 0x86a   :  { %3584 = vmatmul.mubr.bf16.vlgmr.msra.gmra.mrb[64].mxu0 %v7471_v8  ;;  %3625 = vmatmul.mubr.bf16.vlgmr.msra.gmra.mrb[64].mxu1 %v7471_v8  ;;  %v3212_v34 = vadd.f32 %v6825_v45, %v6929_v33 }
 0x86b   :  { %3667 = vmatpush1.bf16.msra.mxu0 %v6640_v31  ;;  %3708 = vmatpush1.bf16.msra.mxu1 %v6645_v47 }
 0x86c   :  { %3668 = vmatprep.subr.bf16.mxu0 %v6653_v56  ;;  %3709 = vmatprep.subr.bf16.mxu1 %v6658_v0 }
 0x86d   :  { %3698 = vmatprep.mubr.bf16.mxu0 %v7471_v8  ;;  %3739 = vmatprep.mubr.bf16.mxu1 %v7471_v8 }
 0x86f   :  { %3669 = vmatpush1.bf16.msra.mxu0 %v6663_v19  ;;  %3710 = vmatpush1.bf16.msra.mxu1 %v6668_v23 }
 0x870   :  { %3670 = vmatprep.subr.bf16.mxu0 %v6677_v25  ;;  %3711 = vmatprep.subr.bf16.mxu1 %v6682_v27 }
 0x873   :  { %3671 = vmatpush1.bf16.msra.mxu0 %v6687_v10  ;;  %3712 = vmatpush1.bf16.msra.mxu1 %v6692_v28 }
 0x874   :  { %3672 = vmatprep.subr.bf16.mxu0 %v6701_v20  ;;  %3713 = vmatprep.subr.bf16.mxu1 %v6706_v21 }
 0x877   :  { %3673 = vmatpush1.bf16.msra.mxu0 %v6711_v32  ;;  %3714 = vmatpush1.bf16.msra.mxu1 %v6716_v24 }
 0x878   :  { %3674 = vmatprep.subr.bf16.mxu0 %v6725_v62  ;;  %3715 = vmatprep.subr.bf16.mxu1 %v6730_v30 }
 0x87b   :  { %3675 = vmatpush1.bf16.msra.mxu0 %v6735_v29  ;;  %3716 = vmatpush1.bf16.msra.mxu1 %v6740_v11 }
 0x87c   :  { %3676 = vmatprep.subr.bf16.mxu0 %v6749_v36  ;;  %3717 = vmatprep.subr.bf16.mxu1 %v6754_v37 }
 0x87f   :  { %3677 = vmatpush1.bf16.msra.mxu0 %v6759_v38  ;;  %3718 = vmatpush1.bf16.msra.mxu1 %v6764_v51 }
 0x880   :  { %3678 = vmatprep.subr.bf16.mxu0 %v6773_v2  ;;  %3719 = vmatprep.subr.bf16.mxu1 %v6778_v5 }
 0x883   :  { %3679 = vmatpush1.bf16.msra.mxu0 %v6783_v35  ;;  %3720 = vmatpush1.bf16.msra.mxu1 %v6788_v40 }
 0x884   :  { %3680 = vmatprep.subr.bf16.mxu0 %v6797_v41  ;;  %3721 = vmatprep.subr.bf16.mxu1 %v6802_v43 }
 0x887   :  { %3681 = vmatpush1.bf16.msra.mxu0 %v6807_v46  ;;  %3722 = vmatpush1.bf16.msra.mxu1 %v6812_v53 }
 0x888   :  { %3781 = vmatprep.subr.bf16.mxu0 %v6629_v22  ;;  %3822 = vmatprep.subr.bf16.mxu1 %v6634_v1 }
 0x935   :  { %v6915_v6 = vpop.f32.mrb[60].mxu0  ;;  %v6917_v48 = vpop.f32.mrb[60].mxu1 }
 0x936   :  { %7508 = vst [vmem:[#allocation20_spill] sm:$0xff] %v6915_v6  ;;  %7509 = vst [vmem:[#allocation21_spill] sm:$0xff] %v6917_v48  ;;  %v6919_v61 = vpop.f32.mrb[61].mxu0  ;;  %v6921_v44 = vpop.f32.mrb[61].mxu1 }
 0x937   :  { %7510 = vst [vmem:[#allocation22_spill] sm:$0xff] %v6919_v61  ;;  %7511 = vst [vmem:[#allocation23_spill] sm:$0xff] %v6921_v44  ;;  %v6923_v14 = vpop.f32.mrb[62].mxu0  ;;  %v6925_v13 = vpop.f32.mrb[62].mxu1  ;;  %v7519_v61 = vsub.s32 1, %v7514_v39 }
 0x938   :  { %7512 = vst [vmem:[#allocation24_spill] sm:$0xff] %v6923_v14  ;;  %7513 = vst [vmem:[#allocation25_spill] sm:$0xff] %v6925_v13  ;;  %v6935_v16 = vpop.f32.mrb[63].mxu0  ;;  %v6937_v6 = vpop.f32.mrb[63].mxu1  ;;  %v7520_v14 = vsub.s32 3, %v7514_v39  ;;  %v3285_v13 = vadd.f32 %v6827_v3, %v6933_v18 }
 0x939   :  { %7517 = vst [vmem:[#allocation4_spill] sm:$0xff] %v6935_v16  ;;  %7518 = vst [vmem:[#allocation26_spill] sm:$0xff] %v6937_v6  ;;  %v6941_v48 = vrot.slane %v2995_v12, %v7519_v61 }
 0x93a   :  { %v6945_v44 = vrot.slane %v2995_v12, %v7520_v14 }
 0x93b   :  { %v3214_v7 = vadd.f32 %v6829_v49, %v6941_v48 }
 0x93c   :  { %v3287_v6 = vadd.f32 %v6831_v50, %v6945_v44 }
 0x93d   :  { %v3585_v16 = vpop.f32.mrb[64].mxu0  ;;  %v3626_v17 = vpop.f32.mrb[64].mxu1 }
 0x93e   :  { %v3633_v61 = vadd.f32 %v3585_v16, %v3212_v34  ;;  %v3635_v15 = vadd.f32 %v3626_v17, %v3285_v13  ;;  %v3587_v9 = vpop.f32.mrb[65].mxu0  ;;  %v3628_v39 = vpop.f32.mrb[65].mxu1 }
 0x93f   :  { %v3634_v12 = vadd.f32 %v3587_v9, %v3214_v7  ;;  %v3636_v14 = vadd.f32 %v3628_v39, %v3287_v6  ;;  %v3589_v26 = vpop.f32.mrb[66].mxu0  ;;  %v3630_v63 = vpop.f32.mrb[66].mxu1  ;;  %v3218_v39 = vadd.f32 %v6837_v52, %v6941_v48 }
 0x940   :  { %v4970_v45 = vmul.f32 -1.442695, %v3633_v61  ;;  %v3590_v60 = vpop.f32.mrb[67].mxu0  ;;  %v3631_v59 = vpop.f32.mrb[67].mxu1 }
 0x941   :  { %v4971_v3 = vmul.f32 -1.442695, %v3634_v12  ;;  %v4972_v49 = vmul.f32 -1.442695, %v3636_v14  ;;  %v3291_v12 = vadd.f32 %v6839_v42, %v6945_v44 }
 0x942   :  { %5415 = vpow2.f32 %v4970_v45 }
 0x943   :  { %5417 = vpow2.f32 %v4971_v3 }
 0x944   :  { %5419 = vpow2.f32 %v4972_v49 }
 0x945   :  { %5421 = vtanh.f32 %v3635_v15  ;;  %v3289_v15 = vadd.f32 %v6835_v55, %v6933_v18 }
 0x94c   :  { %v5416_v58 = vpop.eup %5415 }
 0x94d   :  { %v5418_v57 = vpop.eup %5417  ;;  %v3640_v50 = vadd.f32 1.0, %v5416_v58 }
 0x94e   :  { %v3646_v16 = vadd.f32 1.0, %v5418_v57  ;;  %v5420_v17 = vpop.eup %5419  ;;  %v3216_v57 = vadd.f32 %v6833_v54, %v6929_v33 }
 0x94f   :  { %5423 = vrcp.f32 %v3640_v50  ;;  %v5422_v9 = vpop.eup %5421  ;;  %v3653_v13 = vadd.f32 1.0, %v5420_v17 }
 0x950   :  { %5425 = vrcp.f32 %v3646_v16 }
 0x951   :  { %5427 = vrcp.f32 %v3653_v13 }
 0x959   :  { %v5424_v6 = vpop.eup %5423 }
 0x95a   :  { %v5426_v26 = vpop.eup %5425  ;;  %v3657_v63 = vmul.f32 %v5424_v6, %v5422_v9 }
 0x95b   :  { %v3656_v60 = vmul.f32 0.0, %v5426_v26  ;;  %v5428_v34 = vpop.eup %5427 }
 0x95d   :  { %v6955_v59 = vadd.f32 %v3657_v63, %v3656_v60 }
 0x95f   :  { %5429 = vtanh.f32 %v6955_v59 }
 0x969   :  { %v5430_v7 = vpop.eup %5429 }
 0x96a   :  { %v3660_v58 = vmul.f32 %v5430_v7, %v5428_v34 }
 0x96c   :  { %v3665_v61 = vpack.c.bf16 %v3660_v58, %v3660_v58 }
 0x96e   :  { %3699 = vmatmul.mubr.bf16.vlgmr.msra.gmra.mrb[68].mxu0 %v3665_v61  ;;  %3740 = vmatmul.mubr.bf16.vlgmr.msra.gmra.mrb[68].mxu1 %v3665_v61 }
 0x96f   :  { %3782 = vmatpush1.bf16.msra.mxu0 %v6640_v31  ;;  %3823 = vmatpush1.bf16.msra.mxu1 %v6645_v47 }
 0x970   :  { %3783 = vmatprep.subr.bf16.mxu0 %v6653_v56  ;;  %3824 = vmatprep.subr.bf16.mxu1 %v6658_v0 }
 0x971   :  { %3813 = vmatprep.mubr.bf16.mxu0 %v7471_v8  ;;  %3854 = vmatprep.mubr.bf16.mxu1 %v7471_v8 }
 0x973   :  { %3784 = vmatpush1.bf16.msra.mxu0 %v6663_v19  ;;  %3825 = vmatpush1.bf16.msra.mxu1 %v6668_v23 }
 0x974   :  { %3785 = vmatprep.subr.bf16.mxu0 %v6677_v25  ;;  %3826 = vmatprep.subr.bf16.mxu1 %v6682_v27 }
 0x977   :  { %3786 = vmatpush1.bf16.msra.mxu0 %v6687_v10  ;;  %3827 = vmatpush1.bf16.msra.mxu1 %v6692_v28 }
 0x978   :  { %3787 = vmatprep.subr.bf16.mxu0 %v6701_v20  ;;  %3828 = vmatprep.subr.bf16.mxu1 %v6706_v21 }
 0x97b   :  { %3788 = vmatpush1.bf16.msra.mxu0 %v6711_v32  ;;  %3829 = vmatpush1.bf16.msra.mxu1 %v6716_v24 }
 0x97c   :  { %3789 = vmatprep.subr.bf16.mxu0 %v6725_v62  ;;  %3830 = vmatprep.subr.bf16.mxu1 %v6730_v30 }
 0x97f   :  { %3790 = vmatpush1.bf16.msra.mxu0 %v6735_v29  ;;  %3831 = vmatpush1.bf16.msra.mxu1 %v6740_v11 }
 0x980   :  { %3791 = vmatprep.subr.bf16.mxu0 %v6749_v36  ;;  %3832 = vmatprep.subr.bf16.mxu1 %v6754_v37 }
 0x983   :  { %3792 = vmatpush1.bf16.msra.mxu0 %v6759_v38  ;;  %3833 = vmatpush1.bf16.msra.mxu1 %v6764_v51 }
 0x984   :  { %3793 = vmatprep.subr.bf16.mxu0 %v6773_v2  ;;  %3834 = vmatprep.subr.bf16.mxu1 %v6778_v5 }
 0x987   :  { %3794 = vmatpush1.bf16.msra.mxu0 %v6783_v35  ;;  %3835 = vmatpush1.bf16.msra.mxu1 %v6788_v40 }
 0x988   :  { %3795 = vmatprep.subr.bf16.mxu0 %v6797_v41  ;;  %3836 = vmatprep.subr.bf16.mxu1 %v6802_v43 }
 0x98b   :  { %3796 = vmatpush1.bf16.msra.mxu0 %v6807_v46  ;;  %3837 = vmatpush1.bf16.msra.mxu1 %v6812_v53 }
 0x98c   :  { %3896 = vmatprep.subr.bf16.mxu0 %v6629_v22  ;;  %3937 = vmatprep.subr.bf16.mxu1 %v6634_v1 }
 0xa41   :  { %v3700_v14 = vpop.f32.mrb[68].mxu0  ;;  %v3741_v45 = vpop.f32.mrb[68].mxu1 }
 0xa42   :  { %v3748_v3 = vadd.f32 %v3700_v14, %v3216_v57  ;;  %v3750_v49 = vadd.f32 %v3741_v45, %v3289_v15  ;;  %v3702_v50 = vpop.f32.mrb[69].mxu0  ;;  %v3743_v16 = vpop.f32.mrb[69].mxu1 }
 0xa43   :  { %v3749_v17 = vadd.f32 %v3702_v50, %v3218_v39  ;;  %v3751_v9 = vadd.f32 %v3743_v16, %v3291_v12  ;;  %v3704_v6 = vpop.f32.mrb[70].mxu0  ;;  %v3745_v26 = vpop.f32.mrb[70].mxu1 }
 0xa44   :  { %v4973_v54 = vmul.f32 -1.442695, %v3748_v3  ;;  %v3705_v63 = vpop.f32.mrb[71].mxu0  ;;  %v3746_v13 = vpop.f32.mrb[71].mxu1  ;;  %v7522_v6 = vld [vmem:[#allocation6_spill] sm:$0xff] }
 0xa45   :  { %v4974_v55 = vmul.f32 -1.442695, %v3749_v17  ;;  %v4975_v52 = vmul.f32 -1.442695, %v3751_v9  ;;  %v7521_v17 = vld [vmem:[#allocation5_spill] sm:$0xff]  ;;  %v3224_v26 = vadd.f32 %v7522_v6, %v6941_v48 }
 0xa46   :  { %5431 = vpow2.f32 %v4973_v54  ;;  %v3295_v9 = vadd.f32 %v7521_v17, %v6933_v18  ;;  %v7523_v54 = vld [vmem:[#allocation7_spill] sm:$0xff] }
 0xa47   :  { %5433 = vpow2.f32 %v4974_v55  ;;  %v3297_v63 = vadd.f32 %v7523_v54, %v6945_v44 }
 0xa48   :  { %5435 = vpow2.f32 %v4975_v52 }
 0xa49   :  { %5437 = vtanh.f32 %v3750_v49 }
 0xa50   :  { %v5432_v60 = vpop.eup %5431 }
 0xa51   :  { %v5434_v34 = vpop.eup %5433  ;;  %v3755_v42 = vadd.f32 1.0, %v5432_v60 }
 0xa52   :  { %v3761_v7 = vadd.f32 1.0, %v5434_v34  ;;  %v5436_v58 = vpop.eup %5435 }
 0xa53   :  { %5439 = vrcp.f32 %v3755_v42  ;;  %v5438_v61 = vpop.eup %5437  ;;  %v3768_v12 = vadd.f32 1.0, %v5436_v58 }
 0xa54   :  { %5441 = vrcp.f32 %v3761_v7 }
 0xa55   :  { %5443 = vrcp.f32 %v3768_v12 }
 0xa5d   :  { %v5440_v57 = vpop.eup %5439 }
 0xa5e   :  { %v5442_v15 = vpop.eup %5441  ;;  %v3772_v39 = vmul.f32 %v5440_v57, %v5438_v61 }
 0xa5f   :  { %v3771_v14 = vmul.f32 %v5442_v15, %v6955_v59  ;;  %v5444_v3 = vpop.eup %5443  ;;  %v3222_v59 = vadd.f32 %v6841_v4, %v6929_v33 }
 0xa61   :  { %v7001_v45 = vadd.f32 %v3772_v39, %v3771_v14 }
 0xa63   :  { %5445 = vtanh.f32 %v7001_v45 }
 0xa6d   :  { %v5446_v50 = vpop.eup %5445 }
 0xa6e   :  { %v3775_v16 = vmul.f32 %v5446_v50, %v5444_v3 }
 0xa70   :  { %v3780_v49 = vpack.c.bf16 %v3775_v16, %v3775_v16 }
 0xa72   :  { %3814 = vmatmul.mubr.bf16.vlgmr.msra.gmra.mrb[72].mxu0 %v3780_v49  ;;  %3855 = vmatmul.mubr.bf16.vlgmr.msra.gmra.mrb[72].mxu1 %v3780_v49 }
 0xa73   :  { %3897 = vmatpush1.bf16.msra.mxu0 %v6640_v31  ;;  %3938 = vmatpush1.bf16.msra.mxu1 %v6645_v47 }
 0xa74   :  { %3898 = vmatprep.subr.bf16.mxu0 %v6653_v56  ;;  %3939 = vmatprep.subr.bf16.mxu1 %v6658_v0 }
 0xa75   :  { %3928 = vmatprep.mubr.bf16.mxu0 %v7471_v8  ;;  %3969 = vmatprep.mubr.bf16.mxu1 %v7471_v8 }
 0xa77   :  { %3899 = vmatpush1.bf16.msra.mxu0 %v6663_v19  ;;  %3940 = vmatpush1.bf16.msra.mxu1 %v6668_v23 }
 0xa78   :  { %3900 = vmatprep.subr.bf16.mxu0 %v6677_v25  ;;  %3941 = vmatprep.subr.bf16.mxu1 %v6682_v27 }
 0xa7b   :  { %3901 = vmatpush1.bf16.msra.mxu0 %v6687_v10  ;;  %3942 = vmatpush1.bf16.msra.mxu1 %v6692_v28 }
 0xa7c   :  { %3902 = vmatprep.subr.bf16.mxu0 %v6701_v20  ;;  %3943 = vmatprep.subr.bf16.mxu1 %v6706_v21 }
 0xa7f   :  { %3903 = vmatpush1.bf16.msra.mxu0 %v6711_v32  ;;  %3944 = vmatpush1.bf16.msra.mxu1 %v6716_v24 }
 0xa80   :  { %3904 = vmatprep.subr.bf16.mxu0 %v6725_v62  ;;  %3945 = vmatprep.subr.bf16.mxu1 %v6730_v30 }
 0xa83   :  { %3905 = vmatpush1.bf16.msra.mxu0 %v6735_v29  ;;  %3946 = vmatpush1.bf16.msra.mxu1 %v6740_v11 }
 0xa84   :  { %3906 = vmatprep.subr.bf16.mxu0 %v6749_v36  ;;  %3947 = vmatprep.subr.bf16.mxu1 %v6754_v37 }
 0xa87   :  { %3907 = vmatpush1.bf16.msra.mxu0 %v6759_v38  ;;  %3948 = vmatpush1.bf16.msra.mxu1 %v6764_v51 }
 0xa88   :  { %3908 = vmatprep.subr.bf16.mxu0 %v6773_v2  ;;  %3949 = vmatprep.subr.bf16.mxu1 %v6778_v5 }
 0xa8b   :  { %3909 = vmatpush1.bf16.msra.mxu0 %v6783_v35  ;;  %3950 = vmatpush1.bf16.msra.mxu1 %v6788_v40 }
 0xa8c   :  { %3910 = vmatprep.subr.bf16.mxu0 %v6797_v41  ;;  %3951 = vmatprep.subr.bf16.mxu1 %v6802_v43 }
 0xa8f   :  { %3911 = vmatpush1.bf16.msra.mxu0 %v6807_v46  ;;  %3952 = vmatpush1.bf16.msra.mxu1 %v6812_v53 }
 0xa90   :  { %4011 = vmatprep.subr.bf16.mxu0 %v6629_v22  ;;  %4052 = vmatprep.subr.bf16.mxu1 %v6634_v1 }
 0xb45   :  { %v3815_v13 = vpop.f32.mrb[72].mxu0  ;;  %v3856_v55 = vpop.f32.mrb[72].mxu1 }
 0xb46   :  { %v3863_v52 = vadd.f32 %v3815_v13, %v3222_v59  ;;  %v3865_v60 = vadd.f32 %v3856_v55, %v3295_v9  ;;  %v3817_v34 = vpop.f32.mrb[73].mxu0  ;;  %v3858_v42 = vpop.f32.mrb[73].mxu1 }
 0xb47   :  { %v3864_v7 = vadd.f32 %v3817_v34, %v3224_v26  ;;  %v3866_v58 = vadd.f32 %v3858_v42, %v3297_v63  ;;  %v3819_v61 = vpop.f32.mrb[74].mxu0  ;;  %v3860_v57 = vpop.f32.mrb[74].mxu1 }
 0xb48   :  { %v4976_v4 = vmul.f32 -1.442695, %v3863_v52  ;;  %v3820_v15 = vpop.f32.mrb[75].mxu0  ;;  %v3861_v39 = vpop.f32.mrb[75].mxu1  ;;  %v7526_v61 = vld [vmem:[#allocation10_spill] sm:$0xff] }
 0xb49   :  { %v4977_v12 = vmul.f32 -1.442695, %v3864_v7  ;;  %v4978_v14 = vmul.f32 -1.442695, %v3866_v58  ;;  %v7525_v7 = vld [vmem:[#allocation9_spill] sm:$0xff]  ;;  %v3228_v57 = vadd.f32 %v7526_v61, %v6941_v48 }
 0xb4a   :  { %5447 = vpow2.f32 %v4976_v4  ;;  %v3299_v58 = vadd.f32 %v7525_v7, %v6933_v18  ;;  %v7527_v4 = vld [vmem:[#allocation11_spill] sm:$0xff] }
 0xb4b   :  { %5449 = vpow2.f32 %v4977_v12  ;;  %v3301_v15 = vadd.f32 %v7527_v4, %v6945_v44 }
 0xb4c   :  { %5451 = vpow2.f32 %v4978_v14 }
 0xb4d   :  { %5453 = vtanh.f32 %v3865_v60 }
 0xb54   :  { %v5448_v3 = vpop.eup %5447 }
 0xb55   :  { %v5450_v50 = vpop.eup %5449  ;;  %v3870_v16 = vadd.f32 1.0, %v5448_v3 }
 0xb56   :  { %v3876_v49 = vadd.f32 1.0, %v5450_v50  ;;  %v5452_v59 = vpop.eup %5451 }
 0xb57   :  { %5455 = vrcp.f32 %v3870_v16  ;;  %v5454_v17 = vpop.eup %5453  ;;  %v3883_v54 = vadd.f32 1.0, %v5452_v59 }
 0xb58   :  { %5457 = vrcp.f32 %v3876_v49 }
 0xb59   :  { %5459 = vrcp.f32 %v3883_v54 }
 0xb61   :  { %v5456_v9 = vpop.eup %5455 }
 0xb62   :  { %v5458_v6 = vpop.eup %5457  ;;  %v3887_v26 = vmul.f32 %v5456_v9, %v5454_v17 }
 0xb63   :  { %v3886_v63 = vmul.f32 %v5458_v6, %v7001_v45  ;;  %v5460_v55 = vpop.eup %5459  ;;  %v7524_v45 = vld [vmem:[#allocation8_spill] sm:$0xff] }
 0xb64   :  { %v3226_v42 = vadd.f32 %v7524_v45, %v6929_v33 }
 0xb65   :  { %v7047_v13 = vadd.f32 %v3887_v26, %v3886_v63 }
 0xb67   :  { %5461 = vtanh.f32 %v7047_v13 }
 0xb71   :  { %v5462_v52 = vpop.eup %5461 }
 0xb72   :  { %v3890_v34 = vmul.f32 %v5462_v52, %v5460_v55 }
 0xb74   :  { %v3895_v60 = vpack.c.bf16 %v3890_v34, %v3890_v34 }
 0xb76   :  { %3929 = vmatmul.mubr.bf16.vlgmr.msra.gmra.mrb[76].mxu0 %v3895_v60  ;;  %3970 = vmatmul.mubr.bf16.vlgmr.msra.gmra.mrb[76].mxu1 %v3895_v60 }
 0xb77   :  { %4012 = vmatpush1.bf16.msra.mxu0 %v6640_v31  ;;  %4053 = vmatpush1.bf16.msra.mxu1 %v6645_v47 }
 0xb78   :  { %4013 = vmatprep.subr.bf16.mxu0 %v6653_v56  ;;  %4054 = vmatprep.subr.bf16.mxu1 %v6658_v0 }
 0xb79   :  { %4043 = vmatprep.mubr.bf16.mxu0 %v7471_v8  ;;  %4084 = vmatprep.mubr.bf16.mxu1 %v7471_v8 }
 0xb7b   :  { %4014 = vmatpush1.bf16.msra.mxu0 %v6663_v19  ;;  %4055 = vmatpush1.bf16.msra.mxu1 %v6668_v23 }
 0xb7c   :  { %4015 = vmatprep.subr.bf16.mxu0 %v6677_v25  ;;  %4056 = vmatprep.subr.bf16.mxu1 %v6682_v27 }
 0xb7f   :  { %4016 = vmatpush1.bf16.msra.mxu0 %v6687_v10  ;;  %4057 = vmatpush1.bf16.msra.mxu1 %v6692_v28 }
 0xb80   :  { %4017 = vmatprep.subr.bf16.mxu0 %v6701_v20  ;;  %4058 = vmatprep.subr.bf16.mxu1 %v6706_v21 }
 0xb83   :  { %4018 = vmatpush1.bf16.msra.mxu0 %v6711_v32  ;;  %4059 = vmatpush1.bf16.msra.mxu1 %v6716_v24 }
 0xb84   :  { %4019 = vmatprep.subr.bf16.mxu0 %v6725_v62  ;;  %4060 = vmatprep.subr.bf16.mxu1 %v6730_v30 }
 0xb87   :  { %4020 = vmatpush1.bf16.msra.mxu0 %v6735_v29  ;;  %4061 = vmatpush1.bf16.msra.mxu1 %v6740_v11 }
 0xb88   :  { %4021 = vmatprep.subr.bf16.mxu0 %v6749_v36  ;;  %4062 = vmatprep.subr.bf16.mxu1 %v6754_v37 }
 0xb8b   :  { %4022 = vmatpush1.bf16.msra.mxu0 %v6759_v38  ;;  %4063 = vmatpush1.bf16.msra.mxu1 %v6764_v51 }
 0xb8c   :  { %4023 = vmatprep.subr.bf16.mxu0 %v6773_v2  ;;  %4064 = vmatprep.subr.bf16.mxu1 %v6778_v5 }
 0xb8f   :  { %4024 = vmatpush1.bf16.msra.mxu0 %v6783_v35  ;;  %4065 = vmatpush1.bf16.msra.mxu1 %v6788_v40 }
 0xb90   :  { %4025 = vmatprep.subr.bf16.mxu0 %v6797_v41  ;;  %4066 = vmatprep.subr.bf16.mxu1 %v6802_v43 }
 0xb93   :  { %4026 = vmatpush1.bf16.msra.mxu0 %v6807_v46  ;;  %4067 = vmatpush1.bf16.msra.mxu1 %v6812_v53 }
 0xb94   :  { %4126 = vmatprep.subr.bf16.mxu0 %v6629_v22  ;;  %4167 = vmatprep.subr.bf16.mxu1 %v6634_v1 }
 0xc49   :  { %v3930_v39 = vpop.f32.mrb[76].mxu0  ;;  %v3971_v12 = vpop.f32.mrb[76].mxu1 }
 0xc4a   :  { %v3978_v14 = vadd.f32 %v3930_v39, %v3226_v42  ;;  %v3980_v3 = vadd.f32 %v3971_v12, %v3299_v58  ;;  %v3932_v50 = vpop.f32.mrb[77].mxu0  ;;  %v3973_v22 = vpop.f32.mrb[77].mxu1 }
 0xc4b   :  { %v3979_v16 = vadd.f32 %v3932_v50, %v3228_v57  ;;  %v3981_v1 = vadd.f32 %v3973_v22, %v3301_v15  ;;  %v3934_v49 = vpop.f32.mrb[78].mxu0  ;;  %v3975_v59 = vpop.f32.mrb[78].mxu1 }
 0xc4c   :  { %v4979_v17 = vmul.f32 -1.442695, %v3978_v14  ;;  %v3935_v9 = vpop.f32.mrb[79].mxu0  ;;  %v3976_v6 = vpop.f32.mrb[79].mxu1 }
 0xc4d   :  { %v4980_v26 = vmul.f32 -1.442695, %v3979_v16  ;;  %v4981_v54 = vmul.f32 -1.442695, %v3981_v1 }
 0xc4e   :  { %5463 = vpow2.f32 %v4979_v17 }
 0xc4f   :  { %5465 = vpow2.f32 %v4980_v26  ;;  %v7155_v26 = vld [vmem:[%s7436_s4] ss:$16 sps:$4 sm:$0xff]  }
 0xc50   :  { %5467 = vpow2.f32 %v4981_v54  ;;  %v7161_v54 = vld [vmem:[%s7436_s4 + $0x8] ss:$16 sps:$4 sm:$0xff]  }
 0xc51   :  { %5469 = vtanh.f32 %v3980_v3 }
 0xc58   :  { %v5464_v63 = vpop.eup %5463 }
 0xc59   :  { %v5466_v55 = vpop.eup %5465  ;;  %v3985_v52 = vadd.f32 1.0, %v5464_v63  ;;  %v7167_v63 = vld [vmem:[%s7436_s4 + $0x24] ss:$16 sps:$4 sm:$0xff]  }
 0xc5a   :  { %v3991_v34 = vadd.f32 1.0, %v5466_v55  ;;  %v5468_v60 = vpop.eup %5467  ;;  %v7173_v55 = vld [vmem:[%s7436_s4 + $0x2c] ss:$16 sps:$4 sm:$0xff]  }
 0xc5b   :  { %5471 = vrcp.f32 %v3985_v52  ;;  %v5470_v45 = vpop.eup %5469  ;;  %v3998_v61 = vadd.f32 1.0, %v5468_v60  ;;  %v7181_v52 = vld [vmem:[%s7436_s4 + $0x20] ss:$16 sps:$4 sm:$0xff]   ;;  %v7193_v60 = vld [vmem:[%s7436_s4 + $0x44] ss:$16 sps:$4 sm:$0xff]  }
 0xc5c   :  { %5473 = vrcp.f32 %v3991_v34  ;;  %v7187_v34 = vld [vmem:[%s7436_s4 + $0x28] ss:$16 sps:$4 sm:$0xff]  }
 0xc5d   :  { %5475 = vrcp.f32 %v3998_v61  ;;  %v7223_v61 = vld [vmem:[%s7436_s4 + $0x6c] ss:$16 sps:$4 sm:$0xff]  }
 0xc65   :  { %v5472_v42 = vpop.eup %5471 }
 0xc66   :  { %v5474_v7 = vpop.eup %5473  ;;  %v4002_v58 = vmul.f32 %v5472_v42, %v5470_v45  ;;  %v7199_v45 = vld [vmem:[%s7436_s4 + $0x4c] ss:$16 sps:$4 sm:$0xff]   ;;  %v7205_v42 = vld [vmem:[%s7436_s4 + $0x40] ss:$16 sps:$4 sm:$0xff]  }
 0xc67   :  { %v4001_v57 = vmul.f32 %v5474_v7, %v7047_v13  ;;  %v5476_v15 = vpop.eup %5475  ;;  %v7211_v7 = vld [vmem:[%s7436_s4 + $0x48] ss:$16 sps:$4 sm:$0xff]  }
 0xc69   :  { %v7093_v4 = vadd.f32 %v4002_v58, %v4001_v57  ;;  %v7217_v58 = vld [vmem:[%s7436_s4 + $0x64] ss:$16 sps:$4 sm:$0xff]   ;;  %v7229_v57 = vld [vmem:[%s7436_s4 + $0x60] ss:$16 sps:$4 sm:$0xff]  }
 0xc6b   :  { %5477 = vtanh.f32 %v7093_v4 }
 0xc75   :  { %v5478_v39 = vpop.eup %5477 }
 0xc76   :  { %v4005_v12 = vmul.f32 %v5478_v39, %v5476_v15  ;;  %v7241_v15 = vld [vmem:[%s7436_s4 + $0x84] ss:$16 sps:$4 sm:$0xff]   ;;  %v7247_v39 = vld [vmem:[%s7436_s4 + $0x8c] ss:$16 sps:$4 sm:$0xff]  }
 0xc78   :  { %v4010_v14 = vpack.c.bf16 %v4005_v12, %v4005_v12  ;;  %v7253_v12 = vld [vmem:[%s7436_s4 + $0x80] ss:$16 sps:$4 sm:$0xff]  }
 0xc7a   :  { %4044 = vmatmul.mubr.bf16.vlgmr.msra.gmra.mrb[80].mxu0 %v4010_v14  ;;  %4085 = vmatmul.mubr.bf16.vlgmr.msra.gmra.mrb[80].mxu1 %v4010_v14  ;;  %v7259_v14 = vld [vmem:[%s7436_s4 + $0x88] ss:$16 sps:$4 sm:$0xff]  }
 0xc7b   :  { %4127 = vmatpush1.bf16.msra.mxu0 %v6640_v31  ;;  %4168 = vmatpush1.bf16.msra.mxu1 %v6645_v47  ;;  %v7131_v31 = vld [vmem:[%s7436_s4 + $0x4] ss:$16 sps:$4 sm:$0xff]   ;;  %v7137_v47 = vld [vmem:[%s7436_s4 + $0xc] ss:$16 sps:$4 sm:$0xff]  }
 0xc7c   :  { %4128 = vmatprep.subr.bf16.mxu0 %v6653_v56  ;;  %4169 = vmatprep.subr.bf16.mxu1 %v6658_v0  ;;  %v7528_v56 = vld [vmem:[#allocation12_spill] sm:$0xff] }
 0xc7d   :  { %4158 = vmatprep.mubr.bf16.mxu0 %v7471_v8  ;;  %4199 = vmatprep.mubr.bf16.mxu1 %v7471_v8  ;;  %v3232_v0 = vadd.f32 %v7528_v56, %v6929_v33  ;;  %v7265_v56 = vld [vmem:[%s7436_s4 + $0xa4] ss:$16 sps:$4 sm:$0xff]  }
 0xc7f   :  { %4129 = vmatpush1.bf16.msra.mxu0 %v6663_v19  ;;  %4170 = vmatpush1.bf16.msra.mxu1 %v6668_v23  ;;  %v7529_v19 = vld [vmem:[#allocation13_spill] sm:$0xff] }
 0xc80   :  { %4130 = vmatprep.subr.bf16.mxu0 %v6677_v25  ;;  %4171 = vmatprep.subr.bf16.mxu1 %v6682_v27  ;;  %v3305_v23 = vadd.f32 %v7529_v19, %v6933_v18  ;;  %v7530_v25 = vld [vmem:[#allocation14_spill] sm:$0xff] }
 0xc81   :  { %v3234_v27 = vadd.f32 %v7530_v25, %v6941_v48  ;;  %v7277_v19 = vld [vmem:[%s7436_s4 + $0xa0] ss:$16 sps:$4 sm:$0xff]   ;;  %v7289_v25 = vld [vmem:[%s7436_s4 + $0xc4] ss:$16 sps:$4 sm:$0xff]  }
 0xc83   :  { %4131 = vmatpush1.bf16.msra.mxu0 %v6687_v10  ;;  %4172 = vmatpush1.bf16.msra.mxu1 %v6692_v28  ;;  %v7531_v10 = vld [vmem:[#allocation15_spill] sm:$0xff] }
 0xc84   :  { %4132 = vmatprep.subr.bf16.mxu0 %v6701_v20  ;;  %4173 = vmatprep.subr.bf16.mxu1 %v6706_v21  ;;  %v3307_v28 = vadd.f32 %v7531_v10, %v6945_v44  ;;  %v7301_v10 = vld [vmem:[%s7436_s4 + $0xc0] ss:$16 sps:$4 sm:$0xff]  }
 0xc87   :  { %4133 = vmatpush1.bf16.msra.mxu0 %v6711_v32  ;;  %4174 = vmatpush1.bf16.msra.mxu1 %v6716_v24 }
 0xc88   :  { %4134 = vmatprep.subr.bf16.mxu0 %v6725_v62  ;;  %4175 = vmatprep.subr.bf16.mxu1 %v6730_v30 }
 0xc8b   :  { %4135 = vmatpush1.bf16.msra.mxu0 %v6735_v29  ;;  %4176 = vmatpush1.bf16.msra.mxu1 %v6740_v11 }
 0xc8c   :  { %4136 = vmatprep.subr.bf16.mxu0 %v6749_v36  ;;  %4177 = vmatprep.subr.bf16.mxu1 %v6754_v37 }
 0xc8f   :  { %4137 = vmatpush1.bf16.msra.mxu0 %v6759_v38  ;;  %4178 = vmatpush1.bf16.msra.mxu1 %v6764_v51 }
 0xc90   :  { %4138 = vmatprep.subr.bf16.mxu0 %v6773_v2  ;;  %4179 = vmatprep.subr.bf16.mxu1 %v6778_v5 }
 0xc93   :  { %4139 = vmatpush1.bf16.msra.mxu0 %v6783_v35  ;;  %4180 = vmatpush1.bf16.msra.mxu1 %v6788_v40 }
 0xc94   :  { %4140 = vmatprep.subr.bf16.mxu0 %v6797_v41  ;;  %4181 = vmatprep.subr.bf16.mxu1 %v6802_v43 }
 0xc97   :  { %4141 = vmatpush1.bf16.msra.mxu0 %v6807_v46  ;;  %4182 = vmatpush1.bf16.msra.mxu1 %v6812_v53 }
 0xc98   :  { %4241 = vmatprep.subr.bf16.mxu0 %v7131_v31  ;;  %4282 = vmatprep.subr.bf16.mxu1 %v7137_v47 }
 0xd4d   :  { %v4045_v20 = vpop.f32.mrb[80].mxu0  ;;  %v4086_v21 = vpop.f32.mrb[80].mxu1 }
 0xd4e   :  { %v4093_v32 = vadd.f32 %v4045_v20, %v3232_v0  ;;  %v4095_v24 = vadd.f32 %v4086_v21, %v3305_v23  ;;  %v4047_v62 = vpop.f32.mrb[81].mxu0  ;;  %v4088_v30 = vpop.f32.mrb[81].mxu1  ;;  %v7271_v0 = vld [vmem:[%s7436_s4 + $0xac] ss:$16 sps:$4 sm:$0xff]   ;;  %v7283_v23 = vld [vmem:[%s7436_s4 + $0xa8] ss:$16 sps:$4 sm:$0xff]  }
 0xd4f   :  { %v4094_v29 = vadd.f32 %v4047_v62, %v3234_v27  ;;  %v4096_v11 = vadd.f32 %v4088_v30, %v3307_v28  ;;  %v4049_v36 = vpop.f32.mrb[82].mxu0  ;;  %v4090_v37 = vpop.f32.mrb[82].mxu1  ;;  %v7295_v27 = vld [vmem:[%s7436_s4 + $0xcc] ss:$16 sps:$4 sm:$0xff]   ;;  %v7307_v28 = vld [vmem:[%s7436_s4 + $0xc8] ss:$16 sps:$4 sm:$0xff]  }
 0xd50   :  { %v4982_v38 = vmul.f32 -1.442695, %v4093_v32  ;;  %v4050_v51 = vpop.f32.mrb[83].mxu0  ;;  %v4091_v2 = vpop.f32.mrb[83].mxu1  ;;  %v7313_v20 = vld [vmem:[%s7436_s4 + $0xe4] ss:$16 sps:$4 sm:$0xff]  }
 0xd51   :  { %v4983_v5 = vmul.f32 -1.442695, %v4094_v29  ;;  %v4984_v35 = vmul.f32 -1.442695, %v4096_v11  ;;  %v7319_v21 = vld [vmem:[%s7436_s4 + $0xec] ss:$16 sps:$4 sm:$0xff]  }
 0xd52   :  { %5479 = vpow2.f32 %v4982_v38  ;;  %v7325_v32 = vld [vmem:[%s7436_s4 + $0xe0] ss:$16 sps:$4 sm:$0xff]   ;;  %v7533_v29 = vld [vmem:[#allocation17_spill] sm:$0xff]  ;;  %v7535_v38 = vld [vmem:[#allocation19_spill] sm:$0xff] }
 0xd53   :  { %5481 = vpow2.f32 %v4983_v5  ;;  %v7532_v62 = vld [vmem:[#allocation16_spill] sm:$0xff]  ;;  %v3309_v11 = vadd.f32 %v7533_v29, %v6933_v18  ;;  %v7534_v36 = vld [vmem:[#allocation18_spill] sm:$0xff]  ;;  %v3311_v51 = vadd.f32 %v7535_v38, %v6945_v44 }
 0xd54   :  { %5483 = vpow2.f32 %v4984_v35  ;;  %v3236_v30 = vadd.f32 %v7532_v62, %v6929_v33  ;;  %v3238_v37 = vadd.f32 %v7534_v36, %v6941_v48 }
 0xd55   :  { %5485 = vtanh.f32 %v4095_v24  ;;  %v7331_v24 = vld [vmem:[%s7436_s4 + $0xe8] ss:$16 sps:$4 sm:$0xff]  }
 0xd5c   :  { %v5480_v40 = vpop.eup %5479 }
 0xd5d   :  { %v5482_v41 = vpop.eup %5481  ;;  %v4100_v43 = vadd.f32 1.0, %v5480_v40 }
 0xd5e   :  { %v4106_v46 = vadd.f32 1.0, %v5482_v41  ;;  %v5484_v53 = vpop.eup %5483 }
 0xd5f   :  { %5487 = vrcp.f32 %v4100_v43  ;;  %v5486_v13 = vpop.eup %5485  ;;  %v4113_v16 = vadd.f32 1.0, %v5484_v53 }
 0xd60   :  { %5489 = vrcp.f32 %v4106_v46 }
 0xd61   :  { %5491 = vrcp.f32 %v4113_v16 }
 0xd69   :  { %v5488_v3 = vpop.eup %5487 }
 0xd6a   :  { %v5490_v50 = vpop.eup %5489  ;;  %v4117_v22 = vmul.f32 %v5488_v3, %v5486_v13 }
 0xd6b   :  { %v4116_v1 = vmul.f32 %v5490_v50, %v7093_v4  ;;  %v5492_v59 = vpop.eup %5491  ;;  %v7235_v4 = vld [vmem:[%s7436_s4 + $0x68] ss:$16 sps:$4 sm:$0xff]  }
 0xd6d   :  { %v7149_v49 = vadd.f32 %v4117_v22, %v4116_v1 }
 0xd6f   :  { %5493 = vtanh.f32 %v7149_v49 }
 0xd79   :  { %v5494_v17 = vpop.eup %5493 }
 0xd7a   :  { %v4120_v9 = vmul.f32 %v5494_v17, %v5492_v59 }
 0xd7c   :  { %v4125_v6 = vpack.c.bf16 %v4120_v9, %v4120_v9 }
 0xd7e   :  { %4159 = vmatmul.mubr.bf16.vlgmr.msra.gmra.mrb[84].mxu0 %v4125_v6  ;;  %4200 = vmatmul.mubr.bf16.vlgmr.msra.gmra.mrb[84].mxu1 %v4125_v6 }
 0xd7f   :  { %4242 = vmatpush1.bf16.msra.mxu0 %v7155_v26  ;;  %4283 = vmatpush1.bf16.msra.mxu1 %v7161_v54 }
 0xd80   :  { %4243 = vmatprep.subr.bf16.mxu0 %v7167_v63  ;;  %4284 = vmatprep.subr.bf16.mxu1 %v7173_v55 }
 0xd81   :  { %4273 = vmatprep.mubr.bf16.mxu0 %v7471_v8  ;;  %4314 = vmatprep.mubr.bf16.mxu1 %v7471_v8 }
 0xd83   :  { %4244 = vmatpush1.bf16.msra.mxu0 %v7181_v52  ;;  %4285 = vmatpush1.bf16.msra.mxu1 %v7187_v34 }
 0xd84   :  { %4245 = vmatprep.subr.bf16.mxu0 %v7193_v60  ;;  %4286 = vmatprep.subr.bf16.mxu1 %v7199_v45 }
 0xd87   :  { %4246 = vmatpush1.bf16.msra.mxu0 %v7205_v42  ;;  %4287 = vmatpush1.bf16.msra.mxu1 %v7211_v7 }
 0xd88   :  { %4247 = vmatprep.subr.bf16.mxu0 %v7217_v58  ;;  %4288 = vmatprep.subr.bf16.mxu1 %v7223_v61 }
 0xd8b   :  { %4248 = vmatpush1.bf16.msra.mxu0 %v7229_v57  ;;  %4289 = vmatpush1.bf16.msra.mxu1 %v7235_v4 }
 0xd8c   :  { %4249 = vmatprep.subr.bf16.mxu0 %v7241_v15  ;;  %4290 = vmatprep.subr.bf16.mxu1 %v7247_v39 }
 0xd8f   :  { %4250 = vmatpush1.bf16.msra.mxu0 %v7253_v12  ;;  %4291 = vmatpush1.bf16.msra.mxu1 %v7259_v14 }
 0xd90   :  { %4251 = vmatprep.subr.bf16.mxu0 %v7265_v56  ;;  %4292 = vmatprep.subr.bf16.mxu1 %v7271_v0 }
 0xd93   :  { %4252 = vmatpush1.bf16.msra.mxu0 %v7277_v19  ;;  %4293 = vmatpush1.bf16.msra.mxu1 %v7283_v23 }
 0xd94   :  { %4253 = vmatprep.subr.bf16.mxu0 %v7289_v25  ;;  %4294 = vmatprep.subr.bf16.mxu1 %v7295_v27 }
 0xd97   :  { %4254 = vmatpush1.bf16.msra.mxu0 %v7301_v10  ;;  %4295 = vmatpush1.bf16.msra.mxu1 %v7307_v28 }
 0xd98   :  { %4255 = vmatprep.subr.bf16.mxu0 %v7313_v20  ;;  %4296 = vmatprep.subr.bf16.mxu1 %v7319_v21 }
 0xd9b   :  { %4256 = vmatpush1.bf16.msra.mxu0 %v7325_v32  ;;  %4297 = vmatpush1.bf16.msra.mxu1 %v7331_v24 }
 0xd9c   :  { %4356 = vmatprep.subr.bf16.mxu0 %v7131_v31  ;;  %4397 = vmatprep.subr.bf16.mxu1 %v7137_v47 }
 0xe51   :  { %v4160_v2 = vpop.f32.mrb[84].mxu0  ;;  %v4201_v5 = vpop.f32.mrb[84].mxu1 }
 0xe52   :  { %v4208_v35 = vadd.f32 %v4160_v2, %v3236_v30  ;;  %v4210_v40 = vadd.f32 %v4201_v5, %v3309_v11  ;;  %v4162_v41 = vpop.f32.mrb[85].mxu0  ;;  %v4203_v31 = vpop.f32.mrb[85].mxu1 }
 0xe53   :  { %v4209_v43 = vadd.f32 %v4162_v41, %v3238_v37  ;;  %v4211_v47 = vadd.f32 %v4203_v31, %v3311_v51  ;;  %v4164_v46 = vpop.f32.mrb[86].mxu0  ;;  %v4205_v53 = vpop.f32.mrb[86].mxu1 }
 0xe54   :  { %v4985_v13 = vmul.f32 -1.442695, %v4208_v35  ;;  %v4165_v3 = vpop.f32.mrb[87].mxu0  ;;  %v4206_v50 = vpop.f32.mrb[87].mxu1 }
 0xe55   :  { %v4986_v22 = vmul.f32 -1.442695, %v4209_v43  ;;  %v4987_v16 = vmul.f32 -1.442695, %v4211_v47  ;;  %v5576_v3 = vmov 0.0   ;;  %v5280_v50 = vld [vmem:[%s7438_s7 + $0x8] sm:$0xff]  }
 0xe56   :  { %5495 = vpow2.f32 %v4985_v13  ;;  %v5279_v13 = vld [vmem:[%s7438_s7] sm:$0xff]  }
 0xe57   :  { %5497 = vpow2.f32 %v4986_v22  ;;  %v5281_v22 = vld [vmem:[%s7438_s7 + $0x10] sm:$0xff]  }
 0xe58   :  { %5499 = vpow2.f32 %v4987_v16  ;;  %v5282_v16 = vld [vmem:[%s7438_s7 + $0x18] sm:$0xff]  }
 0xe59   :  { %5501 = vtanh.f32 %v4210_v40 }
 0xe60   :  { %v5496_v1 = vpop.eup %5495 }
 0xe61   :  { %v5498_v59 = vpop.eup %5497  ;;  %v4215_v17 = vadd.f32 1.0, %v5496_v1  ;;  %v5283_v1 = vld [vmem:[%s7438_s7 + $0x20] sm:$0xff]  }
 0xe62   :  { %v4221_v9 = vadd.f32 1.0, %v5498_v59  ;;  %v5500_v6 = vpop.eup %5499  ;;  %v5284_v59 = vld [vmem:[%s7438_s7 + $0x28] sm:$0xff]  }
 0xe63   :  { %5503 = vrcp.f32 %v4215_v17  ;;  %v5502_v62 = vpop.eup %5501  ;;  %v4228_v36 = vadd.f32 1.0, %v5500_v6  ;;  %v5285_v17 = vld [vmem:[%s7438_s7 + $0x30] sm:$0xff]   ;;  %v7540_v6 = vld [vmem:[#allocation24_spill] sm:$0xff] }
 0xe64   :  { %5505 = vrcp.f32 %v4221_v9  ;;  %v5286_v9 = vld [vmem:[%s7438_s7 + $0x38] sm:$0xff]  }
 0xe65   :  { %5507 = vrcp.f32 %v4228_v36 }
 0xe6d   :  { %v5504_v30 = vpop.eup %5503 }
 0xe6e   :  { %v5506_v29 = vpop.eup %5505  ;;  %v4232_v11 = vmul.f32 %v5504_v30, %v5502_v62  ;;  %v3246_v62 = vadd.f32 %v7540_v6, %v6929_v33  ;;  %v7541_v30 = vld [vmem:[#allocation25_spill] sm:$0xff] }
 0xe6f   :  { %v4231_v37 = vmul.f32 %v5506_v29, %v7149_v49  ;;  %v5508_v51 = vpop.eup %5507  ;;  %v3319_v29 = vadd.f32 %v7541_v30, %v6933_v18 }
 0xe71   :  { %v7345_v38 = vadd.f32 %v4232_v11, %v4231_v37  ;;  %v7542_v11 = vld [vmem:[#allocation4_spill] sm:$0xff]  ;;  %v7543_v37 = vld [vmem:[#allocation26_spill] sm:$0xff] }
 0xe72   :  { %v3248_v36 = vadd.f32 %v7542_v11, %v6941_v48 }
 0xe73   :  { %5509 = vtanh.f32 %v7345_v38 }
 0xe7d   :  { %v5510_v2 = vpop.eup %5509 }
 0xe7e   :  { %v4235_v5 = vmul.f32 %v5510_v2, %v5508_v51 }
 0xe80   :  { %v4240_v35 = vpack.c.bf16 %v4235_v5, %v4235_v5 }
 0xe82   :  { %4274 = vmatmul.mubr.bf16.vlgmr.msra.gmra.mrb[88].mxu0 %v4240_v35  ;;  %4315 = vmatmul.mubr.bf16.vlgmr.msra.gmra.mrb[88].mxu1 %v4240_v35 }
 0xe83   :  { %4357 = vmatpush1.bf16.msra.mxu0 %v7155_v26  ;;  %4398 = vmatpush1.bf16.msra.mxu1 %v7161_v54  ;;  %v7537_v26 = vld [vmem:[#allocation21_spill] sm:$0xff] }
 0xe84   :  { %4358 = vmatprep.subr.bf16.mxu0 %v7167_v63  ;;  %4399 = vmatprep.subr.bf16.mxu1 %v7173_v55  ;;  %v3315_v54 = vadd.f32 %v7537_v26, %v6933_v18  ;;  %v7538_v63 = vld [vmem:[#allocation22_spill] sm:$0xff] }
 0xe85   :  { %4388 = vmatprep.mubr.bf16.mxu0 %v7471_v8  ;;  %4429 = vmatprep.mubr.bf16.mxu1 %v7471_v8  ;;  %v7536_v8 = vld [vmem:[#allocation20_spill] sm:$0xff]  ;;  %v3244_v55 = vadd.f32 %v7538_v63, %v6941_v48 }
 0xe86   :  { %v3242_v49 = vadd.f32 %v7536_v8, %v6929_v33 }
 0xe87   :  { %4359 = vmatpush1.bf16.msra.mxu0 %v7181_v52  ;;  %4400 = vmatpush1.bf16.msra.mxu1 %v7187_v34  ;;  %v7539_v52 = vld [vmem:[#allocation23_spill] sm:$0xff] }
 0xe88   :  { %4360 = vmatprep.subr.bf16.mxu0 %v7193_v60  ;;  %4401 = vmatprep.subr.bf16.mxu1 %v7199_v45  ;;  %v3317_v34 = vadd.f32 %v7539_v52, %v6945_v44 }
 0xe8b   :  { %4361 = vmatpush1.bf16.msra.mxu0 %v7205_v42  ;;  %4402 = vmatpush1.bf16.msra.mxu1 %v7211_v7 }
 0xe8c   :  { %4362 = vmatprep.subr.bf16.mxu0 %v7217_v58  ;;  %4403 = vmatprep.subr.bf16.mxu1 %v7223_v61 }
 0xe8f   :  { %4363 = vmatpush1.bf16.msra.mxu0 %v7229_v57  ;;  %4404 = vmatpush1.bf16.msra.mxu1 %v7235_v4 }
 0xe90   :  { %4364 = vmatprep.subr.bf16.mxu0 %v7241_v15  ;;  %4405 = vmatprep.subr.bf16.mxu1 %v7247_v39 }
 0xe93   :  { %4365 = vmatpush1.bf16.msra.mxu0 %v7253_v12  ;;  %4406 = vmatpush1.bf16.msra.mxu1 %v7259_v14 }
 0xe94   :  { %4366 = vmatprep.subr.bf16.mxu0 %v7265_v56  ;;  %4407 = vmatprep.subr.bf16.mxu1 %v7271_v0 }
 0xe97   :  { %4367 = vmatpush1.bf16.msra.mxu0 %v7277_v19  ;;  %4408 = vmatpush1.bf16.msra.mxu1 %v7283_v23 }
 0xe98   :  { %4368 = vmatprep.subr.bf16.mxu0 %v7289_v25  ;;  %4409 = vmatprep.subr.bf16.mxu1 %v7295_v27 }
 0xe9b   :  { %4369 = vmatpush1.bf16.msra.mxu0 %v7301_v10  ;;  %4410 = vmatpush1.bf16.msra.mxu1 %v7307_v28 }
 0xe9c   :  { %4370 = vmatprep.subr.bf16.mxu0 %v7313_v20  ;;  %4411 = vmatprep.subr.bf16.mxu1 %v7319_v21 }
 0xe9f   :  { %4371 = vmatpush1.bf16.msra.mxu0 %v7325_v32  ;;  %4412 = vmatpush1.bf16.msra.mxu1 %v7331_v24 }
 0xea0   :  { %5012 = vmatprep.subr.bf16.mxu0 %v5576_v3 }
 0xf55   :  { %v4275_v60 = vpop.f32.mrb[88].mxu0  ;;  %v4316_v45 = vpop.f32.mrb[88].mxu1 }
 0xf56   :  { %v4323_v42 = vadd.f32 %v4275_v60, %v3242_v49  ;;  %v4325_v7 = vadd.f32 %v4316_v45, %v3315_v54  ;;  %v4277_v58 = vpop.f32.mrb[89].mxu0  ;;  %v4318_v61 = vpop.f32.mrb[89].mxu1 }
 0xf57   :  { %v4324_v57 = vadd.f32 %v4277_v58, %v3244_v55  ;;  %v4326_v4 = vadd.f32 %v4318_v61, %v3317_v34  ;;  %v4279_v15 = vpop.f32.mrb[90].mxu0  ;;  %v4320_v39 = vpop.f32.mrb[90].mxu1 }
 0xf58   :  { %v4988_v12 = vmul.f32 -1.442695, %v4323_v42  ;;  %v4280_v14 = vpop.f32.mrb[91].mxu0  ;;  %v4321_v56 = vpop.f32.mrb[91].mxu1 }
 0xf59   :  { %v4989_v0 = vmul.f32 -1.442695, %v4324_v57  ;;  %v4990_v19 = vmul.f32 -1.442695, %v4326_v4 }
 0xf5a   :  { %5511 = vpow2.f32 %v4988_v12 }
 0xf5b   :  { %5513 = vpow2.f32 %v4989_v0 }
 0xf5c   :  { %5515 = vpow2.f32 %v4990_v19 }
 0xf5d   :  { %5517 = vtanh.f32 %v4325_v7 }
 0xf64   :  { %v5512_v23 = vpop.eup %5511 }
 0xf65   :  { %v5514_v25 = vpop.eup %5513  ;;  %v4330_v27 = vadd.f32 1.0, %v5512_v23  ;;  %v4994_v23 = vld [vmem:[%s7439_s8] ss:$0 sm:$0xff] }
 0xf66   :  { %v4336_v10 = vadd.f32 1.0, %v5514_v25  ;;  %v5516_v28 = vpop.eup %5515 }
 0xf67   :  { %5519 = vrcp.f32 %v4330_v27  ;;  %v5518_v20 = vpop.eup %5517  ;;  %v4343_v40 = vadd.f32 1.0, %v5516_v28 }
 0xf68   :  { %5521 = vrcp.f32 %v4336_v10 }
 0xf69   :  { %5523 = vrcp.f32 %v4343_v40 }
 0xf71   :  { %v5520_v21 = vpop.eup %5519 }
 0xf72   :  { %v5522_v32 = vpop.eup %5521  ;;  %v4347_v24 = vmul.f32 %v5520_v21, %v5518_v20 }
 0xf73   :  { %v4346_v41 = vmul.f32 %v5522_v32, %v7345_v38  ;;  %v5524_v43 = vpop.eup %5523  ;;  %v3321_v38 = vadd.f32 %v7543_v37, %v6945_v44 }
 0xf75   :  { %v7389_v31 = vadd.f32 %v4347_v24, %v4346_v41 }
 0xf77   :  { %5525 = vtanh.f32 %v7389_v31 }
 0xf81   :  { %v5526_v47 = vpop.eup %5525 }
 0xf82   :  { %v4350_v46 = vmul.f32 %v5526_v47, %v5524_v43 }
 0xf84   :  { %v4355_v53 = vpack.c.bf16 %v4350_v46, %v4350_v46 }
 0xf86   :  { %4389 = vmatmul.mubr.bf16.vlgmr.msra.gmra.mrb[92].mxu0 %v4355_v53  ;;  %4430 = vmatmul.mubr.bf16.vlgmr.msra.gmra.mrb[92].mxu1 %v4355_v53 }
 0xf87   :  { %5013 = vmatpush3.bf16.msra.mxu0 %v5279_v13  ;;  %5028 = vmatprep.mubr.msk.bf16.mxu0 %vm5577_vm0, %v5576_v3 }
 0xf88   :  { %5014 = vmatprep.subr.bf16.mxu0 %v5576_v3 }
 0xf8b   :  { %5015 = vmatpush3.bf16.msra.mxu0 %v5280_v50 }
 0xf8c   :  { %5016 = vmatprep.subr.bf16.mxu0 %v5576_v3 }
 0xf8f   :  { %5017 = vmatpush3.bf16.msra.mxu0 %v5281_v22 }
 0xf90   :  { %5018 = vmatprep.subr.bf16.mxu0 %v5576_v3 }
 0xf93   :  { %5019 = vmatpush3.bf16.msra.mxu0 %v5282_v16 }
 0xf94   :  { %5020 = vmatprep.subr.bf16.mxu0 %v5576_v3 }
 0xf97   :  { %5021 = vmatpush3.bf16.msra.mxu0 %v5283_v1 }
 0xf98   :  { %5022 = vmatprep.subr.bf16.mxu0 %v5576_v3 }
 0xf9b   :  { %5023 = vmatpush3.bf16.msra.mxu0 %v5284_v59 }
 0xf9c   :  { %5024 = vmatprep.subr.bf16.mxu0 %v5576_v3 }
 0xf9f   :  { %5025 = vmatpush3.bf16.msra.mxu0 %v5285_v17 }
 0xfa0   :  { %5026 = vmatprep.subr.bf16.mxu0 %v5576_v3 }
 0xfa3   :  { %5027 = vmatpush3.bf16.msra.mxu0 %v5286_v9 }
0x1059   :  { %v4390_v51 = vpop.f32.mrb[92].mxu0  ;;  %v4431_v2 = vpop.f32.mrb[92].mxu1 }
0x105a   :  { %v4438_v5 = vadd.f32 %v4390_v51, %v3246_v62  ;;  %v4440_v35 = vadd.f32 %v4431_v2, %v3319_v29  ;;  %v4392_v8 = vpop.f32.mrb[93].mxu0  ;;  %v4433_v49 = vpop.f32.mrb[93].mxu1 }
0x105b   :  { %v4439_v26 = vadd.f32 %v4392_v8, %v3248_v36  ;;  %v4441_v54 = vadd.f32 %v4433_v49, %v3321_v38  ;;  %v4394_v63 = vpop.f32.mrb[94].mxu0  ;;  %v4435_v55 = vpop.f32.mrb[94].mxu1 }
0x105c   :  { %v4991_v33 = vmul.f32 -1.442695, %v4438_v5  ;;  %v4395_v52 = vpop.f32.mrb[95].mxu0  ;;  %v4436_v34 = vpop.f32.mrb[95].mxu1 }
0x105d   :  { %v4992_v18 = vmul.f32 -1.442695, %v4439_v26  ;;  %v4993_v48 = vmul.f32 -1.442695, %v4441_v54 }
0x105e   :  { %5527 = vpow2.f32 %v4991_v33 }
0x105f   :  { %5529 = vpow2.f32 %v4992_v18 }
0x1060   :  { %5531 = vpow2.f32 %v4993_v48 }
0x1061   :  { %5533 = vtanh.f32 %v4440_v35 }
0x1068   :  { %v5528_v60 = vpop.eup %5527 }
0x1069   :  { %v5530_v45 = vpop.eup %5529  ;;  %v4445_v44 = vadd.f32 1.0, %v5528_v60 }
0x106a   :  { %v4451_v42 = vadd.f32 1.0, %v5530_v45  ;;  %v5532_v7 = vpop.eup %5531 }
0x106b   :  { %5535 = vrcp.f32 %v4445_v44  ;;  %v5534_v58 = vpop.eup %5533  ;;  %v4458_v15 = vadd.f32 1.0, %v5532_v7 }
0x106c   :  { %5537 = vrcp.f32 %v4451_v42 }
0x106d   :  { %5539 = vrcp.f32 %v4458_v15 }
0x1075   :  { %v5536_v61 = vpop.eup %5535 }
0x1076   :  { %v5538_v57 = vpop.eup %5537  ;;  %v4462_v4 = vmul.f32 %v5536_v61, %v5534_v58 }
0x1077   :  { %v4461_v39 = vmul.f32 %v5538_v57, %v7389_v31  ;;  %v5540_v14 = vpop.eup %5539 }
0x1079   :  { %v4463_v12 = vadd.f32 %v4462_v4, %v4461_v39 }
0x107b   :  { %5541 = vtanh.f32 %v4463_v12 }
0x1085   :  { %v5542_v56 = vpop.eup %5541 }
0x1086   :  { %v4465_v0 = vmul.f32 %v5542_v56, %v5540_v14 }
0x1088   :  { %v4466_v19 = vpack.c.bf16 %v4465_v0, %v4465_v0 }
0x108a   :  { %5029 = vmatmul.mubr.bf16.vlgmr.msra.gmra.mrb[96].mxu0 %v4466_v19 }
0x115d   :  { %v4572_v25 = vpop.f32.mrb[96].mxu0 }
0x115e   :  { %v4573_v27 = vadd.f32 %v4994_v23, %v4572_v25  ;;  %v5030_v10 = vpop.f32.mrb[97].mxu0 }
0x115f   :  { %v4575_v28 = vpop.f32.mrb[98].mxu0 }
0x1160   :  { %4578 = vst [vmem:[%s7440_s9] sm:$0xff] %v4573_v27  ;;  %v5031_v20 = vpop.f32.mrb[99].mxu0 }

</bundles_post_ra>
